<compile_context>
chip_gen: v7x
topology: tpu7x:2x2x1
jax: 0.10.0
libtpu: 0.0.40
codegen_flags: <defaults>
</compile_context>

<pallas_src>
import functools

import numpy as np
import jax
import jax.numpy as jnp
from jax.experimental import pallas as pl
from jax.experimental.pallas import tpu as pltpu

LK = 5
NEG_SLOPE = 1.0 / LK          # LeakyReLU(1/LK)
BN_EPS = 1e-5


def _leaky(v):
    return jnp.where(v >= 0, v, v * NEG_SLOPE)


def _fire_kernel(x_ref, wsq_ref, wexp_ref, bexp_ref, out_ref, s_buf,
                 *, tm, halo, deltas):
    # x_ref    : (WIN, Cin+1) bf16  one overlapping row-window of the padded
    #            grid; the last channel is the interior indicator (1 interior,
    #            0 on conv-pad border / margin / tail padding).
    # wsq_ref  : (Cin+1, Mid) bf16  squeeze weight, BN scale folded in, last
    #            row = folded bias (applied only where the indicator is 1).
    # wexp_ref : (9, Mid, Cout) bf16  per-tap expand weight [branch1|branch3],
    #            BN scales folded; branch1 lives only in the centre tap.
    # bexp_ref : (1, Cout) f32 folded expand bias.
    # out_ref  : (TM, Cout) f32 output rows of the padded grid (border rows
    #            are cropped in the wrapper).
    # s_buf    : VMEM (WIN, Mid) f32 scratch: squeeze activation incl. halo.

    # ---- squeeze: 1x1 conv == channel matmul (bias & border mask folded into
    #      the indicator channel) + LeakyReLU ----
    s = jnp.dot(x_ref[...], wsq_ref[...], preferred_element_type=jnp.float32)
    s_buf[...] = _leaky(s)            # exactly 0 on border/margin rows

    # ---- expand: branch1(1x1) + branch3(3x3, pad=1) as 9 accumulating dots
    #      over constant flat-index shifts of the padded-grid activation ----
    acc = jnp.zeros((tm, out_ref.shape[1]), jnp.float32)
    for t in range(9):
        d = deltas[t]
        lhs = s_buf[halo + d: halo + d + tm, :].astype(jnp.bfloat16)
        acc = acc + jnp.dot(lhs, wexp_ref[t],
                            preferred_element_type=jnp.float32)
    out_ref[...] = _leaky(acc + bexp_ref[...]).astype(out_ref.dtype)


def fire_forward(x_nchw, kp):
    """x_nchw: (B, Cin, H, W) float32. Returns (B, E1+E3, H, W) float32."""
    B, Cin, H, W = x_nchw.shape
    Mid = kp["wsq"].shape[1]
    Cout = kp["wexp"].shape[2]

    Hp, Wp = H + 2, W + 2                              # conv padding=1 grid
    MP = B * Hp * Wp                                   # padded-grid rows, flat
    HALO = ((Wp + 1 + 7) // 8) * 8                     # sublane-aligned halo
    TM = min(512, max(8, ((-(-MP // 2) + 7) // 8) * 8))  # >=2 tiles on small inputs
    n_tiles = -(-MP // TM)
    MPpad = n_tiles * TM
    WIN = TM + 2 * HALO
    deltas = tuple((dy - 1) * Wp + (dx - 1)
                   for dy in range(3) for dx in range(3))

    # Wrapper-side layout plumbing: NCHW -> NHWC, zero-pad conv border, append
    # the interior-indicator channel, flatten to rows, then build overlapping
    # row windows (halo included) and cast to bf16 for the MXU.
    x_nhwc = jnp.transpose(x_nchw, (0, 2, 3, 1))
    x_pad = jnp.pad(x_nhwc, ((0, 0), (1, 1), (1, 1), (0, 0)))
    ind = jnp.pad(jnp.ones((B, H, W, 1), jnp.float32),
                  ((0, 0), (1, 1), (1, 1), (0, 0)))
    x_aug = jnp.concatenate([x_pad, ind], axis=-1).reshape(MP, Cin + 1)
    x_ext = jnp.pad(x_aug, ((HALO, MPpad - MP + HALO), (0, 0)))
    gidx = jnp.arange(n_tiles)[:, None] * TM + jnp.arange(WIN)[None, :]
    x_big = x_ext[gidx].reshape(n_tiles * WIN, Cin + 1).astype(jnp.bfloat16)

    kernel = functools.partial(_fire_kernel, tm=TM, halo=HALO, deltas=deltas)

    flops = 2 * n_tiles * (WIN * (Cin + 1) * Mid + 9 * TM * Mid * Cout)
    bytes_accessed = (x_big.size * 2 + MPpad * Cout * 4
                      + kp["wsq"].size * 2 + kp["wexp"].size * 2
                      + kp["bexp"].size * 4)

    out_flat = pl.pallas_call(
        kernel,
        out_shape=jax.ShapeDtypeStruct((MPpad, Cout), jnp.float32),
        grid_spec=pltpu.PrefetchScalarGridSpec(
            num_scalar_prefetch=0,
            grid=(n_tiles,),
            in_specs=[
                pl.BlockSpec((WIN, Cin + 1), lambda i: (i, 0)),
                pl.BlockSpec(kp["wsq"].shape, lambda i: (0, 0)),
                pl.BlockSpec(kp["wexp"].shape, lambda i: (0, 0, 0)),
                pl.BlockSpec(kp["bexp"].shape, lambda i: (0, 0)),
            ],
            out_specs=pl.BlockSpec((TM, Cout), lambda i: (i, 0)),
            scratch_shapes=[pltpu.VMEM((WIN, Mid), jnp.float32)],
        ),
        compiler_params=pltpu.CompilerParams(
            dimension_semantics=("parallel",),          # megacore on v7x
            vmem_limit_bytes=48 * 1024 * 1024),         # v7x-safe budget
        cost_estimate=pl.CostEstimate(flops=flops, transcendentals=0,
                                      bytes_accessed=bytes_accessed),
    )(x_big, kp["wsq"], kp["wexp"], kp["bexp"])

    # Crop the tile tail + conv-padding border rows and go back to NCHW.
    out = out_flat[:MP].reshape(B, Hp, Wp, Cout)[:, 1:H + 1, 1:W + 1, :]
    return jnp.transpose(out, (0, 3, 1, 2))


# ----------------------- parameter construction (glue) -----------------------

def _conv_init(key, cout, cin, kh, kw):
    kw_, kb_ = jax.random.split(key)
    fan_in = cin * kh * kw
    bound = 1.0 / np.sqrt(fan_in)
    w = jax.random.uniform(kw_, (cout, cin, kh, kw), jnp.float32, -bound, bound)
    b = jax.random.uniform(kb_, (cout,), jnp.float32, -bound, bound)
    return w, b


def _bn_init(key, c):
    kg, kb, km, kv = jax.random.split(key, 4)
    gamma = jax.random.uniform(kg, (c,), jnp.float32, 0.5, 1.5)
    beta = jax.random.uniform(kb, (c,), jnp.float32, -0.5, 0.5)
    mean = jax.random.uniform(km, (c,), jnp.float32, -0.5, 0.5)
    var = jax.random.uniform(kv, (c,), jnp.float32, 0.5, 1.5)
    return gamma, beta, mean, var


def make_fire_params(key, inc, mid, e1, e3):
    keys = jax.random.split(key, 6)
    raw = {}
    raw["sq_w"], raw["sq_b"] = _conv_init(keys[0], mid, inc, 1, 1)
    raw["sq_bn"] = _bn_init(keys[1], mid)
    raw["b1_w"], raw["b1_b"] = _conv_init(keys[2], e1, mid, 1, 1)
    raw["b1_bn"] = _bn_init(keys[3], e1)
    raw["b3_w"], raw["b3_b"] = _conv_init(keys[4], e3, mid, 3, 3)
    raw["b3_bn"] = _bn_init(keys[5], e3)

    def fold(conv_b, bn):
        gamma, beta, mean, var = bn
        scale = gamma / jnp.sqrt(var + BN_EPS)
        bias = beta + scale * (conv_b - mean)
        return scale, bias

    ssq, bsq = fold(raw["sq_b"], raw["sq_bn"])
    s1, b1 = fold(raw["b1_b"], raw["b1_bn"])
    s3, b3 = fold(raw["b3_b"], raw["b3_bn"])

    # Squeeze weight with BN scale folded in; last row = folded bias, which the
    # interior-indicator input channel (1 interior / 0 border) activates.
    wsq_mat = jnp.transpose(raw["sq_w"][:, :, 0, 0], (1, 0)) * ssq[None, :]
    wsq_aug = jnp.concatenate([wsq_mat, bsq[None, :]], axis=0)       # (Cin+1, Mid)

    cout = e1 + e3
    # Per-tap expand weight (9, Mid, Cout): columns [branch1 (E1) | branch3
    # (E3)], BN scales folded; branch1 only in the centre tap (t=4).
    wexp = jnp.zeros((9, mid, cout), jnp.float32)
    for dy in range(3):
        for dx in range(3):
            t = dy * 3 + dx
            w3_tap = jnp.transpose(raw["b3_w"][:, :, dy, dx], (1, 0)) * s3[None, :]
            wexp = wexp.at[t, :, e1:].set(w3_tap)
    w1 = jnp.transpose(raw["b1_w"][:, :, 0, 0], (1, 0)) * s1[None, :]
    wexp = wexp.at[4, :, :e1].set(w1)

    kernel_params = {
        "wsq": wsq_aug.astype(jnp.bfloat16),
        "wexp": wexp.astype(jnp.bfloat16),
        "bexp": jnp.concatenate([b1, b3])[None, :].astype(jnp.float32),
    }
    return raw, kernel_params


# --------------------------- pure-JAX reference ------------------------------

def ref_forward(x, raw):
    def conv(x, w, b, pad):
        y = jax.lax.conv_general_dilated(
            x, w, window_strides=(1, 1), padding=pad,
            dimension_numbers=("NCHW", "OIHW", "NCHW"))
        return y + b[None, :, None, None]

    def bn(y, params):
        gamma, beta, mean, var = params
        return (gamma[None, :, None, None] * (y - mean[None, :, None, None])
                / jnp.sqrt(var + BN_EPS)[None, :, None, None]
                + beta[None, :, None, None])

    def leaky(v):
        return jnp.where(v >= 0, v, v * NEG_SLOPE)

    s = leaky(bn(conv(x, raw["sq_w"], raw["sq_b"], ((0, 0), (0, 0))), raw["sq_bn"]))
    y1 = leaky(bn(conv(s, raw["b1_w"], raw["b1_b"], ((0, 0), (0, 0))), raw["b1_bn"]))
    y3 = leaky(bn(conv(s, raw["b3_w"], raw["b3_b"], ((1, 1), (1, 1))), raw["b3_bn"]))
    return jnp.concatenate([y1, y3], axis=1)


if __name__ == "__main__":
    B, INC, H, W = 2, 4, 16, 16
    MID, E1, E3 = 8, 8, 8

    key = jax.random.PRNGKey(0)
    kx, kp = jax.random.split(key)
    x = jax.random.normal(kx, (B, INC, H, W), jnp.float32)
    raw_params, kernel_params = make_fire_params(kp, INC, MID, E1, E3)

    out = jax.block_until_ready(fire_forward(x, kernel_params))
    ref = jax.block_until_ready(ref_forward(x, raw_params))

    assert out.shape == (B, E1 + E3, H, W), out.shape
    # Tolerance loosened vs the f32-only version: MXU operands are bf16
    # (f32 accumulation / epilogue), per the performance review.
    if not np.allclose(np.asarray(out), np.asarray(ref), atol=1e-1, rtol=5e-2):
        raise AssertionError("Pallas Fire kernel mismatch vs JAX reference")

    print("KERNEL_OK")
</pallas_src>

<mosaic_0001>
module attributes {stable_mosaic.version = 11 : i64} {
  func.func @_fire_kernel(%arg0: i32, %arg1: memref<376x5xbf16, #tpu.memory_space<vmem>>, %arg2: memref<5x8xbf16, #tpu.memory_space<vmem>>, %arg3: memref<9x8x16xbf16, #tpu.memory_space<vmem>>, %arg4: memref<1x16xf32, #tpu.memory_space<vmem>>, %arg5: memref<328x16xf32, #tpu.memory_space<vmem>>, %arg6: memref<376x8xf32, #tpu.memory_space<vmem>>) attributes {dimension_semantics = [#tpu.dimension_semantics<parallel>], iteration_bounds = array<i64: 2>, scalar_prefetch = 0 : i64, scratch_operands = 1 : i64, tpu.core_type = #tpu.core_type<tc>, window_params = [{transform_indices = @transform_0, window_bounds = array<i64: 376, 5>}, {pipeline_mode = #tpu.pipeline_mode<synchronous>, transform_indices = @transform_1, window_bounds = array<i64: 5, 8>}, {pipeline_mode = #tpu.pipeline_mode<synchronous>, transform_indices = @transform_2, window_bounds = array<i64: 9, 8, 16>}, {pipeline_mode = #tpu.pipeline_mode<synchronous>, transform_indices = @transform_3, window_bounds = array<i64: 1, 16>}, {transform_indices = @transform_4, window_bounds = array<i64: 328, 16>}]} {
    %c0 = arith.constant 0 : index
    %c0_0 = arith.constant 0 : index
    %0 = vector.load %arg1[%c0, %c0_0] : memref<376x5xbf16, #tpu.memory_space<vmem>>, vector<376x5xbf16>
    %c0_1 = arith.constant 0 : index
    %c0_2 = arith.constant 0 : index
    %1 = vector.load %arg2[%c0_1, %c0_2] : memref<5x8xbf16, #tpu.memory_space<vmem>>, vector<5x8xbf16>
    %cst = arith.constant dense<0.000000e+00> : vector<376x8xf32>
    %2 = tpu.matmul %0, %1, %cst {dimension_numbers = #tpu.dot_dimension_numbers<[1], [0], [0], [1], [0, 0, 1, 1], [], []>} : vector<376x5xbf16>, vector<5x8xbf16>, vector<376x8xf32> -> vector<376x8xf32>
    %cst_3 = arith.constant 0.000000e+00 : f32
    %3 = vector.broadcast %cst_3 : f32 to vector<376x8xf32>
    %4 = arith.cmpf oge, %2, %3 : vector<376x8xf32>
    %cst_4 = arith.constant 2.000000e-01 : f32
    %5 = vector.broadcast %cst_4 : f32 to vector<376x8xf32>
    %6 = arith.mulf %2, %5 : vector<376x8xf32>
    %7 = arith.select %4, %2, %6 : vector<376x8xi1>, vector<376x8xf32>
    %c0_5 = arith.constant 0 : index
    %c0_6 = arith.constant 0 : index
    %8 = vector.load %arg6[%c0_5, %c0_6] : memref<376x8xf32, #tpu.memory_space<vmem>>, vector<376x8xf32>
    tpu.vector_store %arg6[%c0_5, %c0_6], %7 {strides = array<i32>} : memref<376x8xf32, #tpu.memory_space<vmem>>, vector<376x8xf32>,
    %cst_7 = arith.constant 0.000000e+00 : f32
    %9 = vector.broadcast %cst_7 : f32 to vector<328x16xf32>
    %c5 = arith.constant 5 : index
    %c0_8 = arith.constant 0 : index
    %10 = vector.load %arg6[%c5, %c0_8] : memref<376x8xf32, #tpu.memory_space<vmem>>, vector<328x8xf32>
    %11 = arith.truncf %10 : vector<328x8xf32> to vector<328x8xbf16>
    %c0_9 = arith.constant 0 : index
    %c0_10 = arith.constant 0 : index
    %c0_11 = arith.constant 0 : index
    %12 = vector.load %arg3[%c0_9, %c0_10, %c0_11] : memref<9x8x16xbf16, #tpu.memory_space<vmem>>, vector<1x8x16xbf16>
    %13 = vector.shape_cast %12 : vector<1x8x16xbf16> to vector<8x16xbf16>
    %cst_12 = arith.constant dense<0.000000e+00> : vector<328x16xf32>
    %14 = tpu.matmul %11, %13, %cst_12 {dimension_numbers = #tpu.dot_dimension_numbers<[1], [0], [0], [1], [0, 0, 1, 1], [], []>} : vector<328x8xbf16>, vector<8x16xbf16>, vector<328x16xf32> -> vector<328x16xf32>
    %15 = arith.addf %9, %14 : vector<328x16xf32>
    %c6 = arith.constant 6 : index
    %c0_13 = arith.constant 0 : index
    %16 = vector.load %arg6[%c6, %c0_13] : memref<376x8xf32, #tpu.memory_space<vmem>>, vector<328x8xf32>
    %17 = arith.truncf %16 : vector<328x8xf32> to vector<328x8xbf16>
    %c1 = arith.constant 1 : index
    %c0_14 = arith.constant 0 : index
    %c0_15 = arith.constant 0 : index
    %18 = vector.load %arg3[%c1, %c0_14, %c0_15] : memref<9x8x16xbf16, #tpu.memory_space<vmem>>, vector<1x8x16xbf16>
    %19 = vector.shape_cast %18 : vector<1x8x16xbf16> to vector<8x16xbf16>
    %cst_16 = arith.constant dense<0.000000e+00> : vector<328x16xf32>
    %20 = tpu.matmul %17, %19, %cst_16 {dimension_numbers = #tpu.dot_dimension_numbers<[1], [0], [0], [1], [0, 0, 1, 1], [], []>} : vector<328x8xbf16>, vector<8x16xbf16>, vector<328x16xf32> -> vector<328x16xf32>
    %21 = arith.addf %15, %20 : vector<328x16xf32>
    %c7 = arith.constant 7 : index
    %c0_17 = arith.constant 0 : index
    %22 = vector.load %arg6[%c7, %c0_17] : memref<376x8xf32, #tpu.memory_space<vmem>>, vector<328x8xf32>
    %23 = arith.truncf %22 : vector<328x8xf32> to vector<328x8xbf16>
    %c2 = arith.constant 2 : index
    %c0_18 = arith.constant 0 : index
    %c0_19 = arith.constant 0 : index
    %24 = vector.load %arg3[%c2, %c0_18, %c0_19] : memref<9x8x16xbf16, #tpu.memory_space<vmem>>, vector<1x8x16xbf16>
    %25 = vector.shape_cast %24 : vector<1x8x16xbf16> to vector<8x16xbf16>
    %cst_20 = arith.constant dense<0.000000e+00> : vector<328x16xf32>
    %26 = tpu.matmul %23, %25, %cst_20 {dimension_numbers = #tpu.dot_dimension_numbers<[1], [0], [0], [1], [0, 0, 1, 1], [], []>} : vector<328x8xbf16>, vector<8x16xbf16>, vector<328x16xf32> -> vector<328x16xf32>
    %27 = arith.addf %21, %26 : vector<328x16xf32>
    %c23 = arith.constant 23 : index
    %c0_21 = arith.constant 0 : index
    %28 = vector.load %arg6[%c23, %c0_21] : memref<376x8xf32, #tpu.memory_space<vmem>>, vector<328x8xf32>
    %29 = arith.truncf %28 : vector<328x8xf32> to vector<328x8xbf16>
    %c3 = arith.constant 3 : index
    %c0_22 = arith.constant 0 : index
    %c0_23 = arith.constant 0 : index
    %30 = vector.load %arg3[%c3, %c0_22, %c0_23] : memref<9x8x16xbf16, #tpu.memory_space<vmem>>, vector<1x8x16xbf16>
    %31 = vector.shape_cast %30 : vector<1x8x16xbf16> to vector<8x16xbf16>
    %cst_24 = arith.constant dense<0.000000e+00> : vector<328x16xf32>
    %32 = tpu.matmul %29, %31, %cst_24 {dimension_numbers = #tpu.dot_dimension_numbers<[1], [0], [0], [1], [0, 0, 1, 1], [], []>} : vector<328x8xbf16>, vector<8x16xbf16>, vector<328x16xf32> -> vector<328x16xf32>
    %33 = arith.addf %27, %32 : vector<328x16xf32>
    %c24 = arith.constant 24 : index
    %c0_25 = arith.constant 0 : index
    %34 = vector.load %arg6[%c24, %c0_25] : memref<376x8xf32, #tpu.memory_space<vmem>>, vector<328x8xf32>
    %35 = arith.truncf %34 : vector<328x8xf32> to vector<328x8xbf16>
    %c4 = arith.constant 4 : index
    %c0_26 = arith.constant 0 : index
    %c0_27 = arith.constant 0 : index
    %36 = vector.load %arg3[%c4, %c0_26, %c0_27] : memref<9x8x16xbf16, #tpu.memory_space<vmem>>, vector<1x8x16xbf16>
    %37 = vector.shape_cast %36 : vector<1x8x16xbf16> to vector<8x16xbf16>
    %cst_28 = arith.constant dense<0.000000e+00> : vector<328x16xf32>
    %38 = tpu.matmul %35, %37, %cst_28 {dimension_numbers = #tpu.dot_dimension_numbers<[1], [0], [0], [1], [0, 0, 1, 1], [], []>} : vector<328x8xbf16>, vector<8x16xbf16>, vector<328x16xf32> -> vector<328x16xf32>
    %39 = arith.addf %33, %38 : vector<328x16xf32>
    %c25 = arith.constant 25 : index
    %c0_29 = arith.constant 0 : index
    %40 = vector.load %arg6[%c25, %c0_29] : memref<376x8xf32, #tpu.memory_space<vmem>>, vector<328x8xf32>
    %41 = arith.truncf %40 : vector<328x8xf32> to vector<328x8xbf16>
    %c5_30 = arith.constant 5 : index
    %c0_31 = arith.constant 0 : index
    %c0_32 = arith.constant 0 : index
    %42 = vector.load %arg3[%c5_30, %c0_31, %c0_32] : memref<9x8x16xbf16, #tpu.memory_space<vmem>>, vector<1x8x16xbf16>
    %43 = vector.shape_cast %42 : vector<1x8x16xbf16> to vector<8x16xbf16>
    %cst_33 = arith.constant dense<0.000000e+00> : vector<328x16xf32>
    %44 = tpu.matmul %41, %43, %cst_33 {dimension_numbers = #tpu.dot_dimension_numbers<[1], [0], [0], [1], [0, 0, 1, 1], [], []>} : vector<328x8xbf16>, vector<8x16xbf16>, vector<328x16xf32> -> vector<328x16xf32>
    %45 = arith.addf %39, %44 : vector<328x16xf32>
    %c41 = arith.constant 41 : index
    %c0_34 = arith.constant 0 : index
    %46 = vector.load %arg6[%c41, %c0_34] : memref<376x8xf32, #tpu.memory_space<vmem>>, vector<328x8xf32>
    %47 = arith.truncf %46 : vector<328x8xf32> to vector<328x8xbf16>
    %c6_35 = arith.constant 6 : index
    %c0_36 = arith.constant 0 : index
    %c0_37 = arith.constant 0 : index
    %48 = vector.load %arg3[%c6_35, %c0_36, %c0_37] : memref<9x8x16xbf16, #tpu.memory_space<vmem>>, vector<1x8x16xbf16>
    %49 = vector.shape_cast %48 : vector<1x8x16xbf16> to vector<8x16xbf16>
    %cst_38 = arith.constant dense<0.000000e+00> : vector<328x16xf32>
    %50 = tpu.matmul %47, %49, %cst_38 {dimension_numbers = #tpu.dot_dimension_numbers<[1], [0], [0], [1], [0, 0, 1, 1], [], []>} : vector<328x8xbf16>, vector<8x16xbf16>, vector<328x16xf32> -> vector<328x16xf32>
    %51 = arith.addf %45, %50 : vector<328x16xf32>
    %c42 = arith.constant 42 : index
    %c0_39 = arith.constant 0 : index
    %52 = vector.load %arg6[%c42, %c0_39] : memref<376x8xf32, #tpu.memory_space<vmem>>, vector<328x8xf32>
    %53 = arith.truncf %52 : vector<328x8xf32> to vector<328x8xbf16>
    %c7_40 = arith.constant 7 : index
    %c0_41 = arith.constant 0 : index
    %c0_42 = arith.constant 0 : index
    %54 = vector.load %arg3[%c7_40, %c0_41, %c0_42] : memref<9x8x16xbf16, #tpu.memory_space<vmem>>, vector<1x8x16xbf16>
    %55 = vector.shape_cast %54 : vector<1x8x16xbf16> to vector<8x16xbf16>
    %cst_43 = arith.constant dense<0.000000e+00> : vector<328x16xf32>
    %56 = tpu.matmul %53, %55, %cst_43 {dimension_numbers = #tpu.dot_dimension_numbers<[1], [0], [0], [1], [0, 0, 1, 1], [], []>} : vector<328x8xbf16>, vector<8x16xbf16>, vector<328x16xf32> -> vector<328x16xf32>
    %57 = arith.addf %51, %56 : vector<328x16xf32>
    %c43 = arith.constant 43 : index
    %c0_44 = arith.constant 0 : index
    %58 = vector.load %arg6[%c43, %c0_44] : memref<376x8xf32, #tpu.memory_space<vmem>>, vector<328x8xf32>
    %59 = arith.truncf %58 : vector<328x8xf32> to vector<328x8xbf16>
    %c8 = arith.constant 8 : index
    %c0_45 = arith.constant 0 : index
    %c0_46 = arith.constant 0 : index
    %60 = vector.load %arg3[%c8, %c0_45, %c0_46] : memref<9x8x16xbf16, #tpu.memory_space<vmem>>, vector<1x8x16xbf16>
    %61 = vector.shape_cast %60 : vector<1x8x16xbf16> to vector<8x16xbf16>
    %cst_47 = arith.constant dense<0.000000e+00> : vector<328x16xf32>
    %62 = tpu.matmul %59, %61, %cst_47 {dimension_numbers = #tpu.dot_dimension_numbers<[1], [0], [0], [1], [0, 0, 1, 1], [], []>} : vector<328x8xbf16>, vector<8x16xbf16>, vector<328x16xf32> -> vector<328x16xf32>
    %63 = arith.addf %57, %62 : vector<328x16xf32>
    %c0_48 = arith.constant 0 : index
    %c0_49 = arith.constant 0 : index
    %64 = vector.load %arg4[%c0_48, %c0_49] : memref<1x16xf32, #tpu.memory_space<vmem>>, vector<1x16xf32>
    %65 = vector.broadcast %64 : vector<1x16xf32> to vector<328x16xf32>
    %66 = arith.addf %63, %65 : vector<328x16xf32>
    %cst_50 = arith.constant 0.000000e+00 : f32
    %67 = vector.broadcast %cst_50 : f32 to vector<328x16xf32>
    %68 = arith.cmpf oge, %66, %67 : vector<328x16xf32>
    %cst_51 = arith.constant 2.000000e-01 : f32
    %69 = vector.broadcast %cst_51 : f32 to vector<328x16xf32>
    %70 = arith.mulf %66, %69 : vector<328x16xf32>
    %71 = arith.select %68, %66, %70 : vector<328x16xi1>, vector<328x16xf32>
    %c0_52 = arith.constant 0 : index
    %c0_53 = arith.constant 0 : index
    %72 = vector.load %arg5[%c0_52, %c0_53] : memref<328x16xf32, #tpu.memory_space<vmem>>, vector<328x16xf32>
    tpu.vector_store %arg5[%c0_52, %c0_53], %71 {strides = array<i32>} : memref<328x16xf32, #tpu.memory_space<vmem>>, vector<328x16xf32>,
    return
  }
  func.func @transform_0(%arg0: i32) -> (i32, i32) {
    %c0_i32 = arith.constant 0 : i32
    %c0_i32_0 = arith.constant 0 : i32
    return %arg0, %c0_i32 : i32, i32
  }
  func.func @transform_1(%arg0: i32) -> (i32, i32) {
    %c0_i32 = arith.constant 0 : i32
    %c0_i32_0 = arith.constant 0 : i32
    %c0_i32_1 = arith.constant 0 : i32
    return %c0_i32, %c0_i32_0 : i32, i32
  }
  func.func @transform_2(%arg0: i32) -> (i32, i32, i32) {
    %c0_i32 = arith.constant 0 : i32
    %c0_i32_0 = arith.constant 0 : i32
    %c0_i32_1 = arith.constant 0 : i32
    %c0_i32_2 = arith.constant 0 : i32
    return %c0_i32, %c0_i32_0, %c0_i32_1 : i32, i32, i32
  }
  func.func @transform_3(%arg0: i32) -> (i32, i32) {
    %c0_i32 = arith.constant 0 : i32
    %c0_i32_0 = arith.constant 0 : i32
    %c0_i32_1 = arith.constant 0 : i32
    return %c0_i32, %c0_i32_0 : i32, i32
  }
  func.func @transform_4(%arg0: i32) -> (i32, i32) {
    %c0_i32 = arith.constant 0 : i32
    %c0_i32_0 = arith.constant 0 : i32
    return %arg0, %c0_i32 : i32, i32
  }
}

</mosaic_0001>

<bundles_post_ra>
// kernel: tpu_custom_call.1
= control target key start
LH: loop header
LB: loop body
LE: loop exit
PB: predicated region body
PF: predicated region fallthrough
CT: control target
= control target key end

     0   :  { %s5762_s15 = smov 0   ;;  %s7743_s0 = inlined_call_operand.vmem [shape: bf16[752,5], index: 0, kind: input, shape index: {}]   ;;  %s7744_s1 = inlined_call_operand.vmem [shape: bf16[5,8], index: 1, kind: input, shape index: {}]   ;;  %s7745_s2 = inlined_call_operand.vmem [shape: bf16[9,8,16], index: 2, kind: input, shape index: {}]   ;;  %s7746_s3 = inlined_call_operand.vmem [shape: f32[1,16], index: 3, kind: input, shape index: {}]   ;;  %s7747_s4 = inlined_call_operand.vmem [shape: f32[656,16], index: 4, kind: output, shape index: {}]  }
   0x1 LB: > { %s4387_s16 = sadd.s32 4294967295, %s5732_s15   ;;  %p4391_p0 = scmp.ge.s32.totalorder %s5732_s15, 1  ;;  %s5732_s15 = sphi %s5762_s15, %s14_s15  }
   0x2   : > { %p163_p1 = scmp.lt.s32.totalorder %s5732_s15, 3 }
   0x4   : > { %p164_p2 = pnand %p4391_p0, %p163_p1 }
   0x6   : > { %167 = sbr.rel (%p164_p2) target bundleno = 1286 (0x506), region = 36 }
   0xd   : > { %v249_v0 = vld [vmem:[%s7744_s1] sm:$0x7]  ;;  %vm441_vm0 = vcmask 1041408   ;;  %vm442_vm1 = vcmask 1042432   ;;  %s189_s19 = smul.u32 47, %s4387_s16  ;;  %v5734_v1 = vmov 65535  }
   0xe   : > { %v443_v2 = vsel %vm441_vm0, 4294967295, %v5734_v1  ;;  %vm368_vm2 = vcmask 39936   ;;  %v4442_v29 = vld [vmem:[%s7745_s2 + $0x4] sm:$0xf]  ;;  %vm1051_vm3 = vcmask 1043456   ;;  %v7748_v30 = vmov 0.0  }
   0xf   : > { %v444_v3 = vsel %vm442_vm1, %v443_v2, 0  ;;  %p190_p3 = scmp.lt.s32.totalorder %s189_s19, 93  ;;  %v1053_v31 = vsel %vm1051_vm3, %v4442_v29, 0  ;;  %5689 = vmatprep.subr.bf16.mxu1 %v7748_v30  ;;  %vm5736_vm4 = vmmov 0   ;;  %vm813_vm6 = vcmask 64512   ;;  %s195_s18 = smul.u32 41, %s4387_s16 }
  0x10   : > { %v446_v4 = vand.u32 %v444_v3, %v249_v0  ;;  %5690 = vmatpush3.bf16.msra.mxu1 %v1053_v31  ;;  %4933 = vmatprep.mubr.msk.bf16.mxu1 %vm5736_vm4, %v7748_v30  ;;  %v923_v54 = vld [vmem:[%s7745_s2] sm:$0xf] }
  0x11   : > { %s7770_s19 = smov (!%p190_p3, %s189_s19), 93  ;;  %5087 = vmatprep.subr.bf16.mxu1 %v7748_v30  ;;  %v1319_v60 = vsel %vm1051_vm3, %v923_v54, 0  ;;  %p196_p4 = scmp.lt.s32.totalorder %s195_s18, 81 }
  0x12   : > { %4865 = vmatprep.subr.bf16.mxu0 %v446_v4  ;;  %s4392_s20 = sshll.u32 %s7770_s19, 2 }
  0x13   : > { %4866 = vmatpush3.bf16.msra.mxu0 %v446_v4  ;;  %s5778_s23 = scalar_lea.vmem %s7743_s0, %s4392_s20  ;;  %s7772_s18 = smov (!%p196_p4, %s195_s18), 81 }
  0x14   : > { %v5702_v5 = vld [vmem:[%s5778_s23] sm:$0xff]   ;;  %v5703_v6 = vld [vmem:[%s5778_s23 + $0x8] sm:$0xff]   ;;  %v5704_v7 = vld [vmem:[%s5778_s23 + $0x10] sm:$0xff]   ;;  %4915 = vmatprep.subr.bf16.mxu0 %v7748_v30  ;;  %s4393_s20 = sshll.u32 %s7772_s18, 3 }
  0x15   : > { %4867 = vmatprep.mubr.msk.bf16.mxu0 %vm368_vm2, %v5702_v5  ;;  %v5705_v8 = vld [vmem:[%s5778_s23 + $0x18] sm:$0xff]   ;;  %v5706_v9 = vld [vmem:[%s5778_s23 + $0x20] sm:$0xff]   ;;  %v5707_v10 = vld [vmem:[%s5778_s23 + $0x28] sm:$0xff]  }
  0x16   : > { %4868 = vmatmul.mubr.msk.bf16.vlgmr.msra.gmra.mrb[0].mxu0 %vm368_vm2, %v5703_v6  ;;  %v5708_v11 = vld [vmem:[%s5778_s23 + $0x30] sm:$0xff]   ;;  %v5709_v12 = vld [vmem:[%s5778_s23 + $0x38] sm:$0xff]   ;;  %v5710_v13 = vld [vmem:[%s5778_s23 + $0x40] sm:$0xff]  }
  0x17   : > { %4871 = vmatprep.mubr.msk.bf16.mxu0 %vm368_vm2, %v5704_v7  ;;  %v5711_v14 = vld [vmem:[%s5778_s23 + $0x48] sm:$0xff]   ;;  %v5712_v15 = vld [vmem:[%s5778_s23 + $0x50] sm:$0xff]   ;;  %v5713_v16 = vld [vmem:[%s5778_s23 + $0x58] sm:$0xff]   ;;  %4916 = vmatpush3.bf16.msra.mxu0 %v1053_v31 }
  0x18   : > { %v5714_v17 = vld [vmem:[%s5778_s23 + $0x60] sm:$0xff]   ;;  %v5715_v18 = vld [vmem:[%s5778_s23 + $0x68] sm:$0xff]   ;;  %v5716_v19 = vld [vmem:[%s5778_s23 + $0x70] sm:$0xff]   ;;  %5001 = vmatprep.subr.bf16.mxu0 %v7748_v30 }
  0x19   : > { %v5717_v20 = vld [vmem:[%s5778_s23 + $0x78] sm:$0xff]   ;;  %v5718_v21 = vld [vmem:[%s5778_s23 + $0x80] sm:$0xff]   ;;  %v5719_v22 = vld [vmem:[%s5778_s23 + $0x88] sm:$0xff]  }
  0x1a   : > { %v5720_v23 = vld [vmem:[%s5778_s23 + $0x90] sm:$0xff]   ;;  %v5721_v24 = vld [vmem:[%s5778_s23 + $0x98] sm:$0xff]   ;;  %v5722_v25 = vld [vmem:[%s5778_s23 + $0xa0] sm:$0xff]  }
  0x1b   : > { %v5723_v26 = vld [vmem:[%s5778_s23 + $0xa8] sm:$0xff]   ;;  %v5724_v27 = vld [vmem:[%s5778_s23 + $0xb0] sm:$0xff]   ;;  %v5725_v28 = vld [vmem:[%s5778_s23 + $0xb8] ss:$0 sps:$4 sm:$0xff]   ;;  %s7550_s23 = scalar_lea.vmem %s7747_s4, %s4393_s20 }
  0x1e   : > { %4872 = vmatmul.mubr.msk.bf16.gmra.mrb[4].mxu0 %vm368_vm2, %v5705_v8 }
  0x1f   : > { %4875 = vmatprep.mubr.msk.bf16.mxu0 %vm368_vm2, %v5706_v9 }
  0x26   : > { %4876 = vmatmul.mubr.msk.bf16.gmra.mrb[8].mxu0 %vm368_vm2, %v5707_v10 }
  0x27   : > { %4879 = vmatprep.mubr.msk.bf16.mxu0 %vm368_vm2, %v5708_v11 }
  0x2e   : > { %4880 = vmatmul.mubr.msk.bf16.gmra.mrb[12].mxu0 %vm368_vm2, %v5709_v12 }
  0x2f   : > { %4883 = vmatprep.mubr.msk.bf16.mxu0 %vm368_vm2, %v5710_v13 }
  0x36   : > { %4884 = vmatmul.mubr.msk.bf16.gmra.mrb[16].mxu0 %vm368_vm2, %v5711_v14 }
  0x37   : > { %4887 = vmatprep.mubr.msk.bf16.mxu0 %vm368_vm2, %v5712_v15 }
  0x3e   : > { %4888 = vmatmul.mubr.msk.bf16.gmra.mrb[20].mxu0 %vm368_vm2, %v5713_v16 }
  0x3f   : > { %4891 = vmatprep.mubr.msk.bf16.mxu0 %vm368_vm2, %v5714_v17 }
  0x46   : > { %4892 = vmatmul.mubr.msk.bf16.gmra.mrb[24].mxu0 %vm368_vm2, %v5715_v18 }
  0x47   : > { %4895 = vmatprep.mubr.msk.bf16.mxu0 %vm368_vm2, %v5716_v19 }
  0x4e   : > { %4896 = vmatmul.mubr.msk.bf16.gmra.mrb[28].mxu0 %vm368_vm2, %v5717_v20  ;;  %v4485_v20 = vld [vmem:[%s7745_s2 + $0x8] sm:$0xf] }
  0x4f   : > { %4899 = vmatprep.mubr.msk.bf16.mxu0 %vm368_vm2, %v5718_v21 }
  0x56   : > { %4900 = vmatmul.mubr.msk.bf16.gmra.mrb[32].mxu0 %vm368_vm2, %v5719_v22 }
  0x57   : > { %4903 = vmatprep.mubr.msk.bf16.mxu0 %vm368_vm2, %v5720_v23 }
  0x5e   : > { %4904 = vmatmul.mubr.msk.bf16.gmra.mrb[36].mxu0 %vm368_vm2, %v5721_v24 }
  0x5f   : > { %4907 = vmatprep.mubr.msk.bf16.mxu0 %vm368_vm2, %v5722_v25 }
  0x66   : > { %4908 = vmatmul.mubr.msk.bf16.gmra.mrb[40].mxu0 %vm368_vm2, %v5723_v26 }
  0x67   : > { %4911 = vmatprep.mubr.msk.bf16.mxu0 %vm368_vm2, %v5724_v27 }
  0x6e   : > { %4912 = vmatmul.mubr.msk.bf16.gmra.mrb[44].mxu0 %vm368_vm2, %v5725_v28 }
  0x6f   : > { %4917 = vmatprep.mubr.msk.bf16.mxu0 %vm5736_vm4, %v7748_v30 }
  0xe9   : > { %v4869_v32 = vpop.f32.mrb[0].mxu0 }
  0xea   : > { %vm674_vm5 = vcmp.ge.f32.partialorder %v4869_v32, 0.0  ;;  %v721_v33 = vmul.f32 0.2, %v4869_v32  ;;  %v482_v34 = vpop.f32.mrb[1].mxu0 }
  0xeb   : > { %vm672_vm7 = vcmp.ge.f32.partialorder %v482_v34, 0.0  ;;  %v719_v35 = vmul.f32 0.2, %v482_v34  ;;  %v4870_v36 = vpop.f32.mrb[2].mxu0 }
  0xec   : > { %v768_v37 = vsel %vm674_vm5, %v4869_v32, %v721_v33  ;;  %vm675_vm8 = vcmp.ge.f32.partialorder %v4870_v36, 0.0  ;;  %v722_v38 = vmul.f32 0.2, %v4870_v36  ;;  %v485_v39 = vpop.f32.mrb[3].mxu0  ;;  %v1649_v32 = vsel %vm1051_vm3, %v4485_v20, 0 }
  0xed   : > { %816 = vst.msk [vmem:[#allocation2 + $0x10] sm:$0xff] %vm813_vm6, %v768_v37  ;;  %v766_v40 = vsel %vm672_vm7, %v482_v34, %v719_v35  ;;  %vm673_vm9 = vcmp.ge.f32.partialorder %v485_v39, 0.0  ;;  %v720_v41 = vmul.f32 0.2, %v485_v39 }
  0xee   : > { %814 = vst.msk [vmem:[#allocation2] sm:$0xff] %vm813_vm6, %v766_v40  ;;  %v769_v42 = vsel %vm675_vm8, %v4870_v36, %v722_v38 }
  0xef   : > { %817 = vst.msk [vmem:[#allocation2 + $0x18] sm:$0xff] %vm813_vm6, %v769_v42  ;;  %v767_v43 = vsel %vm673_vm9, %v485_v39, %v720_v41 }
  0xf0   : > { %815 = vst.msk [vmem:[#allocation2 + $0x8] sm:$0xff] %vm813_vm6, %v767_v43 }
  0xf1   : > { %v4873_v44 = vpop.f32.mrb[4].mxu0 }
  0xf2   : > { %vm678_vm10 = vcmp.ge.f32.partialorder %v4873_v44, 0.0  ;;  %v725_v45 = vmul.f32 0.2, %v4873_v44  ;;  %v498_v46 = vpop.f32.mrb[5].mxu0 }
  0xf3   : > { %vm676_vm11 = vcmp.ge.f32.partialorder %v498_v46, 0.0  ;;  %v723_v47 = vmul.f32 0.2, %v498_v46  ;;  %v4874_v48 = vpop.f32.mrb[6].mxu0 }
  0xf4   : > { %v772_v49 = vsel %vm678_vm10, %v4873_v44, %v725_v45  ;;  %vm679_vm12 = vcmp.ge.f32.partialorder %v4874_v48, 0.0  ;;  %v726_v50 = vmul.f32 0.2, %v4874_v48  ;;  %v501_v51 = vpop.f32.mrb[7].mxu0 }
  0xf5   : > { %820 = vst.msk [vmem:[#allocation2 + $0x30] sm:$0xff] %vm813_vm6, %v772_v49  ;;  %v770_v52 = vsel %vm676_vm11, %v498_v46, %v723_v47  ;;  %vm677_vm13 = vcmp.ge.f32.partialorder %v501_v51, 0.0  ;;  %v724_v53 = vmul.f32 0.2, %v501_v51 }
  0xf6   : > { %818 = vst.msk [vmem:[#allocation2 + $0x20] sm:$0xff] %vm813_vm6, %v770_v52  ;;  %v773_v55 = vsel %vm679_vm12, %v4874_v48, %v726_v50  ;;  %v926_v10 = vld [vmem:[#allocation2 + $0x16] sm:$0xff] }
  0xf7   : > { %821 = vst.msk [vmem:[#allocation2 + $0x38] sm:$0xff] %vm813_vm6, %v773_v55  ;;  %v771_v56 = vsel %vm677_vm13, %v501_v51, %v724_v53  ;;  %v924_v57 = vld [vmem:[#allocation2 + $0x6] sm:$0xff]  ;;  %v925_v58 = vld [vmem:[#allocation2 + $0xe] sm:$0xff] }
  0xf8   : > { %819 = vst.msk [vmem:[#allocation2 + $0x28] sm:$0xff] %vm813_vm6, %v771_v56  ;;  %v965_v59 = vpack.c.bf16 %v925_v58, %v924_v57 }
  0xf9   : > { %v4877_v61 = vpop.f32.mrb[8].mxu0 }
  0xfa   : > { %vm682_vm14 = vcmp.ge.f32.partialorder %v4877_v61, 0.0  ;;  %v729_v62 = vmul.f32 0.2, %v4877_v61  ;;  %v514_v63 = vpop.f32.mrb[9].mxu0  ;;  %4918 = vmatmul.mubr.msk.bf16.vlgmr.msra.gmra.mrb[48].mxu0 %vm813_vm6, %v965_v59  ;;  %v861_v59 = vld [vmem:[#allocation2 + $0x5] sm:$0xff] }
  0xfb   : > { %vm680_vm15 = vcmp.ge.f32.partialorder %v514_v63, 0.0  ;;  %v727_v0 = vmul.f32 0.2, %v514_v63  ;;  %v4878_v1 = vpop.f32.mrb[10].mxu0  ;;  %4921 = vmatprep.mubr.msk.bf16.mxu0 %vm5736_vm4, %v7748_v30  ;;  %5002 = vmatpush3.bf16.msra.mxu0 %v1319_v60 }
  0xfc   : > { %v776_v2 = vsel %vm682_vm14, %v4877_v61, %v729_v62  ;;  %vm683_vm0 = vcmp.ge.f32.partialorder %v4878_v1, 0.0  ;;  %v730_v3 = vmul.f32 0.2, %v4878_v1  ;;  %v517_v4 = vpop.f32.mrb[11].mxu0  ;;  %5173 = vmatprep.subr.bf16.mxu0 %v7748_v30 }
  0xfd   : > { %824 = vst.msk [vmem:[#allocation2 + $0x50] sm:$0xff] %vm813_vm6, %v776_v2  ;;  %v774_v5 = vsel %vm680_vm15, %v514_v63, %v727_v0  ;;  %vm681_vm1 = vcmp.ge.f32.partialorder %v517_v4, 0.0  ;;  %v728_v6 = vmul.f32 0.2, %v517_v4  ;;  %v927_v7 = vld [vmem:[#allocation2 + $0x1e] sm:$0xff]  ;;  %v862_v0 = vld [vmem:[#allocation2 + $0xd] sm:$0xff] }
  0xfe   : > { %822 = vst.msk [vmem:[#allocation2 + $0x40] sm:$0xff] %vm813_vm6, %v774_v5  ;;  %v777_v8 = vsel %vm683_vm0, %v4878_v1, %v730_v3  ;;  %v966_v11 = vpack.c.bf16 %v927_v7, %v926_v10  ;;  %v930_v47 = vld [vmem:[#allocation2 + $0x36] sm:$0xff]  ;;  %v4507_v2 = vld [vmem:[%s7745_s2 + $0xc] sm:$0xf]  ;;  %v902_v5 = vpack.c.bf16 %v862_v0, %v861_v59 }
  0xff   : > { %825 = vst.msk [vmem:[#allocation2 + $0x58] sm:$0xff] %vm813_vm6, %v777_v8  ;;  %v775_v9 = vsel %vm681_vm1, %v517_v4, %v728_v6  ;;  %v928_v23 = vld [vmem:[#allocation2 + $0x26] sm:$0xff]  ;;  %v929_v24 = vld [vmem:[#allocation2 + $0x2e] sm:$0xff]  ;;  %v2020_v7 = vsel %vm1051_vm3, %v4507_v2, 0 }
 0x100   : > { %823 = vst.msk [vmem:[#allocation2 + $0x48] sm:$0xff] %vm813_vm6, %v775_v9  ;;  %v967_v29 = vpack.c.bf16 %v929_v24, %v928_v23 }
 0x101   : > { %v4881_v12 = vpop.f32.mrb[12].mxu0 }
 0x102   : > { %vm686_vm2 = vcmp.ge.f32.partialorder %v4881_v12, 0.0  ;;  %v733_v13 = vmul.f32 0.2, %v4881_v12  ;;  %v530_v14 = vpop.f32.mrb[13].mxu0  ;;  %4922 = vmatmul.mubr.msk.bf16.gmra.mrb[52].mxu0 %vm813_vm6, %v966_v11 }
 0x103   : > { %vm684_vm5 = vcmp.ge.f32.partialorder %v530_v14, 0.0  ;;  %v731_v15 = vmul.f32 0.2, %v530_v14  ;;  %v4882_v16 = vpop.f32.mrb[14].mxu0  ;;  %4925 = vmatprep.mubr.msk.bf16.mxu0 %vm5736_vm4, %v7748_v30 }
 0x104   : > { %v780_v17 = vsel %vm686_vm2, %v4881_v12, %v733_v13  ;;  %vm687_vm7 = vcmp.ge.f32.partialorder %v4882_v16, 0.0  ;;  %v734_v18 = vmul.f32 0.2, %v4882_v16  ;;  %v533_v19 = vpop.f32.mrb[15].mxu0 }
 0x105   : > { %828 = vst.msk [vmem:[#allocation2 + $0x70] sm:$0xff] %vm813_vm6, %v780_v17  ;;  %v778_v21 = vsel %vm684_vm5, %v530_v14, %v731_v15  ;;  %vm685_vm8 = vcmp.ge.f32.partialorder %v533_v19, 0.0  ;;  %v732_v22 = vmul.f32 0.2, %v533_v19  ;;  %v931_v43 = vld [vmem:[#allocation2 + $0x3e] sm:$0xff] }
 0x106   : > { %826 = vst.msk [vmem:[#allocation2 + $0x60] sm:$0xff] %vm813_vm6, %v778_v21  ;;  %v781_v25 = vsel %vm687_vm7, %v4882_v16, %v734_v18  ;;  %v934_v48 = vld [vmem:[#allocation2 + $0x56] sm:$0xff]  ;;  %v968_v49 = vpack.c.bf16 %v931_v43, %v930_v47 }
 0x107   : > { %829 = vst.msk [vmem:[#allocation2 + $0x78] sm:$0xff] %vm813_vm6, %v781_v25  ;;  %v779_v26 = vsel %vm685_vm8, %v533_v19, %v732_v22  ;;  %v932_v27 = vld [vmem:[#allocation2 + $0x46] sm:$0xff]  ;;  %v933_v28 = vld [vmem:[#allocation2 + $0x4e] sm:$0xff]  ;;  %v864_v18 = vld [vmem:[#allocation2 + $0x1d] sm:$0xff] }
 0x108   : > { %827 = vst.msk [vmem:[#allocation2 + $0x68] sm:$0xff] %vm813_vm6, %v779_v26  ;;  %v969_v31 = vpack.c.bf16 %v933_v28, %v932_v27  ;;  %v863_v22 = vld [vmem:[#allocation2 + $0x15] sm:$0xff] }
 0x109   : > { %v4885_v33 = vpop.f32.mrb[16].mxu0  ;;  %v903_v24 = vpack.c.bf16 %v864_v18, %v863_v22 }
 0x10a   : > { %vm690_vm9 = vcmp.ge.f32.partialorder %v4885_v33, 0.0  ;;  %v737_v34 = vmul.f32 0.2, %v4885_v33  ;;  %v546_v35 = vpop.f32.mrb[17].mxu0  ;;  %4926 = vmatmul.mubr.msk.bf16.gmra.mrb[56].mxu0 %vm813_vm6, %v967_v29  ;;  %4934 = vmatmul.mubr.msk.bf16.vlgmr.msra.gmra.mrb[0].mxu1 %vm813_vm6, %v969_v31  ;;  %v865_v31 = vld [vmem:[#allocation2 + $0x25] sm:$0xff] }
 0x10b   : > { %vm688_vm10 = vcmp.ge.f32.partialorder %v546_v35, 0.0  ;;  %v735_v36 = vmul.f32 0.2, %v546_v35  ;;  %5088 = vmatpush3.bf16.msra.mxu1 %v1649_v32  ;;  %v4886_v37 = vpop.f32.mrb[18].mxu0  ;;  %4929 = vmatprep.mubr.msk.bf16.mxu0 %vm5736_vm4, %v7748_v30 }
 0x10c   : > { %v784_v38 = vsel %vm690_vm9, %v4885_v33, %v737_v34  ;;  %vm691_vm11 = vcmp.ge.f32.partialorder %v4886_v37, 0.0  ;;  %v738_v39 = vmul.f32 0.2, %v4886_v37  ;;  %v549_v40 = vpop.f32.mrb[19].mxu0  ;;  %4937 = vmatprep.mubr.msk.bf16.mxu1 %vm5736_vm4, %v7748_v30  ;;  %5259 = vmatprep.subr.bf16.mxu1 %v7748_v30 }
 0x10d   : > { %832 = vst.msk [vmem:[#allocation2 + $0x90] sm:$0xff] %vm813_vm6, %v784_v38  ;;  %v782_v41 = vsel %vm688_vm10, %v546_v35, %v735_v36  ;;  %vm689_vm12 = vcmp.ge.f32.partialorder %v549_v40, 0.0  ;;  %v736_v42 = vmul.f32 0.2, %v549_v40  ;;  %v935_v44 = vld [vmem:[#allocation2 + $0x5e] sm:$0xff] }
 0x10e   : > { %830 = vst.msk [vmem:[#allocation2 + $0x80] sm:$0xff] %vm813_vm6, %v782_v41  ;;  %v785_v45 = vsel %vm691_vm11, %v4886_v37, %v738_v39  ;;  %v970_v50 = vpack.c.bf16 %v935_v44, %v934_v48  ;;  %v938_v21 = vld [vmem:[#allocation2 + $0x76] sm:$0xff]  ;;  %v866_v37 = vld [vmem:[#allocation2 + $0x2d] sm:$0xff] }
 0x10f   : > { %833 = vst.msk [vmem:[#allocation2 + $0x98] sm:$0xff] %vm813_vm6, %v785_v45  ;;  %v783_v46 = vsel %vm689_vm12, %v549_v40, %v736_v42  ;;  %v936_v62 = vld [vmem:[#allocation2 + $0x66] sm:$0xff]  ;;  %v937_v63 = vld [vmem:[#allocation2 + $0x6e] sm:$0xff]  ;;  %v904_v43 = vpack.c.bf16 %v866_v37, %v865_v31 }
 0x110   : > { %831 = vst.msk [vmem:[#allocation2 + $0x88] sm:$0xff] %vm813_vm6, %v783_v46  ;;  %v971_v4 = vpack.c.bf16 %v937_v63, %v936_v62  ;;  %v871_v31 = vld [vmem:[#allocation2 + $0x55] sm:$0xff] }
 0x111   : > { %v4889_v51 = vpop.f32.mrb[20].mxu0 }
 0x112   : > { %vm694_vm13 = vcmp.ge.f32.partialorder %v4889_v51, 0.0  ;;  %v741_v52 = vmul.f32 0.2, %v4889_v51  ;;  %v562_v53 = vpop.f32.mrb[21].mxu0  ;;  %4930 = vmatmul.mubr.msk.bf16.gmra.mrb[60].mxu0 %vm813_vm6, %v968_v49  ;;  %4938 = vmatmul.mubr.msk.bf16.gmra.mrb[4].mxu1 %vm813_vm6, %v970_v50 }
 0x113   : > { %vm692_vm14 = vcmp.ge.f32.partialorder %v562_v53, 0.0  ;;  %v739_v54 = vmul.f32 0.2, %v562_v53  ;;  %v4890_v55 = vpop.f32.mrb[22].mxu0  ;;  %4941 = vmatprep.mubr.msk.bf16.mxu1 %vm5736_vm4, %v7748_v30  ;;  %5003 = vmatprep.mubr.msk.bf16.mxu0 %vm5736_vm4, %v7748_v30 }
 0x114   : > { %v788_v56 = vsel %vm694_vm13, %v4889_v51, %v741_v52  ;;  %vm695_vm15 = vcmp.ge.f32.partialorder %v4890_v55, 0.0  ;;  %v742_v57 = vmul.f32 0.2, %v4890_v55  ;;  %v565_v58 = vpop.f32.mrb[23].mxu0 }
 0x115   : > { %836 = vst.msk [vmem:[#allocation2 + $0xb0] sm:$0xff] %vm813_vm6, %v788_v56  ;;  %v786_v60 = vsel %vm692_vm14, %v562_v53, %v739_v54  ;;  %vm693_vm0 = vcmp.ge.f32.partialorder %v565_v58, 0.0  ;;  %v740_v61 = vmul.f32 0.2, %v565_v58  ;;  %v939_v17 = vld [vmem:[#allocation2 + $0x7e] sm:$0xff] }
 0x116   : > { %834 = vst.msk [vmem:[#allocation2 + $0xa0] sm:$0xff] %vm813_vm6, %v786_v60  ;;  %v789_v1 = vsel %vm695_vm15, %v4890_v55, %v742_v57  ;;  %v972_v23 = vpack.c.bf16 %v939_v17, %v938_v21  ;;  %v942_v52 = vld [vmem:[#allocation2 + $0x96] sm:$0xff] }
 0x117   : > { %837 = vst.msk [vmem:[#allocation2 + $0xb8] sm:$0xff] %vm813_vm6, %v789_v1  ;;  %v787_v3 = vsel %vm693_vm0, %v565_v58, %v740_v61  ;;  %v940_v35 = vld [vmem:[#allocation2 + $0x86] sm:$0xff]  ;;  %v941_v36 = vld [vmem:[#allocation2 + $0x8e] sm:$0xff]  ;;  %v868_v54 = vld [vmem:[#allocation2 + $0x3d] sm:$0xff] }
 0x118   : > { %835 = vst.msk [vmem:[#allocation2 + $0xa8] sm:$0xff] %vm813_vm6, %v787_v3  ;;  %v973_v42 = vpack.c.bf16 %v941_v36, %v940_v35  ;;  %v867_v58 = vld [vmem:[#allocation2 + $0x35] sm:$0xff]  ;;  %v869_v3 = vld [vmem:[#allocation2 + $0x45] sm:$0xff] }
 0x119   : > { %v4893_v6 = vpop.f32.mrb[24].mxu0  ;;  %v905_v61 = vpack.c.bf16 %v868_v54, %v867_v58  ;;  %v875_v54 = vld [vmem:[#allocation2 + $0x75] sm:$0xff] }
 0x11a   : > { %4942 = vmatmul.mubr.msk.bf16.gmra.mrb[8].mxu1 %vm813_vm6, %v971_v4  ;;  %5004 = vmatmul.mubr.msk.bf16.vlgmr.msra.gmra.mrb[64].mxu0 %vm813_vm6, %v902_v5  ;;  %vm698_vm1 = vcmp.ge.f32.partialorder %v4893_v6, 0.0  ;;  %v745_v8 = vmul.f32 0.2, %v4893_v6  ;;  %v578_v9 = vpop.f32.mrb[25].mxu0 }
 0x11b   : > { %vm696_vm2 = vcmp.ge.f32.partialorder %v578_v9, 0.0  ;;  %v743_v10 = vmul.f32 0.2, %v578_v9  ;;  %v4894_v11 = vpop.f32.mrb[26].mxu0  ;;  %4945 = vmatprep.mubr.msk.bf16.mxu1 %vm5736_vm4, %v7748_v30  ;;  %5007 = vmatprep.mubr.msk.bf16.mxu0 %vm5736_vm4, %v7748_v30 }
 0x11c   : > { %v792_v12 = vsel %vm698_vm1, %v4893_v6, %v745_v8  ;;  %vm699_vm5 = vcmp.ge.f32.partialorder %v4894_v11, 0.0  ;;  %v746_v13 = vmul.f32 0.2, %v4894_v11  ;;  %v581_v14 = vpop.f32.mrb[27].mxu0  ;;  %5174 = vmatpush3.bf16.msra.mxu0 %v2020_v7 }
 0x11d   : > { %840 = vst.msk [vmem:[#allocation2 + $0xd0] sm:$0xff] %vm813_vm6, %v792_v12  ;;  %v790_v15 = vsel %vm696_vm2, %v578_v9, %v743_v10  ;;  %vm697_vm7 = vcmp.ge.f32.partialorder %v581_v14, 0.0  ;;  %v744_v16 = vmul.f32 0.2, %v581_v14  ;;  %5345 = vmatprep.subr.bf16.mxu0 %v7748_v30  ;;  %v943_v53 = vld [vmem:[#allocation2 + $0x9e] sm:$0xff]  ;;  %v870_v9 = vld [vmem:[#allocation2 + $0x4d] sm:$0xff] }
 0x11e   : > { %838 = vst.msk [vmem:[#allocation2 + $0xc0] sm:$0xff] %vm813_vm6, %v790_v15  ;;  %v793_v19 = vsel %vm699_vm5, %v4894_v11, %v746_v13  ;;  %v974_v60 = vpack.c.bf16 %v943_v53, %v942_v52  ;;  %v906_v15 = vpack.c.bf16 %v870_v9, %v869_v3  ;;  %v876_v53 = vld [vmem:[#allocation2 + $0x7d] sm:$0xff] }
 0x11f   : > { %841 = vst.msk [vmem:[#allocation2 + $0xd8] sm:$0xff] %vm813_vm6, %v793_v19  ;;  %v791_v20 = vsel %vm697_vm7, %v581_v14, %v744_v16  ;;  %v944_v7 = vld [vmem:[#allocation2 + $0xa6] sm:$0xff]  ;;  %v945_v8 = vld [vmem:[#allocation2 + $0xae] sm:$0xff] }
 0x120   : > { %839 = vst.msk [vmem:[#allocation2 + $0xc8] sm:$0xff] %vm813_vm6, %v791_v20  ;;  %v975_v14 = vpack.c.bf16 %v945_v8, %v944_v7  ;;  %v882_v8 = vld [vmem:[#allocation2 + $0xad] sm:$0xff] }
 0x121   : > { %v4897_v25 = vpop.f32.mrb[28].mxu0 }
 0x122   : > { %4946 = vmatmul.mubr.msk.bf16.gmra.mrb[12].mxu1 %vm813_vm6, %v972_v23  ;;  %5008 = vmatmul.mubr.msk.bf16.gmra.mrb[68].mxu0 %vm813_vm6, %v903_v24  ;;  %vm702_vm8 = vcmp.ge.f32.partialorder %v4897_v25, 0.0  ;;  %v749_v26 = vmul.f32 0.2, %v4897_v25  ;;  %v594_v27 = vpop.f32.mrb[29].mxu0  ;;  %v946_v24 = vld [vmem:[#allocation2 + $0xb6] sm:$0xff] }
 0x123   : > { %4949 = vmatprep.mubr.msk.bf16.mxu1 %vm5736_vm4, %v7748_v30  ;;  %5011 = vmatprep.mubr.msk.bf16.mxu0 %vm5736_vm4, %v7748_v30  ;;  %vm700_vm9 = vcmp.ge.f32.partialorder %v594_v27, 0.0  ;;  %v747_v28 = vmul.f32 0.2, %v594_v27  ;;  %v4898_v29 = vpop.f32.mrb[30].mxu0 }
 0x124   : > { %v796_v32 = vsel %vm702_vm8, %v4897_v25, %v749_v26  ;;  %vm703_vm10 = vcmp.ge.f32.partialorder %v4898_v29, 0.0  ;;  %v750_v33 = vmul.f32 0.2, %v4898_v29  ;;  %v597_v34 = vpop.f32.mrb[31].mxu0  ;;  %v872_v26 = vld [vmem:[#allocation2 + $0x5d] sm:$0xff] }
 0x125   : > { %844 = vst.msk [vmem:[#allocation2 + $0xf0] sm:$0xff] %vm813_vm6, %v796_v32  ;;  %v794_v38 = vsel %vm700_vm9, %v594_v27, %v747_v28  ;;  %vm701_vm11 = vcmp.ge.f32.partialorder %v597_v34, 0.0  ;;  %v748_v39 = vmul.f32 0.2, %v597_v34  ;;  %v947_v25 = vld [vmem:[#allocation2 + $0xbe] sm:$0xff] }
 0x126   : > { %842 = vst.msk [vmem:[#allocation2 + $0xe0] sm:$0xff] %vm813_vm6, %v794_v38  ;;  %v797_v40 = vsel %vm703_vm10, %v4898_v29, %v750_v33  ;;  %v976_v33 = vpack.c.bf16 %v947_v25, %v946_v24 }
 0x127   : > { %845 = vst.msk [vmem:[#allocation2 + $0xf8] sm:$0xff] %vm813_vm6, %v797_v40  ;;  %v795_v41 = vsel %vm701_vm11, %v597_v34, %v748_v39  ;;  %v907_v34 = vpack.c.bf16 %v872_v26, %v871_v31  ;;  %v873_v40 = vld [vmem:[#allocation2 + $0x65] sm:$0xff] }
 0x128   : > { %843 = vst.msk [vmem:[#allocation2 + $0xe8] sm:$0xff] %vm813_vm6, %v795_v41 }
 0x129   : > { %v4901_v44 = vpop.f32.mrb[32].mxu0 }
 0x12a   : > { %4950 = vmatmul.mubr.msk.bf16.gmra.mrb[16].mxu1 %vm813_vm6, %v973_v42  ;;  %5012 = vmatmul.mubr.msk.bf16.gmra.mrb[72].mxu0 %vm813_vm6, %v904_v43  ;;  %vm706_vm12 = vcmp.ge.f32.partialorder %v4901_v44, 0.0  ;;  %v753_v45 = vmul.f32 0.2, %v4901_v44  ;;  %v610_v46 = vpop.f32.mrb[33].mxu0  ;;  %v948_v43 = vld [vmem:[#allocation2 + $0xc6] sm:$0xff] }
 0x12b   : > { %4953 = vmatprep.mubr.msk.bf16.mxu1 %vm5736_vm4, %v7748_v30  ;;  %5015 = vmatprep.mubr.msk.bf16.mxu0 %vm5736_vm4, %v7748_v30  ;;  %vm704_vm13 = vcmp.ge.f32.partialorder %v610_v46, 0.0  ;;  %v751_v47 = vmul.f32 0.2, %v610_v46  ;;  %v4902_v48 = vpop.f32.mrb[34].mxu0 }
 0x12c   : > { %v800_v49 = vsel %vm706_vm12, %v4901_v44, %v753_v45  ;;  %vm707_vm14 = vcmp.ge.f32.partialorder %v4902_v48, 0.0  ;;  %v754_v50 = vmul.f32 0.2, %v4902_v48  ;;  %v613_v51 = vpop.f32.mrb[35].mxu0  ;;  %v949_v44 = vld [vmem:[#allocation2 + $0xce] sm:$0xff] }
 0x12d   : > { %848 = vst.msk [vmem:[#allocation2 + $0x110] sm:$0xff] %vm813_vm6, %v800_v49  ;;  %v798_v55 = vsel %vm704_vm13, %v610_v46, %v751_v47  ;;  %vm705_vm15 = vcmp.ge.f32.partialorder %v613_v51, 0.0  ;;  %v752_v56 = vmul.f32 0.2, %v613_v51  ;;  %v874_v45 = vld [vmem:[#allocation2 + $0x6d] sm:$0xff]  ;;  %v977_v49 = vpack.c.bf16 %v949_v44, %v948_v43  ;;  %v951_v52 = vld [vmem:[#allocation2 + $0xde] sm:$0xff] }
 0x12e   : > { %846 = vst.msk [vmem:[#allocation2 + $0x100] sm:$0xff] %vm813_vm6, %v798_v55  ;;  %v801_v57 = vsel %vm707_vm14, %v4902_v48, %v754_v50  ;;  %v908_v50 = vpack.c.bf16 %v874_v45, %v873_v40  ;;  %v888_v26 = vld [vmem:[#allocation2 + $0xdd] sm:$0xff] }
 0x12f   : > { %849 = vst.msk [vmem:[#allocation2 + $0x118] sm:$0xff] %vm813_vm6, %v801_v57  ;;  %v799_v59 = vsel %vm705_vm15, %v613_v51, %v752_v56  ;;  %v950_v51 = vld [vmem:[#allocation2 + $0xd6] sm:$0xff]  ;;  %v909_v56 = vpack.c.bf16 %v876_v53, %v875_v54  ;;  %v877_v57 = vld [vmem:[#allocation2 + $0x85] sm:$0xff] }
 0x130   : > { %847 = vst.msk [vmem:[#allocation2 + $0x108] sm:$0xff] %vm813_vm6, %v799_v59  ;;  %v978_v55 = vpack.c.bf16 %v951_v52, %v950_v51  ;;  %v952_v58 = vld [vmem:[#allocation2 + $0xe6] sm:$0xff]  ;;  %v953_v59 = vld [vmem:[#allocation2 + $0xee] sm:$0xff] }
 0x131   : > { %v4905_v62 = vpop.f32.mrb[36].mxu0  ;;  %v889_v31 = vld [vmem:[#allocation2 + $0xe5] sm:$0xff]  ;;  %v1526_v52 = vld [vmem:[#allocation2 + $0x2f] sm:$0xff] }
 0x132   : > { %4954 = vmatmul.mubr.msk.bf16.gmra.mrb[20].mxu1 %vm813_vm6, %v974_v60  ;;  %5016 = vmatmul.mubr.msk.bf16.gmra.mrb[76].mxu0 %vm813_vm6, %v905_v61  ;;  %vm710_vm0 = vcmp.ge.f32.partialorder %v4905_v62, 0.0  ;;  %v757_v63 = vmul.f32 0.2, %v4905_v62  ;;  %v626_v0 = vpop.f32.mrb[37].mxu0  ;;  %v878_v60 = vld [vmem:[#allocation2 + $0x8d] sm:$0xff]  ;;  %v979_v61 = vpack.c.bf16 %v953_v59, %v952_v58  ;;  %v1524_v45 = vld [vmem:[#allocation2 + $0x1f] sm:$0xff] }
 0x133   : > { %4957 = vmatprep.mubr.msk.bf16.mxu1 %vm5736_vm4, %v7748_v30  ;;  %5019 = vmatprep.mubr.msk.bf16.mxu0 %vm5736_vm4, %v7748_v30  ;;  %vm708_vm1 = vcmp.ge.f32.partialorder %v626_v0, 0.0  ;;  %v755_v1 = vmul.f32 0.2, %v626_v0  ;;  %v4906_v2 = vpop.f32.mrb[38].mxu0  ;;  %v1527_v58 = vld [vmem:[#allocation2 + $0x37] sm:$0xff] }
 0x134   : > { %v804_v4 = vsel %vm710_vm0, %v4905_v62, %v757_v63  ;;  %vm711_vm2 = vcmp.ge.f32.partialorder %v4906_v2, 0.0  ;;  %v758_v5 = vmul.f32 0.2, %v4906_v2  ;;  %v629_v6 = vpop.f32.mrb[39].mxu0  ;;  %v910_v62 = vpack.c.bf16 %v878_v60, %v877_v57  ;;  %v879_v63 = vld [vmem:[#allocation2 + $0x95] sm:$0xff]  ;;  %v1528_v57 = vld [vmem:[#allocation2 + $0x3f] sm:$0xff] }
 0x135   : > { %852 = vst.msk [vmem:[#allocation2 + $0x130] sm:$0xff] %vm813_vm6, %v804_v4  ;;  %v802_v10 = vsel %vm708_vm1, %v626_v0, %v755_v1  ;;  %vm709_vm5 = vcmp.ge.f32.partialorder %v629_v6, 0.0  ;;  %v756_v11 = vmul.f32 0.2, %v629_v6  ;;  %v954_v0 = vld [vmem:[#allocation2 + $0xf6] sm:$0xff]  ;;  %v955_v1 = vld [vmem:[#allocation2 + $0xfe] sm:$0xff]  ;;  %v1565_v60 = vpack.c.bf16 %v1528_v57, %v1527_v58 }
 0x136   : > { %850 = vst.msk [vmem:[#allocation2 + $0x120] sm:$0xff] %vm813_vm6, %v802_v10  ;;  %v805_v12 = vsel %vm711_vm2, %v4906_v2, %v758_v5  ;;  %v880_v2 = vld [vmem:[#allocation2 + $0x9d] sm:$0xff]  ;;  %v980_v3 = vpack.c.bf16 %v955_v1, %v954_v0  ;;  %v881_v5 = vld [vmem:[#allocation2 + $0xa5] sm:$0xff]  ;;  %v1530_v0 = vld [vmem:[#allocation2 + $0x4f] sm:$0xff] }
 0x137   : > { %853 = vst.msk [vmem:[#allocation2 + $0x138] sm:$0xff] %vm813_vm6, %v805_v12  ;;  %v803_v13 = vsel %vm709_vm5, %v629_v6, %v756_v11  ;;  %v911_v4 = vpack.c.bf16 %v880_v2, %v879_v63  ;;  %v956_v6 = vld [vmem:[#allocation2 + $0x106] sm:$0xff]  ;;  %v957_v7 = vld [vmem:[#allocation2 + $0x10e] sm:$0xff]  ;;  %v912_v10 = vpack.c.bf16 %v882_v8, %v881_v5  ;;  %v958_v12 = vld [vmem:[#allocation2 + $0x116] sm:$0xff] }
 0x138   : > { %851 = vst.msk [vmem:[#allocation2 + $0x128] sm:$0xff] %vm813_vm6, %v803_v13  ;;  %v981_v9 = vpack.c.bf16 %v957_v7, %v956_v6  ;;  %v883_v11 = vld [vmem:[#allocation2 + $0xb5] sm:$0xff]  ;;  %v893_v43 = vld [vmem:[#allocation2 + $0x105] sm:$0xff]  ;;  %v894_v44 = vld [vmem:[#allocation2 + $0x10d] sm:$0xff] }
 0x139   : > { %v4909_v16 = vpop.f32.mrb[40].mxu0  ;;  %v1531_v5 = vld [vmem:[#allocation2 + $0x57] sm:$0xff]  ;;  %v1533_v8 = vld [vmem:[#allocation2 + $0x67] sm:$0xff] }
 0x13a   : > { %4958 = vmatmul.mubr.msk.bf16.gmra.mrb[24].mxu1 %vm813_vm6, %v975_v14  ;;  %5020 = vmatmul.mubr.msk.bf16.gmra.mrb[80].mxu0 %vm813_vm6, %v906_v15  ;;  %vm714_vm7 = vcmp.ge.f32.partialorder %v4909_v16, 0.0  ;;  %v761_v17 = vmul.f32 0.2, %v4909_v16  ;;  %v642_v18 = vpop.f32.mrb[41].mxu0  ;;  %v884_v14 = vld [vmem:[#allocation2 + $0xbd] sm:$0xff] }
 0x13b   : > { %4961 = vmatprep.mubr.msk.bf16.mxu1 %vm5736_vm4, %v7748_v30  ;;  %5023 = vmatprep.mubr.msk.bf16.mxu0 %vm5736_vm4, %v7748_v30  ;;  %vm712_vm8 = vcmp.ge.f32.partialorder %v642_v18, 0.0  ;;  %v759_v19 = vmul.f32 0.2, %v642_v18  ;;  %v4910_v20 = vpop.f32.mrb[42].mxu0 }
 0x13c   : > { %v808_v21 = vsel %vm714_vm7, %v4909_v16, %v761_v17  ;;  %vm715_vm9 = vcmp.ge.f32.partialorder %v4910_v20, 0.0  ;;  %v762_v22 = vmul.f32 0.2, %v4910_v20  ;;  %v645_v23 = vpop.f32.mrb[43].mxu0  ;;  %v913_v16 = vpack.c.bf16 %v884_v14, %v883_v11  ;;  %v885_v17 = vld [vmem:[#allocation2 + $0xc5] sm:$0xff]  ;;  %v1535_v14 = vld [vmem:[#allocation2 + $0x77] sm:$0xff] }
 0x13d   : > { %856 = vst.msk [vmem:[#allocation2 + $0x150] sm:$0xff] %vm813_vm6, %v808_v21  ;;  %v806_v27 = vsel %vm712_vm8, %v642_v18, %v759_v19  ;;  %vm713_vm10 = vcmp.ge.f32.partialorder %v645_v23, 0.0  ;;  %v760_v28 = vmul.f32 0.2, %v645_v23  ;;  %v959_v13 = vld [vmem:[#allocation2 + $0x11e] sm:$0xff] }
 0x13e   : > { %854 = vst.msk [vmem:[#allocation2 + $0x140] sm:$0xff] %vm813_vm6, %v806_v27  ;;  %v809_v29 = vsel %vm715_vm9, %v4910_v20, %v762_v22  ;;  %v982_v15 = vpack.c.bf16 %v959_v13, %v958_v12  ;;  %v886_v20 = vld [vmem:[#allocation2 + $0xcd] sm:$0xff]  ;;  %v962_v24 = vld [vmem:[#allocation2 + $0x136] sm:$0xff]  ;;  %v1536_v13 = vld [vmem:[#allocation2 + $0x7f] sm:$0xff] }
 0x13f   : > { %857 = vst.msk [vmem:[#allocation2 + $0x158] sm:$0xff] %vm813_vm6, %v809_v29  ;;  %v807_v32 = vsel %vm713_vm10, %v645_v23, %v760_v28  ;;  %v960_v18 = vld [vmem:[#allocation2 + $0x126] sm:$0xff]  ;;  %v961_v19 = vld [vmem:[#allocation2 + $0x12e] sm:$0xff]  ;;  %v914_v22 = vpack.c.bf16 %v886_v20, %v885_v17  ;;  %v896_v51 = vld [vmem:[#allocation2 + $0x11d] sm:$0xff] }
 0x140   : > { %855 = vst.msk [vmem:[#allocation2 + $0x148] sm:$0xff] %vm813_vm6, %v807_v32  ;;  %v983_v21 = vpack.c.bf16 %v961_v19, %v960_v18  ;;  %v887_v23 = vld [vmem:[#allocation2 + $0xd5] sm:$0xff]  ;;  %v890_v32 = vld [vmem:[#allocation2 + $0xed] sm:$0xff] }
 0x141   : > { %v4913_v35 = vpop.f32.mrb[44].mxu0  ;;  %v915_v28 = vpack.c.bf16 %v888_v26, %v887_v23  ;;  %v1537_v17 = vld [vmem:[#allocation2 + $0x87] sm:$0xff]  ;;  %v1538_v18 = vld [vmem:[#allocation2 + $0x8f] sm:$0xff] }
 0x142   : > { %4962 = vmatmul.mubr.msk.bf16.gmra.mrb[28].mxu1 %vm813_vm6, %v976_v33  ;;  %5024 = vmatmul.mubr.msk.bf16.gmra.mrb[84].mxu0 %vm813_vm6, %v907_v34  ;;  %vm718_vm11 = vcmp.ge.f32.partialorder %v4913_v35, 0.0  ;;  %v765_v36 = vmul.f32 0.2, %v4913_v35  ;;  %v658_v37 = vpop.f32.mrb[45].mxu0  ;;  %v916_v34 = vpack.c.bf16 %v890_v32, %v889_v31 }
 0x143   : > { %4965 = vmatprep.mubr.msk.bf16.mxu1 %vm5736_vm4, %v7748_v30  ;;  %5027 = vmatprep.mubr.msk.bf16.mxu0 %vm5736_vm4, %v7748_v30  ;;  %vm716_vm12 = vcmp.ge.f32.partialorder %v658_v37, 0.0  ;;  %v763_v38 = vmul.f32 0.2, %v658_v37  ;;  %v4914_v39 = vpop.f32.mrb[46].mxu0 }
 0x144   : > { %v812_v41 = vsel %vm718_vm11, %v4913_v35, %v765_v36  ;;  %v661_v42 = vpop.f32.mrb[47].mxu0  ;;  %v1521_v35 = vld [vmem:[#allocation2 + $0x7] sm:$0xff]  ;;  %v1522_v36 = vld [vmem:[#allocation2 + $0xf] sm:$0xff] }
 0x145   : > { %860 = vst.msk [vmem:[#allocation2 + $0x170] sm:$0xff] %vm813_vm6, %v812_v41  ;;  %v810_v46 = vsel %vm716_vm12, %v658_v37, %v763_v38  ;;  %vm717_vm13 = vcmp.ge.f32.partialorder %v661_v42, 0.0  ;;  %v764_v47 = vmul.f32 0.2, %v661_v42  ;;  %v963_v25 = vld [vmem:[#allocation2 + $0x13e] sm:$0xff]  ;;  %v891_v37 = vld [vmem:[#allocation2 + $0xf5] sm:$0xff]  ;;  %v1562_v41 = vpack.c.bf16 %v1522_v36, %v1521_v35 }
 0x146   : > { %858 = vst.msk [vmem:[#allocation2 + $0x160] sm:$0xff] %vm813_vm6, %v810_v46  ;;  %v984_v27 = vpack.c.bf16 %v963_v25, %v962_v24  ;;  %v892_v38 = vld [vmem:[#allocation2 + $0xfd] sm:$0xff]  ;;  %v4529_v39 = vld [vmem:[%s7745_s2 + $0x10] sm:$0xf] }
 0x147   : > { %v811_v48 = vsel %vm717_vm13, %v661_v42, %v764_v47  ;;  %v964_v29 = vld [vmem:[#allocation2 + $0x146] sm:$0xff]  ;;  %v917_v40 = vpack.c.bf16 %v892_v38, %v891_v37  ;;  %v2391_v42 = vsel %vm1051_vm3, %v4529_v39, 0  ;;  %v1523_v46 = vld [vmem:[#allocation2 + $0x17] sm:$0xff]  ;;  %v918_v47 = vpack.c.bf16 %v894_v44, %v893_v43 }
 0x148   : > { %859 = vst.msk [vmem:[#allocation2 + $0x168] sm:$0xff] %vm813_vm6, %v811_v48  ;;  %v985_v33 = vpack.c.bf16 %v964_v29, %v964_v29  ;;  %v1563_v48 = vpack.c.bf16 %v1524_v45, %v1523_v46  ;;  %v900_v63 = vld [vmem:[#allocation2 + $0x13d] sm:$0xff] }
 0x149   : > { %v1539_v24 = vld [vmem:[#allocation2 + $0x97] sm:$0xff]  ;;  %v1540_v25 = vld [vmem:[#allocation2 + $0x9f] sm:$0xff] }
 0x14a   : > { %4966 = vmatmul.mubr.msk.bf16.gmra.mrb[32].mxu1 %vm813_vm6, %v977_v49  ;;  %5028 = vmatmul.mubr.msk.bf16.gmra.mrb[88].mxu0 %vm813_vm6, %v908_v50  ;;  %v1525_v49 = vld [vmem:[#allocation2 + $0x27] sm:$0xff]  ;;  %v895_v50 = vld [vmem:[#allocation2 + $0x115] sm:$0xff]  ;;  %v6085_v29 = vpack.c.bf16 %v1540_v25, %v1539_v24  ;;  %v1544_v45 = vld [vmem:[#allocation2 + $0xbf] sm:$0xff] }
 0x14b   : > { %4969 = vmatprep.mubr.msk.bf16.mxu1 %vm5736_vm4, %v7748_v30  ;;  %5031 = vmatprep.mubr.msk.bf16.mxu0 %vm5736_vm4, %v7748_v30  ;;  %v919_v53 = vpack.c.bf16 %v896_v51, %v895_v50  ;;  %v1564_v54 = vpack.c.bf16 %v1526_v52, %v1525_v49  ;;  %v1543_v44 = vld [vmem:[#allocation2 + $0xb7] sm:$0xff] }
 0x14c   : > { %v6119_v52 = vpack.c.bf16 %v1544_v45, %v1543_v44 }
 0x152   : > { %4970 = vmatmul.mubr.msk.bf16.gmra.mrb[36].mxu1 %vm813_vm6, %v978_v55  ;;  %5032 = vmatmul.mubr.msk.bf16.gmra.mrb[92].mxu0 %vm813_vm6, %v909_v56  ;;  %v897_v55 = vld [vmem:[#allocation2 + $0x125] sm:$0xff]  ;;  %v898_v56 = vld [vmem:[#allocation2 + $0x12d] sm:$0xff] }
 0x153   : > { %4973 = vmatprep.mubr.msk.bf16.mxu1 %vm5736_vm4, %v7748_v30  ;;  %5035 = vmatprep.mubr.msk.bf16.mxu0 %vm5736_vm4, %v7748_v30  ;;  %v920_v59 = vpack.c.bf16 %v898_v56, %v897_v55  ;;  %v1545_v55 = vld [vmem:[#allocation2 + $0xc7] sm:$0xff]  ;;  %v1546_v56 = vld [vmem:[#allocation2 + $0xcf] sm:$0xff] }
 0x15a   : > { %4974 = vmatmul.mubr.msk.bf16.gmra.mrb[40].mxu1 %vm813_vm6, %v979_v61  ;;  %5036 = vmatmul.mubr.msk.bf16.gmra.mrb[96].mxu0 %vm813_vm6, %v910_v62  ;;  %v1529_v61 = vld [vmem:[#allocation2 + $0x47] sm:$0xff]  ;;  %v899_v62 = vld [vmem:[#allocation2 + $0x135] sm:$0xff] }
 0x15b   : > { %4977 = vmatprep.mubr.msk.bf16.mxu1 %vm5736_vm4, %v7748_v30  ;;  %5039 = vmatprep.mubr.msk.bf16.mxu0 %vm5736_vm4, %v7748_v30  ;;  %v921_v1 = vpack.c.bf16 %v900_v63, %v899_v62  ;;  %v1566_v2 = vpack.c.bf16 %v1530_v0, %v1529_v61 }
 0x162   : > { %4978 = vmatmul.mubr.msk.bf16.gmra.mrb[44].mxu1 %vm813_vm6, %v980_v3  ;;  %5040 = vmatmul.mubr.msk.bf16.gmra.mrb[100].mxu0 %vm813_vm6, %v911_v4  ;;  %v901_v3 = vld [vmem:[#allocation2 + $0x145] sm:$0xff] }
 0x163   : > { %4981 = vmatprep.mubr.msk.bf16.mxu1 %vm5736_vm4, %v7748_v30  ;;  %5043 = vmatprep.mubr.msk.bf16.mxu0 %vm5736_vm4, %v7748_v30  ;;  %v1532_v4 = vld [vmem:[#allocation2 + $0x5f] sm:$0xff]  ;;  %v922_v6 = vpack.c.bf16 %v901_v3, %v901_v3 }
 0x164   : > { %v1567_v7 = vpack.c.bf16 %v1532_v4, %v1531_v5  ;;  %v1547_v4 = vld [vmem:[#allocation2 + $0xd7] sm:$0xff]  ;;  %v1548_v5 = vld [vmem:[#allocation2 + $0xdf] sm:$0xff] }
 0x16a   : > { %4982 = vmatmul.mubr.msk.bf16.gmra.mrb[48].mxu1 %vm813_vm6, %v981_v9  ;;  %5044 = vmatmul.mubr.msk.bf16.gmra.mrb[104].mxu0 %vm813_vm6, %v912_v10  ;;  %v1534_v9 = vld [vmem:[#allocation2 + $0x6f] sm:$0xff] }
 0x16b   : > { %4985 = vmatprep.mubr.msk.bf16.mxu1 %vm5736_vm4, %v7748_v30  ;;  %5047 = vmatprep.mubr.msk.bf16.mxu0 %vm5736_vm4, %v7748_v30  ;;  %v4551_v10 = vld [vmem:[%s7745_s2 + $0x14] sm:$0xf]  ;;  %v6054_v11 = vpack.c.bf16 %v1534_v9, %v1533_v8 }
 0x16c   : > { %v2762_v12 = vsel %vm1051_vm3, %v4551_v10, 0 }
 0x172   : > { %4986 = vmatmul.mubr.msk.bf16.gmra.mrb[52].mxu1 %vm813_vm6, %v982_v15  ;;  %5048 = vmatmul.mubr.msk.bf16.gmra.mrb[108].mxu0 %vm813_vm6, %v913_v16  ;;  %v6065_v15 = vpack.c.bf16 %v1536_v13, %v1535_v14  ;;  %v6156_v14 = vpack.c.bf16 %v1548_v5, %v1547_v4 }
 0x173   : > { %4989 = vmatprep.mubr.msk.bf16.mxu1 %vm5736_vm4, %v7748_v30  ;;  %5051 = vmatprep.mubr.msk.bf16.mxu0 %vm5736_vm4, %v7748_v30 }
 0x17a   : > { %4990 = vmatmul.mubr.msk.bf16.gmra.mrb[56].mxu1 %vm813_vm6, %v983_v21  ;;  %5052 = vmatmul.mubr.msk.bf16.gmra.mrb[112].mxu0 %vm813_vm6, %v914_v22  ;;  %v6074_v22 = vpack.c.bf16 %v1538_v18, %v1537_v17  ;;  %v1549_v17 = vld [vmem:[#allocation2 + $0xe7] sm:$0xff]  ;;  %v1550_v18 = vld [vmem:[#allocation2 + $0xef] sm:$0xff] }
 0x17b   : > { %4993 = vmatprep.mubr.msk.bf16.mxu1 %vm5736_vm4, %v7748_v30  ;;  %5055 = vmatprep.mubr.msk.bf16.mxu0 %vm5736_vm4, %v7748_v30 }
 0x182   : > { %4994 = vmatmul.mubr.msk.bf16.gmra.mrb[60].mxu1 %vm813_vm6, %v984_v27  ;;  %5056 = vmatmul.mubr.msk.bf16.gmra.mrb[116].mxu0 %vm813_vm6, %v915_v28 }
 0x183   : > { %4997 = vmatprep.mubr.msk.bf16.mxu1 %vm5736_vm4, %v7748_v30  ;;  %5059 = vmatprep.mubr.msk.bf16.mxu0 %vm5736_vm4, %v7748_v30 }
 0x18a   : > { %4998 = vmatmul.mubr.msk.bf16.gmra.mrb[64].mxu1 %vm813_vm6, %v985_v33  ;;  %5060 = vmatmul.mubr.msk.bf16.gmra.mrb[120].mxu0 %vm813_vm6, %v916_v34  ;;  %v1541_v33 = vld [vmem:[#allocation2 + $0xa7] sm:$0xff]  ;;  %v1542_v34 = vld [vmem:[#allocation2 + $0xaf] sm:$0xff] }
 0x18b   : > { %5063 = vmatprep.mubr.msk.bf16.mxu0 %vm5736_vm4, %v7748_v30  ;;  %5089 = vmatprep.mubr.msk.bf16.mxu1 %vm5736_vm4, %v7748_v30 }
 0x192   : > { %5064 = vmatmul.mubr.msk.bf16.gmra.mrb[124].mxu0 %vm813_vm6, %v917_v40  ;;  %5090 = vmatmul.mubr.msk.bf16.vlgmr.msra.gmra.mrb[68].mxu1 %vm813_vm6, %v1562_v41  ;;  %v6102_v41 = vpack.c.bf16 %v1542_v34, %v1541_v33  ;;  %v1551_v33 = vld [vmem:[#allocation2 + $0xf7] sm:$0xff]  ;;  %v1552_v34 = vld [vmem:[#allocation2 + $0xff] sm:$0xff] }
 0x193   : > { %5260 = vmatpush3.bf16.msra.mxu1 %v2391_v42  ;;  %5067 = vmatprep.mubr.msk.bf16.mxu0 %vm5736_vm4, %v7748_v30 }
 0x194   : > { %5093 = vmatprep.mubr.msk.bf16.mxu1 %vm5736_vm4, %v7748_v30  ;;  %5431 = vmatprep.subr.bf16.mxu1 %v7748_v30 }
 0x19a   : > { %5068 = vmatmul.mubr.msk.bf16.gmra.mrb[128].mxu0 %vm813_vm6, %v918_v47  ;;  %5094 = vmatmul.mubr.msk.bf16.gmra.mrb[72].mxu1 %vm813_vm6, %v1563_v48 }
 0x19b   : > { %5071 = vmatprep.mubr.msk.bf16.mxu0 %vm5736_vm4, %v7748_v30  ;;  %5097 = vmatprep.mubr.msk.bf16.mxu1 %vm5736_vm4, %v7748_v30 }
 0x1a2   : > { %5072 = vmatmul.mubr.msk.bf16.gmra.mrb[132].mxu0 %vm813_vm6, %v919_v53  ;;  %5098 = vmatmul.mubr.msk.bf16.gmra.mrb[76].mxu1 %vm813_vm6, %v1564_v54 }
 0x1a3   : > { %5075 = vmatprep.mubr.msk.bf16.mxu0 %vm5736_vm4, %v7748_v30  ;;  %5101 = vmatprep.mubr.msk.bf16.mxu1 %vm5736_vm4, %v7748_v30 }
 0x1aa   : > { %5076 = vmatmul.mubr.msk.bf16.gmra.mrb[136].mxu0 %vm813_vm6, %v920_v59  ;;  %5102 = vmatmul.mubr.msk.bf16.gmra.mrb[80].mxu1 %vm813_vm6, %v1565_v60 }
 0x1ab   : > { %5079 = vmatprep.mubr.msk.bf16.mxu0 %vm5736_vm4, %v7748_v30  ;;  %5105 = vmatprep.mubr.msk.bf16.mxu1 %vm5736_vm4, %v7748_v30 }
 0x1b2   : > { %5080 = vmatmul.mubr.msk.bf16.gmra.mrb[140].mxu0 %vm813_vm6, %v921_v1  ;;  %5106 = vmatmul.mubr.msk.bf16.gmra.mrb[84].mxu1 %vm813_vm6, %v1566_v2  ;;  %v6137_v1 = vpack.c.bf16 %v1546_v56, %v1545_v55 }
 0x1b3   : > { %5083 = vmatprep.mubr.msk.bf16.mxu0 %vm5736_vm4, %v7748_v30  ;;  %5109 = vmatprep.mubr.msk.bf16.mxu1 %vm5736_vm4, %v7748_v30 }
 0x1ba   : > { %5084 = vmatmul.mubr.msk.bf16.gmra.mrb[144].mxu0 %vm813_vm6, %v922_v6  ;;  %5110 = vmatmul.mubr.msk.bf16.gmra.mrb[88].mxu1 %vm813_vm6, %v1567_v7 }
 0x1bb   : > { %5113 = vmatprep.mubr.msk.bf16.mxu1 %vm5736_vm4, %v7748_v30  ;;  %5175 = vmatprep.mubr.msk.bf16.mxu0 %vm5736_vm4, %v7748_v30 }
 0x1c2   : > { %5114 = vmatmul.mubr.msk.bf16.gmra.mrb[92].mxu1 %vm813_vm6, %v6054_v11  ;;  %5176 = vmatmul.mubr.msk.bf16.vlgmr.msra.gmra.mrb[148].mxu0 %vm813_vm6, %v1563_v48 }
 0x1c3   : > { %5117 = vmatprep.mubr.msk.bf16.mxu1 %vm5736_vm4, %v7748_v30  ;;  %5179 = vmatprep.mubr.msk.bf16.mxu0 %vm5736_vm4, %v7748_v30 }
 0x1c4   : > { %5346 = vmatpush3.bf16.msra.mxu0 %v2762_v12 }
 0x1c5   : > { %5517 = vmatprep.subr.bf16.mxu0 %v7748_v30 }
 0x1ca   : > { %5118 = vmatmul.mubr.msk.bf16.gmra.mrb[96].mxu1 %vm813_vm6, %v6065_v15  ;;  %5180 = vmatmul.mubr.msk.bf16.gmra.mrb[152].mxu0 %vm813_vm6, %v1564_v54 }
 0x1cb   : > { %5121 = vmatprep.mubr.msk.bf16.mxu1 %vm5736_vm4, %v7748_v30  ;;  %5183 = vmatprep.mubr.msk.bf16.mxu0 %vm5736_vm4, %v7748_v30 }
 0x1cd   : > { %v1089_v16 = vpop.f32.mrb[48].mxu0 }
 0x1ce   : > { %v4919_v19 = vpop.f32.mrb[49].mxu0 }
 0x1cf   : > { %v1092_v20 = vpop.f32.mrb[50].mxu0 }
 0x1d0   : > { %v4920_v21 = vpop.f32.mrb[51].mxu0 }
 0x1d2   : > { %5122 = vmatmul.mubr.msk.bf16.gmra.mrb[100].mxu1 %vm813_vm6, %v6074_v22  ;;  %5184 = vmatmul.mubr.msk.bf16.gmra.mrb[156].mxu0 %vm813_vm6, %v1565_v60 }
 0x1d3   : > { %5125 = vmatprep.mubr.msk.bf16.mxu1 %vm5736_vm4, %v7748_v30  ;;  %5187 = vmatprep.mubr.msk.bf16.mxu0 %vm5736_vm4, %v7748_v30 }
 0x1d5   : > { %v1097_v23 = vpop.f32.mrb[52].mxu0 }
 0x1d6   : > { %v4923_v26 = vpop.f32.mrb[53].mxu0 }
 0x1d7   : > { %v6083_v27 = vpop.f32.mrb[54].mxu0 }
 0x1d8   : > { %v4924_v28 = vpop.f32.mrb[55].mxu0 }
 0x1da   : > { %5126 = vmatmul.mubr.msk.bf16.gmra.mrb[104].mxu1 %vm813_vm6, %v6085_v29  ;;  %5188 = vmatmul.mubr.msk.bf16.gmra.mrb[160].mxu0 %vm813_vm6, %v1566_v2 }
 0x1db   : > { %5129 = vmatprep.mubr.msk.bf16.mxu1 %vm5736_vm4, %v7748_v30  ;;  %5191 = vmatprep.mubr.msk.bf16.mxu0 %vm5736_vm4, %v7748_v30 }
 0x1dd   : > { %v6094_v31 = vpop.f32.mrb[56].mxu0  ;;  %v6096_v32 = vpop.f32.mrb[0].mxu1 }
 0x1de   : > { %v4927_v35 = vpop.f32.mrb[57].mxu0  ;;  %v4935_v36 = vpop.f32.mrb[1].mxu1 }
 0x1df   : > { %v6098_v37 = vpop.f32.mrb[58].mxu0  ;;  %v6100_v38 = vpop.f32.mrb[2].mxu1 }
 0x1e0   : > { %v4928_v39 = vpop.f32.mrb[59].mxu0  ;;  %v4936_v40 = vpop.f32.mrb[3].mxu1 }
 0x1e2   : > { %5130 = vmatmul.mubr.msk.bf16.gmra.mrb[108].mxu1 %vm813_vm6, %v6102_v41  ;;  %5192 = vmatmul.mubr.msk.bf16.gmra.mrb[164].mxu0 %vm813_vm6, %v1567_v7 }
 0x1e3   : > { %5133 = vmatprep.mubr.msk.bf16.mxu1 %vm5736_vm4, %v7748_v30  ;;  %5195 = vmatprep.mubr.msk.bf16.mxu0 %vm5736_vm4, %v7748_v30 }
 0x1e5   : > { %v6111_v42 = vpop.f32.mrb[60].mxu0  ;;  %v6113_v43 = vpop.f32.mrb[4].mxu1 }
 0x1e6   : > { %v4931_v46 = vpop.f32.mrb[61].mxu0  ;;  %v4939_v47 = vpop.f32.mrb[5].mxu1 }
 0x1e7   : > { %v6115_v48 = vpop.f32.mrb[62].mxu0  ;;  %v6117_v49 = vpop.f32.mrb[6].mxu1  ;;  %v6196_v46 = vpack.c.bf16 %v1552_v34, %v1551_v33 }
 0x1e8   : > { %v4932_v50 = vpop.f32.mrb[63].mxu0  ;;  %v4940_v51 = vpop.f32.mrb[7].mxu1 }
 0x1e9   : > { %v1554_v50 = vld [vmem:[#allocation2 + $0x10f] sm:$0xff] }
 0x1ea   : > { %5134 = vmatmul.mubr.msk.bf16.gmra.mrb[112].mxu1 %vm813_vm6, %v6119_v52  ;;  %5196 = vmatmul.mubr.msk.bf16.gmra.mrb[168].mxu0 %vm813_vm6, %v6054_v11 }
 0x1eb   : > { %5137 = vmatprep.mubr.msk.bf16.mxu1 %vm5736_vm4, %v7748_v30  ;;  %5199 = vmatprep.mubr.msk.bf16.mxu0 %vm5736_vm4, %v7748_v30 }
 0x1ed   : > { %v6129_v53 = vpop.f32.mrb[8].mxu1  ;;  %v1355_v54 = vpop.f32.mrb[64].mxu0 }
 0x1ee   : > { %v6131_v57 = vadd.f32 %v1355_v54, %v1089_v16  ;;  %v4943_v58 = vpop.f32.mrb[9].mxu1  ;;  %v5005_v59 = vpop.f32.mrb[65].mxu0 }
 0x1ef   : > { %v6133_v60 = vpop.f32.mrb[10].mxu1  ;;  %v1358_v61 = vpop.f32.mrb[66].mxu0 }
 0x1f0   : > { %v6135_v62 = vadd.f32 %v1358_v61, %v1092_v20  ;;  %v4944_v63 = vpop.f32.mrb[11].mxu1  ;;  %v5006_v0 = vpop.f32.mrb[67].mxu0 }
 0x1f1   : > { %v1555_v0 = vld [vmem:[#allocation2 + $0x117] sm:$0xff] }
 0x1f2   : > { %5138 = vmatmul.mubr.msk.bf16.gmra.mrb[116].mxu1 %vm813_vm6, %v6137_v1  ;;  %5200 = vmatmul.mubr.msk.bf16.gmra.mrb[172].mxu0 %vm813_vm6, %v6065_v15 }
 0x1f3   : > { %5141 = vmatprep.mubr.msk.bf16.mxu1 %vm5736_vm4, %v7748_v30  ;;  %5203 = vmatprep.mubr.msk.bf16.mxu0 %vm5736_vm4, %v7748_v30 }
 0x1f5   : > { %v6147_v2 = vpop.f32.mrb[12].mxu1  ;;  %v1363_v3 = vpop.f32.mrb[68].mxu0 }
 0x1f6   : > { %v6149_v6 = vadd.f32 %v1363_v3, %v1097_v23  ;;  %v4947_v7 = vpop.f32.mrb[13].mxu1  ;;  %v5009_v8 = vpop.f32.mrb[69].mxu0  ;;  %v1556_v3 = vld [vmem:[#allocation2 + $0x11f] sm:$0xff] }
 0x1f7   : > { %v6151_v9 = vpop.f32.mrb[14].mxu1  ;;  %v1366_v10 = vpop.f32.mrb[70].mxu0 }
 0x1f8   : > { %v6154_v11 = vadd.f32 %v1366_v10, %v6083_v27  ;;  %v4948_v12 = vpop.f32.mrb[15].mxu1  ;;  %v5010_v13 = vpop.f32.mrb[71].mxu0  ;;  %v6176_v27 = vpack.c.bf16 %v1550_v18, %v1549_v17  ;;  %v1557_v17 = vld [vmem:[#allocation2 + $0x127] sm:$0xff]  ;;  %v1558_v18 = vld [vmem:[#allocation2 + $0x12f] sm:$0xff] }
 0x1f9   : > { %v6256_v34 = vpack.c.bf16 %v1558_v18, %v1557_v17 }
 0x1fa   : > { %5142 = vmatmul.mubr.msk.bf16.gmra.mrb[120].mxu1 %vm813_vm6, %v6156_v14  ;;  %5204 = vmatmul.mubr.msk.bf16.gmra.mrb[176].mxu0 %vm813_vm6, %v6074_v22 }
 0x1fb   : > { %5145 = vmatprep.mubr.msk.bf16.mxu1 %vm5736_vm4, %v7748_v30  ;;  %5207 = vmatprep.mubr.msk.bf16.mxu0 %vm5736_vm4, %v7748_v30 }
 0x1fd   : > { %v6166_v15 = vpop.f32.mrb[16].mxu1  ;;  %v1371_v16 = vpop.f32.mrb[72].mxu0 }
 0x1fe   : > { %v6169_v19 = vadd.f32 %v1371_v16, %v6094_v31  ;;  %v4951_v20 = vpop.f32.mrb[17].mxu1  ;;  %v5013_v21 = vpop.f32.mrb[73].mxu0  ;;  %v6236_v16 = vpack.c.bf16 %v1556_v3, %v1555_v0 }
 0x1ff   : > { %v6171_v23 = vpop.f32.mrb[18].mxu1  ;;  %v1374_v24 = vpop.f32.mrb[74].mxu0 }
 0x200   : > { %v6174_v22 = vadd.f32 %v1374_v24, %v6098_v37  ;;  %v4952_v25 = vpop.f32.mrb[19].mxu1  ;;  %v5014_v26 = vpop.f32.mrb[75].mxu0 }
 0x202   : > { %5146 = vmatmul.mubr.msk.bf16.gmra.mrb[124].mxu1 %vm813_vm6, %v6176_v27  ;;  %5208 = vmatmul.mubr.msk.bf16.gmra.mrb[180].mxu0 %vm813_vm6, %v6085_v29 }
 0x203   : > { %5149 = vmatprep.mubr.msk.bf16.mxu1 %vm5736_vm4, %v7748_v30  ;;  %5211 = vmatprep.mubr.msk.bf16.mxu0 %vm5736_vm4, %v7748_v30 }
 0x205   : > { %v6186_v28 = vpop.f32.mrb[20].mxu1  ;;  %v1379_v31 = vpop.f32.mrb[76].mxu0 }
 0x206   : > { %v6189_v35 = vadd.f32 %v1379_v31, %v6111_v42  ;;  %v4955_v36 = vpop.f32.mrb[21].mxu1  ;;  %v5017_v37 = vpop.f32.mrb[77].mxu0 }
 0x207   : > { %v6191_v39 = vpop.f32.mrb[22].mxu1  ;;  %v1382_v40 = vpop.f32.mrb[78].mxu0  ;;  %v1559_v36 = vld [vmem:[#allocation2 + $0x137] sm:$0xff]  ;;  %v1560_v37 = vld [vmem:[#allocation2 + $0x13f] sm:$0xff] }
 0x208   : > { %v6194_v29 = vadd.f32 %v1382_v40, %v6115_v48  ;;  %v4956_v44 = vpop.f32.mrb[23].mxu1  ;;  %v5018_v45 = vpop.f32.mrb[79].mxu0  ;;  %v1553_v48 = vld [vmem:[#allocation2 + $0x107] sm:$0xff] }
 0x209   : > { %v6216_v63 = vpack.c.bf16 %v1554_v50, %v1553_v48 }
 0x20a   : > { %5150 = vmatmul.mubr.msk.bf16.gmra.mrb[128].mxu1 %vm813_vm6, %v6196_v46  ;;  %5212 = vmatmul.mubr.msk.bf16.gmra.mrb[184].mxu0 %vm813_vm6, %v6102_v41 }
 0x20b   : > { %5153 = vmatprep.mubr.msk.bf16.mxu1 %vm5736_vm4, %v7748_v30  ;;  %5215 = vmatprep.mubr.msk.bf16.mxu0 %vm5736_vm4, %v7748_v30 }
 0x20d   : > { %v6206_v42 = vpop.f32.mrb[24].mxu1  ;;  %v1387_v47 = vpop.f32.mrb[80].mxu0 }
 0x20e   : > { %v6209_v51 = vadd.f32 %v1387_v47, %v6096_v32  ;;  %v4959_v54 = vpop.f32.mrb[25].mxu1  ;;  %v5021_v55 = vpop.f32.mrb[81].mxu0 }
 0x20f   : > { %v6211_v56 = vpop.f32.mrb[26].mxu1  ;;  %v1390_v58 = vpop.f32.mrb[82].mxu0  ;;  %v6276_v55 = vpack.c.bf16 %v1560_v37, %v1559_v36  ;;  %v2265_v37 = vld [vmem:[#allocation2 + $0x28] sm:$0xff] }
 0x210   : > { %v6214_v41 = vadd.f32 %v1390_v58, %v6100_v38  ;;  %v4960_v59 = vpop.f32.mrb[27].mxu1  ;;  %v5022_v61 = vpop.f32.mrb[83].mxu0  ;;  %v6288_v58 = vld [vmem:[#allocation2 + $0x147] sm:$0xff] }
 0x212   : > { %5154 = vmatmul.mubr.msk.bf16.gmra.mrb[132].mxu1 %vm813_vm6, %v6216_v63  ;;  %5216 = vmatmul.mubr.msk.bf16.gmra.mrb[188].mxu0 %vm813_vm6, %v6119_v52 }
 0x213   : > { %5157 = vmatprep.mubr.msk.bf16.mxu1 %vm5736_vm4, %v7748_v30  ;;  %5219 = vmatprep.mubr.msk.bf16.mxu0 %vm5736_vm4, %v7748_v30 }
 0x215   : > { %v6226_v32 = vpop.f32.mrb[28].mxu1  ;;  %v1395_v38 = vpop.f32.mrb[84].mxu0 }
 0x216   : > { %v6229_v4 = vadd.f32 %v1395_v38, %v6113_v43  ;;  %v4963_v5 = vpop.f32.mrb[29].mxu1  ;;  %v5025_v7 = vpop.f32.mrb[85].mxu0 }
 0x217   : > { %v6231_v8 = vpop.f32.mrb[30].mxu1  ;;  %v1398_v10 = vpop.f32.mrb[86].mxu0 }
 0x218   : > { %v6234_v52 = vadd.f32 %v1398_v10, %v6117_v49  ;;  %v4964_v12 = vpop.f32.mrb[31].mxu1  ;;  %v5026_v13 = vpop.f32.mrb[87].mxu0  ;;  %v1582_v10 = vpack.c.bf16 %v6288_v58, %v6288_v58 }
 0x219   : > { %v2264_v12 = vld [vmem:[#allocation2 + $0x20] sm:$0xff]  ;;  %v4573_v13 = vld [vmem:[%s7745_s2 + $0x18] sm:$0xf] }
 0x21a   : > { %5158 = vmatmul.mubr.msk.bf16.gmra.mrb[136].mxu1 %vm813_vm6, %v6236_v16  ;;  %5220 = vmatmul.mubr.msk.bf16.gmra.mrb[192].mxu0 %vm813_vm6, %v6137_v1  ;;  %v3133_v36 = vsel %vm1051_vm3, %v4573_v13, 0  ;;  %v2267_v13 = vld [vmem:[#allocation2 + $0x38] sm:$0xff] }
 0x21b   : > { %5161 = vmatprep.mubr.msk.bf16.mxu1 %vm5736_vm4, %v7748_v30  ;;  %5223 = vmatprep.mubr.msk.bf16.mxu0 %vm5736_vm4, %v7748_v30 }
 0x21d   : > { %v6246_v43 = vpop.f32.mrb[32].mxu1  ;;  %v1403_v49 = vpop.f32.mrb[88].mxu0 }
 0x21e   : > { %v6249_v20 = vadd.f32 %v1403_v49, %v6129_v53  ;;  %v4967_v21 = vpop.f32.mrb[33].mxu1  ;;  %v5029_v24 = vpop.f32.mrb[89].mxu0 }
 0x21f   : > { %v6251_v25 = vpop.f32.mrb[34].mxu1  ;;  %v1406_v26 = vpop.f32.mrb[90].mxu0  ;;  %v2263_v24 = vld [vmem:[#allocation2 + $0x18] sm:$0xff] }
 0x220   : > { %v6254_v1 = vadd.f32 %v1406_v26, %v6133_v60  ;;  %v4968_v31 = vpop.f32.mrb[35].mxu1  ;;  %v5030_v33 = vpop.f32.mrb[91].mxu0 }
 0x222   : > { %5162 = vmatmul.mubr.msk.bf16.gmra.mrb[140].mxu1 %vm813_vm6, %v6256_v34  ;;  %5224 = vmatmul.mubr.msk.bf16.gmra.mrb[196].mxu0 %vm813_vm6, %v6156_v14 }
 0x223   : > { %5165 = vmatprep.mubr.msk.bf16.mxu1 %vm5736_vm4, %v7748_v30  ;;  %5227 = vmatprep.mubr.msk.bf16.mxu0 %vm5736_vm4, %v7748_v30 }
 0x225   : > { %v6266_v53 = vpop.f32.mrb[36].mxu1  ;;  %v1411_v60 = vpop.f32.mrb[92].mxu0 }
 0x226   : > { %v6269_v40 = vadd.f32 %v1411_v60, %v6147_v2  ;;  %v4971_v44 = vpop.f32.mrb[37].mxu1  ;;  %v5033_v45 = vpop.f32.mrb[93].mxu0  ;;  %v2304_v60 = vpack.c.bf16 %v2264_v12, %v2263_v24 }
 0x227   : > { %v6271_v47 = vpop.f32.mrb[38].mxu1  ;;  %v1414_v48 = vpop.f32.mrb[94].mxu0 }
 0x228   : > { %v6274_v14 = vadd.f32 %v1414_v48, %v6151_v9  ;;  %v4972_v50 = vpop.f32.mrb[39].mxu1  ;;  %v5034_v54 = vpop.f32.mrb[95].mxu0 }
 0x229   : > { %v2266_v54 = vld [vmem:[#allocation2 + $0x30] sm:$0xff] }
 0x22a   : > { %5166 = vmatmul.mubr.msk.bf16.gmra.mrb[144].mxu1 %vm813_vm6, %v6276_v55  ;;  %5228 = vmatmul.mubr.msk.bf16.gmra.mrb[200].mxu0 %vm813_vm6, %v6176_v27 }
 0x22b   : > { %5169 = vmatprep.mubr.msk.bf16.mxu1 %vm5736_vm4, %v7748_v30  ;;  %5231 = vmatprep.mubr.msk.bf16.mxu0 %vm5736_vm4, %v7748_v30 }
 0x22d   : > { %v6286_v2 = vpop.f32.mrb[40].mxu1  ;;  %v1419_v9 = vpop.f32.mrb[96].mxu0 }
 0x22e   : > { %v6291_v59 = vadd.f32 %v1419_v9, %v6166_v15  ;;  %v4975_v61 = vpop.f32.mrb[41].mxu1  ;;  %v5037_v38 = vpop.f32.mrb[97].mxu0 }
 0x22f   : > { %v6293_v0 = vpop.f32.mrb[42].mxu1  ;;  %v1422_v3 = vpop.f32.mrb[98].mxu0 }
 0x230   : > { %v6296_v27 = vadd.f32 %v1422_v3, %v6171_v23  ;;  %v4976_v5 = vpop.f32.mrb[43].mxu1  ;;  %v5038_v7 = vpop.f32.mrb[99].mxu0  ;;  %v2305_v3 = vpack.c.bf16 %v2266_v54, %v2265_v37  ;;  %v2270_v37 = vld [vmem:[#allocation2 + $0x50] sm:$0xff] }
 0x231   : > { %v2268_v7 = vld [vmem:[#allocation2 + $0x40] sm:$0xff] }
 0x232   : > { %5170 = vmatmul.mubr.msk.bf16.gmra.mrb[148].mxu1 %vm813_vm6, %v1582_v10  ;;  %5232 = vmatmul.mubr.msk.bf16.gmra.mrb[204].mxu0 %vm813_vm6, %v6196_v46  ;;  %v2306_v24 = vpack.c.bf16 %v2268_v7, %v2267_v13 }
 0x233   : > { %5235 = vmatprep.mubr.msk.bf16.mxu0 %vm5736_vm4, %v7748_v30  ;;  %5261 = vmatprep.mubr.msk.bf16.mxu1 %vm5736_vm4, %v7748_v30 }
 0x235   : > { %v6307_v15 = vpop.f32.mrb[44].mxu1  ;;  %v1427_v23 = vpop.f32.mrb[100].mxu0 }
 0x236   : > { %v6313_v49 = vadd.f32 %v1427_v23, %v6186_v28  ;;  %v4979_v17 = vpop.f32.mrb[45].mxu1  ;;  %v5041_v18 = vpop.f32.mrb[101].mxu0 }
 0x237   : > { %v6315_v46 = vpop.f32.mrb[46].mxu1  ;;  %v1430_v21 = vpop.f32.mrb[102].mxu0 }
 0x238   : > { %v6318_v26 = vadd.f32 %v1430_v21, %v6191_v39  ;;  %v4980_v31 = vpop.f32.mrb[47].mxu1  ;;  %v5042_v33 = vpop.f32.mrb[103].mxu0 }
 0x239   : > { %v2269_v33 = vld [vmem:[#allocation2 + $0x48] sm:$0xff] }
 0x23a   : > { %5236 = vmatmul.mubr.msk.bf16.gmra.mrb[208].mxu0 %vm813_vm6, %v6216_v63  ;;  %5262 = vmatmul.mubr.msk.bf16.vlgmr.msra.gmra.mrb[152].mxu1 %vm813_vm6, %v2304_v60  ;;  %v2307_v54 = vpack.c.bf16 %v2270_v37, %v2269_v33  ;;  %v2273_v33 = vld [vmem:[#allocation2 + $0x68] sm:$0xff] }
 0x23b   : > { %5432 = vmatpush3.bf16.msra.mxu1 %v3133_v36  ;;  %5239 = vmatprep.mubr.msk.bf16.mxu0 %vm5736_vm4, %v7748_v30 }
 0x23c   : > { %5265 = vmatprep.mubr.msk.bf16.mxu1 %vm5736_vm4, %v7748_v30  ;;  %5603 = vmatprep.subr.bf16.mxu1 %v7748_v30 }
 0x23d   : > { %v6329_v28 = vpop.f32.mrb[48].mxu1  ;;  %v1435_v39 = vpop.f32.mrb[104].mxu0 }
 0x23e   : > { %v6332_v44 = vadd.f32 %v1435_v39, %v6206_v42  ;;  %v4983_v45 = vpop.f32.mrb[49].mxu1  ;;  %v5045_v63 = vpop.f32.mrb[105].mxu0 }
 0x23f   : > { %v6334_v48 = vpop.f32.mrb[50].mxu1  ;;  %v1438_v50 = vpop.f32.mrb[106].mxu0 }
 0x240   : > { %v6337_v9 = vadd.f32 %v1438_v50, %v6211_v56  ;;  %v4984_v61 = vpop.f32.mrb[51].mxu1  ;;  %v5046_v38 = vpop.f32.mrb[107].mxu0 }
 0x241   : > { %v1931_v38 = vld [vmem:[#allocation2 + $0x14f] sm:$0xff] }
 0x242   : > { %5240 = vmatmul.mubr.msk.bf16.gmra.mrb[212].mxu0 %vm813_vm6, %v6236_v16  ;;  %5266 = vmatmul.mubr.msk.bf16.gmra.mrb[156].mxu1 %vm813_vm6, %v2305_v3 }
 0x243   : > { %5243 = vmatprep.mubr.msk.bf16.mxu0 %vm5736_vm4, %v7748_v30  ;;  %5269 = vmatprep.mubr.msk.bf16.mxu1 %vm5736_vm4, %v7748_v30 }
 0x245   : > { %v6346_v42 = vpop.f32.mrb[52].mxu1  ;;  %v1443_v5 = vpop.f32.mrb[108].mxu0 }
 0x246   : > { %v6349_v56 = vadd.f32 %v1443_v5, %v6226_v32  ;;  %v4987_v10 = vpop.f32.mrb[53].mxu1  ;;  %v5049_v23 = vpop.f32.mrb[109].mxu0 }
 0x247   : > { %v6351_v12 = vpop.f32.mrb[54].mxu1  ;;  %v1446_v16 = vpop.f32.mrb[110].mxu0  ;;  %v2271_v23 = vld [vmem:[#allocation2 + $0x58] sm:$0xff] }
 0x248   : > { %v6354_v17 = vadd.f32 %v1446_v16, %v6231_v8  ;;  %v4988_v18 = vpop.f32.mrb[55].mxu1  ;;  %v5050_v21 = vpop.f32.mrb[111].mxu0 }
 0x249   : > { %v1952_v21 = vpack.c.bf16 %v1931_v38, %v6288_v58 }
 0x24a   : > { %5244 = vmatmul.mubr.msk.bf16.gmra.mrb[216].mxu0 %vm813_vm6, %v6256_v34  ;;  %5270 = vmatmul.mubr.msk.bf16.gmra.mrb[160].mxu1 %vm813_vm6, %v2306_v24 }
 0x24b   : > { %5247 = vmatprep.mubr.msk.bf16.mxu0 %vm5736_vm4, %v7748_v30  ;;  %5273 = vmatprep.mubr.msk.bf16.mxu1 %vm5736_vm4, %v7748_v30 }
 0x24d   : > { %v6363_v32 = vpop.f32.mrb[56].mxu1  ;;  %v1451_v31 = vpop.f32.mrb[112].mxu0 }
 0x24e   : > { %v6366_v8 = vadd.f32 %v1451_v31, %v6246_v43  ;;  %v4991_v60 = vpop.f32.mrb[57].mxu1  ;;  %v5053_v36 = vpop.f32.mrb[113].mxu0 }
 0x24f   : > { %v6368_v39 = vpop.f32.mrb[58].mxu1  ;;  %v1454_v34 = vpop.f32.mrb[114].mxu0 }
 0x250   : > { %v6371_v45 = vadd.f32 %v1454_v34, %v6251_v25  ;;  %v4992_v63 = vpop.f32.mrb[59].mxu1  ;;  %v5054_v50 = vpop.f32.mrb[115].mxu0  ;;  %v2272_v25 = vld [vmem:[#allocation2 + $0x60] sm:$0xff] }
 0x251   : > { %v2308_v24 = vpack.c.bf16 %v2272_v25, %v2271_v23  ;;  %v2274_v63 = vld [vmem:[#allocation2 + $0x70] sm:$0xff] }
 0x252   : > { %5248 = vmatmul.mubr.msk.bf16.gmra.mrb[220].mxu0 %vm813_vm6, %v6276_v55  ;;  %5274 = vmatmul.mubr.msk.bf16.gmra.mrb[164].mxu1 %vm813_vm6, %v2307_v54  ;;  %v2309_v25 = vpack.c.bf16 %v2274_v63, %v2273_v33  ;;  %v2634_v33 = vld [vmem:[#allocation2 + $0x19] sm:$0xff] }
 0x253   : > { %5251 = vmatprep.mubr.msk.bf16.mxu0 %vm5736_vm4, %v7748_v30  ;;  %5277 = vmatprep.mubr.msk.bf16.mxu1 %vm5736_vm4, %v7748_v30 }
 0x255   : > { %v6380_v43 = vpop.f32.mrb[60].mxu1  ;;  %v1459_v61 = vpop.f32.mrb[116].mxu0 }
 0x256   : > { %v6383_v3 = vadd.f32 %v1459_v61, %v6266_v53  ;;  %v4995_v5 = vpop.f32.mrb[61].mxu1  ;;  %v5057_v7 = vpop.f32.mrb[117].mxu0 }
 0x257   : > { %v6385_v10 = vpop.f32.mrb[62].mxu1  ;;  %v1462_v55 = vpop.f32.mrb[118].mxu0  ;;  %v2276_v7 = vld [vmem:[#allocation2 + $0x80] sm:$0xff] }
 0x258   : > { %v6388_v16 = vadd.f32 %v1462_v55, %v6271_v47  ;;  %v4996_v13 = vpop.f32.mrb[63].mxu1  ;;  %v5058_v18 = vpop.f32.mrb[119].mxu0  ;;  %v1932_v47 = vld [vmem:[#allocation2 + $0x157] sm:$0xff]  ;;  %v2635_v55 = vld [vmem:[#allocation2 + $0x21] sm:$0xff] }
 0x259   : > { %v1953_v38 = vpack.c.bf16 %v1932_v47, %v1932_v47  ;;  %v2275_v47 = vld [vmem:[#allocation2 + $0x78] sm:$0xff] }
 0x25a   : > { %5252 = vmatmul.mubr.msk.bf16.gmra.mrb[224].mxu0 %vm813_vm6, %v1952_v21  ;;  %5278 = vmatmul.mubr.msk.bf16.gmra.mrb[168].mxu1 %vm813_vm6, %v2308_v24  ;;  %v4595_v21 = vld [vmem:[%s7745_s2 + $0x1c] sm:$0xf] }
 0x25b   : > { %5255 = vmatprep.mubr.msk.bf16.mxu0 %vm5736_vm4, %v7748_v30  ;;  %5281 = vmatprep.mubr.msk.bf16.mxu1 %vm5736_vm4, %v7748_v30 }
 0x25d   : > { %v6397_v53 = vpop.f32.mrb[64].mxu1  ;;  %v1467_v31 = vpop.f32.mrb[120].mxu0 }
 0x25e   : > { %v6400_v60 = vadd.f32 %v1467_v31, %v6286_v2  ;;  %v4999_v58 = vpop.f32.mrb[65].mxu1  ;;  %v5061_v36 = vpop.f32.mrb[121].mxu0 }
 0x25f   : > { %v1252_v34 = vpop.f32.mrb[66].mxu1  ;;  %v1470_v37 = vpop.f32.mrb[122].mxu0 }
 0x260   : > { %v6403_v50 = vadd.f32 %v1470_v37, %v6293_v0  ;;  %v5000_v54 = vpop.f32.mrb[67].mxu1  ;;  %v5062_v61 = vpop.f32.mrb[123].mxu0  ;;  %v2675_v37 = vpack.c.bf16 %v2635_v55, %v2634_v33 }
 0x262   : > { %5256 = vmatmul.mubr.msk.bf16.gmra.mrb[228].mxu0 %vm813_vm6, %v1953_v38  ;;  %5282 = vmatmul.mubr.msk.bf16.gmra.mrb[172].mxu1 %vm813_vm6, %v2309_v25  ;;  %v2277_v38 = vld [vmem:[#allocation2 + $0x88] sm:$0xff]  ;;  %v2278_v25 = vld [vmem:[#allocation2 + $0x90] sm:$0xff] }
 0x263   : > { %5285 = vmatprep.mubr.msk.bf16.mxu1 %vm5736_vm4, %v7748_v30  ;;  %5347 = vmatprep.mubr.msk.bf16.mxu0 %vm5736_vm4, %v7748_v30 }
 0x265   : > { %v1475_v2 = vpop.f32.mrb[124].mxu0  ;;  %v1685_v5 = vpop.f32.mrb[68].mxu1 }
 0x266   : > { %v6412_v0 = vadd.f32 %v1475_v2, %v6307_v15  ;;  %v5065_v23 = vpop.f32.mrb[125].mxu0  ;;  %v5091_v13 = vpop.f32.mrb[69].mxu1  ;;  %v6415_v18 = vadd.f32 %v1685_v5, %v6131_v57  ;;  %v2310_v15 = vpack.c.bf16 %v2276_v7, %v2275_v47  ;;  %v3504_v57 = vsel %vm1051_vm3, %v4595_v21, 0 }
 0x267   : > { %v1478_v24 = vpop.f32.mrb[126].mxu0  ;;  %v1688_v31 = vpop.f32.mrb[70].mxu1  ;;  %v2311_v47 = vpack.c.bf16 %v2278_v25, %v2277_v38  ;;  %v2638_v38 = vld [vmem:[#allocation2 + $0x39] sm:$0xff] }
 0x268   : > { %v6421_v58 = vadd.f32 %v1478_v24, %v6315_v46  ;;  %v5066_v36 = vpop.f32.mrb[127].mxu0  ;;  %v5092_v34 = vpop.f32.mrb[71].mxu1  ;;  %v6424_v63 = vadd.f32 %v1688_v31, %v6135_v62  ;;  %v2636_v46 = vld [vmem:[#allocation2 + $0x29] sm:$0xff]  ;;  %v2637_v62 = vld [vmem:[#allocation2 + $0x31] sm:$0xff] }
 0x269   : > { %v6442_v33 = vpack.c.bf16 %v2637_v62, %v2636_v46  ;;  %v2280_v34 = vld [vmem:[#allocation2 + $0xa0] sm:$0xff] }
 0x26a   : > { %5286 = vmatmul.mubr.msk.bf16.gmra.mrb[176].mxu1 %vm813_vm6, %v2310_v15  ;;  %5348 = vmatmul.mubr.msk.bf16.vlgmr.msra.gmra.mrb[232].mxu0 %vm813_vm6, %v2675_v37  ;;  %v2639_v15 = vld [vmem:[#allocation2 + $0x41] sm:$0xff] }
 0x26b   : > { %5289 = vmatprep.mubr.msk.bf16.mxu1 %vm5736_vm4, %v7748_v30  ;;  %5351 = vmatprep.mubr.msk.bf16.mxu0 %vm5736_vm4, %v7748_v30 }
 0x26c   : > { %5518 = vmatpush3.bf16.msra.mxu0 %v3504_v57 }
 0x26d   : > { %v1483_v54 = vpop.f32.mrb[128].mxu0  ;;  %v1693_v61 = vpop.f32.mrb[72].mxu1 }
 0x26e   : > { %v6434_v2 = vadd.f32 %v1483_v54, %v6329_v28  ;;  %v5069_v5 = vpop.f32.mrb[129].mxu0  ;;  %v5095_v7 = vpop.f32.mrb[73].mxu1  ;;  %v6437_v55 = vadd.f32 %v1693_v61, %v6149_v6 }
 0x26f   : > { %v1486_v23 = vpop.f32.mrb[130].mxu0  ;;  %v1696_v13 = vpop.f32.mrb[74].mxu1 }
 0x270   : > { %v6440_v21 = vadd.f32 %v1486_v23, %v6334_v48  ;;  %v5070_v24 = vpop.f32.mrb[131].mxu0  ;;  %v5096_v31 = vpop.f32.mrb[75].mxu1  ;;  %v6445_v36 = vadd.f32 %v1696_v13, %v6154_v11  ;;  %v2279_v48 = vld [vmem:[#allocation2 + $0x98] sm:$0xff]  ;;  %v6463_v23 = vpack.c.bf16 %v2639_v15, %v2638_v38 }
 0x271   : > { %v2312_v7 = vpack.c.bf16 %v2280_v34, %v2279_v48  ;;  %v2281_v24 = vld [vmem:[#allocation2 + $0xa8] sm:$0xff]  ;;  %v2282_v31 = vld [vmem:[#allocation2 + $0xb0] sm:$0xff] }
 0x272   : > { %5290 = vmatmul.mubr.msk.bf16.gmra.mrb[180].mxu1 %vm813_vm6, %v2311_v47  ;;  %5352 = vmatmul.mubr.msk.bf16.gmra.mrb[236].mxu0 %vm813_vm6, %v6442_v33  ;;  %v2641_v47 = vld [vmem:[#allocation2 + $0x51] sm:$0xff] }
 0x273   : > { %5293 = vmatprep.mubr.msk.bf16.mxu1 %vm5736_vm4, %v7748_v30  ;;  %5355 = vmatprep.mubr.msk.bf16.mxu0 %vm5736_vm4, %v7748_v30 }
 0x275   : > { %v1491_v6 = vpop.f32.mrb[132].mxu0  ;;  %v1701_v28 = vpop.f32.mrb[76].mxu1 }
 0x276   : > { %v6455_v37 = vadd.f32 %v1491_v6, %v6346_v42  ;;  %v5073_v11 = vpop.f32.mrb[133].mxu0  ;;  %v5099_v57 = vpop.f32.mrb[77].mxu1  ;;  %v6458_v46 = vadd.f32 %v1701_v28, %v6169_v19  ;;  %v2640_v19 = vld [vmem:[#allocation2 + $0x49] sm:$0xff] }
 0x277   : > { %v1494_v54 = vpop.f32.mrb[134].mxu0  ;;  %v1704_v61 = vpop.f32.mrb[78].mxu1  ;;  %v6484_v38 = vpack.c.bf16 %v2641_v47, %v2640_v19  ;;  %v2642_v47 = vld [vmem:[#allocation2 + $0x59] sm:$0xff] }
 0x278   : > { %v6461_v25 = vadd.f32 %v1494_v54, %v6351_v12  ;;  %v5074_v62 = vpop.f32.mrb[135].mxu0  ;;  %v5100_v5 = vpop.f32.mrb[79].mxu1  ;;  %v6466_v13 = vadd.f32 %v1704_v61, %v6174_v22  ;;  %v2313_v61 = vpack.c.bf16 %v2282_v31, %v2281_v24 }
 0x279   : > { %v2284_v5 = vld [vmem:[#allocation2 + $0xc0] sm:$0xff] }
 0x27a   : > { %5294 = vmatmul.mubr.msk.bf16.gmra.mrb[184].mxu1 %vm813_vm6, %v2312_v7  ;;  %5356 = vmatmul.mubr.msk.bf16.gmra.mrb[240].mxu0 %vm813_vm6, %v6463_v23  ;;  %v2643_v7 = vld [vmem:[#allocation2 + $0x61] sm:$0xff] }
 0x27b   : > { %5297 = vmatprep.mubr.msk.bf16.mxu1 %vm5736_vm4, %v7748_v30  ;;  %5359 = vmatprep.mubr.msk.bf16.mxu0 %vm5736_vm4, %v7748_v30 }
 0x27d   : > { %v1499_v42 = vpop.f32.mrb[136].mxu0  ;;  %v1709_v12 = vpop.f32.mrb[80].mxu1 }
 0x27e   : > { %v6476_v22 = vadd.f32 %v1499_v42, %v6363_v32  ;;  %v5077_v6 = vpop.f32.mrb[137].mxu0  ;;  %v5103_v28 = vpop.f32.mrb[81].mxu1  ;;  %v6479_v48 = vadd.f32 %v1709_v12, %v6189_v35 }
 0x27f   : > { %v1502_v34 = vpop.f32.mrb[138].mxu0  ;;  %v1712_v15 = vpop.f32.mrb[82].mxu1 }
 0x280   : > { %v6482_v11 = vadd.f32 %v1502_v34, %v6368_v39  ;;  %v5078_v57 = vpop.f32.mrb[139].mxu0  ;;  %v5104_v54 = vpop.f32.mrb[83].mxu1  ;;  %v6487_v62 = vadd.f32 %v1712_v15, %v6194_v29  ;;  %v2283_v39 = vld [vmem:[#allocation2 + $0xb8] sm:$0xff] }
 0x281   : > { %v2314_v15 = vpack.c.bf16 %v2284_v5, %v2283_v39  ;;  %v6505_v57 = vpack.c.bf16 %v2643_v7, %v2642_v47 }
 0x282   : > { %5298 = vmatmul.mubr.msk.bf16.gmra.mrb[188].mxu1 %vm813_vm6, %v2313_v61  ;;  %5360 = vmatmul.mubr.msk.bf16.gmra.mrb[244].mxu0 %vm813_vm6, %v6484_v38  ;;  %v2285_v61 = vld [vmem:[#allocation2 + $0xc8] sm:$0xff] }
 0x283   : > { %5301 = vmatprep.mubr.msk.bf16.mxu1 %vm5736_vm4, %v7748_v30  ;;  %5363 = vmatprep.mubr.msk.bf16.mxu0 %vm5736_vm4, %v7748_v30 }
 0x285   : > { %v1507_v35 = vpop.f32.mrb[140].mxu0  ;;  %v1717_v32 = vpop.f32.mrb[84].mxu1 }
 0x286   : > { %v6497_v19 = vadd.f32 %v1507_v35, %v6380_v43  ;;  %v5081_v29 = vpop.f32.mrb[141].mxu0  ;;  %v5107_v42 = vpop.f32.mrb[85].mxu1  ;;  %v6500_v12 = vadd.f32 %v1717_v32, %v6209_v51  ;;  %v2644_v51 = vld [vmem:[#allocation2 + $0x69] sm:$0xff]  ;;  %v2645_v32 = vld [vmem:[#allocation2 + $0x71] sm:$0xff] }
 0x287   : > { %v1510_v24 = vpop.f32.mrb[142].mxu0  ;;  %v1720_v31 = vpop.f32.mrb[86].mxu1  ;;  %v2286_v35 = vld [vmem:[#allocation2 + $0xd0] sm:$0xff] }
 0x288   : > { %v6503_v6 = vadd.f32 %v1510_v24, %v6385_v10  ;;  %v5082_v28 = vpop.f32.mrb[143].mxu0  ;;  %v5108_v34 = vpop.f32.mrb[87].mxu1  ;;  %v6508_v54 = vadd.f32 %v1720_v31, %v6214_v41  ;;  %v2315_v47 = vpack.c.bf16 %v2286_v35, %v2285_v61 }
 0x289   : > { %v6523_v28 = vpack.c.bf16 %v2645_v32, %v2644_v51  ;;  %v2647_v51 = vld [vmem:[#allocation2 + $0x81] sm:$0xff] }
 0x28a   : > { %5302 = vmatmul.mubr.msk.bf16.gmra.mrb[192].mxu1 %vm813_vm6, %v2314_v15  ;;  %5364 = vmatmul.mubr.msk.bf16.gmra.mrb[248].mxu0 %vm813_vm6, %v6505_v57  ;;  %v2287_v15 = vld [vmem:[#allocation2 + $0xd8] sm:$0xff] }
 0x28b   : > { %5305 = vmatprep.mubr.msk.bf16.mxu1 %vm5736_vm4, %v7748_v30  ;;  %5367 = vmatprep.mubr.msk.bf16.mxu0 %vm5736_vm4, %v7748_v30 }
 0x28d   : > { %v1515_v43 = vpop.f32.mrb[144].mxu0  ;;  %v1725_v10 = vpop.f32.mrb[88].mxu1 }
 0x28e   : > { %v6518_v41 = vadd.f32 %v1515_v43, %v6397_v53  ;;  %v5085_v39 = vpop.f32.mrb[145].mxu0  ;;  %v5111_v5 = vpop.f32.mrb[89].mxu1  ;;  %v6521_v7 = vadd.f32 %v1725_v10, %v6229_v4  ;;  %v2288_v43 = vld [vmem:[#allocation2 + $0xe0] sm:$0xff] }
 0x28f   : > { %v1518_v29 = vpop.f32.mrb[146].mxu0  ;;  %v1728_v42 = vpop.f32.mrb[90].mxu1  ;;  %v2646_v5 = vld [vmem:[#allocation2 + $0x79] sm:$0xff] }
 0x290   : > { %v5086_v24 = vpop.f32.mrb[147].mxu0  ;;  %v5112_v31 = vpop.f32.mrb[91].mxu1  ;;  %v6526_v34 = vadd.f32 %v1728_v42, %v6234_v52 }
 0x291   : > { %v2316_v31 = vpack.c.bf16 %v2288_v43, %v2287_v15  ;;  %v2290_v15 = vld [vmem:[#allocation2 + $0xf0] sm:$0xff] }
 0x292   : > { %5306 = vmatmul.mubr.msk.bf16.gmra.mrb[196].mxu1 %vm813_vm6, %v2315_v47  ;;  %5368 = vmatmul.mubr.msk.bf16.gmra.mrb[252].mxu0 %vm813_vm6, %v6523_v28  ;;  %v6544_v47 = vpack.c.bf16 %v2647_v51, %v2646_v5  ;;  %v2649_v43 = vld [vmem:[#allocation2 + $0x91] sm:$0xff] }
 0x293   : > { %5309 = vmatprep.mubr.msk.bf16.mxu1 %vm5736_vm4, %v7748_v30  ;;  %5371 = vmatprep.mubr.msk.bf16.mxu0 %vm5736_vm4, %v7748_v30 }
 0x295   : > { %v1733_v4 = vpop.f32.mrb[92].mxu1  ;;  %v2056_v53 = vpop.f32.mrb[148].mxu0 }
 0x296   : > { %v6536_v10 = vadd.f32 %v2056_v53, %v6415_v18  ;;  %v5115_v52 = vpop.f32.mrb[93].mxu1  ;;  %v5177_v61 = vpop.f32.mrb[149].mxu0  ;;  %v6539_v35 = vadd.f32 %v1733_v4, %v6249_v20  ;;  %v7752_v20 = vmov 0.0   ;;  %v2648_v18 = vld [vmem:[#allocation2 + $0x89] sm:$0xff] }
 0x297   : > { %v1736_v32 = vpop.f32.mrb[94].mxu1  ;;  %v2059_v39 = vpop.f32.mrb[150].mxu0  ;;  %v2289_v53 = vld [vmem:[#allocation2 + $0xe8] sm:$0xff] }
 0x298   : > { %7750 = vst [vmem:[#allocation3_spill] sm:$0xff] %v6536_v10  ;;  %v6542_v29 = vadd.f32 %v2059_v39, %v6424_v63  ;;  %v5116_v42 = vpop.f32.mrb[95].mxu1  ;;  %v5178_v24 = vpop.f32.mrb[151].mxu0  ;;  %v6547_v30 = vadd.f32 %v1736_v32, %v6254_v1 }
 0x29a   : > { %7751 = vst [vmem:[#allocation4_spill] sm:$0xff] %v6542_v29  ;;  %5310 = vmatmul.mubr.msk.bf16.gmra.mrb[200].mxu1 %vm813_vm6, %v2316_v31  ;;  %5372 = vmatmul.mubr.msk.bf16.gmra.mrb[0].mxu0 %vm813_vm6, %v6544_v47  ;;  %v2317_v31 = vpack.c.bf16 %v2290_v15, %v2289_v53  ;;  %v6565_v29 = vpack.c.bf16 %v2649_v43, %v2648_v18  ;;  %v2651_v18 = vld [vmem:[#allocation2 + $0xa1] sm:$0xff] }
 0x29b   : > { %5313 = vmatprep.mubr.msk.bf16.mxu1 %vm5736_vm4, %v7752_v20  ;;  %5375 = vmatprep.mubr.msk.bf16.mxu0 %vm5736_vm4, %v7752_v20 }
 0x29d   : > { %v1741_v63 = vpop.f32.mrb[96].mxu1  ;;  %v2064_v4 = vpop.f32.mrb[152].mxu0 }
 0x29e   : > { %v6557_v1 = vadd.f32 %v2064_v4, %v6437_v55  ;;  %v5119_v51 = vpop.f32.mrb[97].mxu1  ;;  %v5181_v52 = vpop.f32.mrb[153].mxu0  ;;  %v6560_v61 = vadd.f32 %v1741_v63, %v6269_v40  ;;  %v2292_v63 = vld [vmem:[#allocation2 + $0x100] sm:$0xff] }
 0x29f   : > { %v1744_v32 = vpop.f32.mrb[98].mxu1  ;;  %v2067_v39 = vpop.f32.mrb[154].mxu0  ;;  %v2650_v52 = vld [vmem:[#allocation2 + $0x99] sm:$0xff] }
 0x2a0   : > { %v6563_v5 = vadd.f32 %v2067_v39, %v6445_v36  ;;  %v5120_v42 = vpop.f32.mrb[99].mxu1  ;;  %v5182_v24 = vpop.f32.mrb[155].mxu0  ;;  %v6568_v10 = vadd.f32 %v1744_v32, %v6274_v14  ;;  %v2291_v36 = vld [vmem:[#allocation2 + $0xf8] sm:$0xff] }
 0x2a1   : > { %v2318_v24 = vpack.c.bf16 %v2292_v63, %v2291_v36  ;;  %v2653_v36 = vld [vmem:[#allocation2 + $0xb1] sm:$0xff] }
 0x2a2   : > { %7753 = vst [vmem:[#allocation5_spill] sm:$0xff] %v6563_v5  ;;  %5314 = vmatmul.mubr.msk.bf16.gmra.mrb[204].mxu1 %vm813_vm6, %v2317_v31  ;;  %5376 = vmatmul.mubr.msk.bf16.gmra.mrb[4].mxu0 %vm813_vm6, %v6565_v29  ;;  %v6586_v31 = vpack.c.bf16 %v2651_v18, %v2650_v52 }
 0x2a3   : > { %5317 = vmatprep.mubr.msk.bf16.mxu1 %vm5736_vm4, %v7752_v20  ;;  %5379 = vmatprep.mubr.msk.bf16.mxu0 %vm5736_vm4, %v7752_v20 }
 0x2a5   : > { %v1749_v40 = vpop.f32.mrb[100].mxu1  ;;  %v2072_v55 = vpop.f32.mrb[156].mxu0 }
 0x2a6   : > { %v6578_v4 = vadd.f32 %v2072_v55, %v6458_v46  ;;  %v5123_v14 = vpop.f32.mrb[101].mxu1  ;;  %v5185_v53 = vpop.f32.mrb[157].mxu0  ;;  %v6581_v15 = vadd.f32 %v1749_v40, %v6291_v59  ;;  %v2652_v59 = vld [vmem:[#allocation2 + $0xa9] sm:$0xff] }
 0x2a7   : > { %v1752_v43 = vpop.f32.mrb[102].mxu1  ;;  %v2075_v51 = vpop.f32.mrb[158].mxu0  ;;  %v2293_v40 = vld [vmem:[#allocation2 + $0x108] sm:$0xff]  ;;  %v2294_v55 = vld [vmem:[#allocation2 + $0x110] sm:$0xff] }
 0x2a8   : > { %v6584_v32 = vadd.f32 %v2075_v51, %v6466_v13  ;;  %v5124_v39 = vpop.f32.mrb[103].mxu1  ;;  %v5186_v42 = vpop.f32.mrb[159].mxu0  ;;  %v6589_v5 = vadd.f32 %v1752_v43, %v6296_v27 }
 0x2a9   : > { %v2319_v42 = vpack.c.bf16 %v2294_v55, %v2293_v40 }
 0x2aa   : > { %7754 = vst [vmem:[#allocation6_spill] sm:$0xff] %v6584_v32  ;;  %5318 = vmatmul.mubr.msk.bf16.gmra.mrb[208].mxu1 %vm813_vm6, %v2318_v24  ;;  %5380 = vmatmul.mubr.msk.bf16.gmra.mrb[8].mxu0 %vm813_vm6, %v6586_v31  ;;  %v6607_v24 = vpack.c.bf16 %v2653_v36, %v2652_v59  ;;  %v2296_v59 = vld [vmem:[#allocation2 + $0x120] sm:$0xff] }
 0x2ab   : > { %5321 = vmatprep.mubr.msk.bf16.mxu1 %vm5736_vm4, %v7752_v20  ;;  %5383 = vmatprep.mubr.msk.bf16.mxu0 %vm5736_vm4, %v7752_v20 }
 0x2ad   : > { %v1757_v46 = vpop.f32.mrb[104].mxu1  ;;  %v2080_v13 = vpop.f32.mrb[160].mxu0 }
 0x2ae   : > { %v6599_v27 = vadd.f32 %v2080_v13, %v6479_v48  ;;  %v5127_v63 = vpop.f32.mrb[105].mxu1  ;;  %v5189_v18 = vpop.f32.mrb[161].mxu0  ;;  %v6602_v14 = vadd.f32 %v1757_v46, %v6313_v49  ;;  %v2654_v49 = vld [vmem:[#allocation2 + $0xb9] sm:$0xff]  ;;  %v2655_v13 = vld [vmem:[#allocation2 + $0xc1] sm:$0xff] }
 0x2af   : > { %v1760_v53 = vpop.f32.mrb[106].mxu1  ;;  %v2083_v43 = vpop.f32.mrb[162].mxu0  ;;  %v2295_v46 = vld [vmem:[#allocation2 + $0x118] sm:$0xff] }
 0x2b0   : > { %v6605_v51 = vadd.f32 %v2083_v43, %v6487_v62  ;;  %v5128_v52 = vpop.f32.mrb[107].mxu1  ;;  %v5190_v39 = vpop.f32.mrb[163].mxu0  ;;  %v6610_v32 = vadd.f32 %v1760_v53, %v6318_v26 }
 0x2b1   : > { %v2320_v39 = vpack.c.bf16 %v2296_v59, %v2295_v46 }
 0x2b2   : > { %7755 = vst [vmem:[#allocation7_spill] sm:$0xff] %v6605_v51  ;;  %5322 = vmatmul.mubr.msk.bf16.gmra.mrb[212].mxu1 %vm813_vm6, %v2319_v42  ;;  %5384 = vmatmul.mubr.msk.bf16.gmra.mrb[12].mxu0 %vm813_vm6, %v6607_v24  ;;  %v6628_v42 = vpack.c.bf16 %v2655_v13, %v2654_v49  ;;  %v2298_v49 = vld [vmem:[#allocation2 + $0x130] sm:$0xff] }
 0x2b3   : > { %5325 = vmatprep.mubr.msk.bf16.mxu1 %vm5736_vm4, %v7752_v20  ;;  %5387 = vmatprep.mubr.msk.bf16.mxu0 %vm5736_vm4, %v7752_v20 }
 0x2b5   : > { %v1765_v48 = vpop.f32.mrb[108].mxu1  ;;  %v2088_v62 = vpop.f32.mrb[164].mxu0 }
 0x2b6   : > { %v6620_v26 = vadd.f32 %v2088_v62, %v6500_v12  ;;  %v5131_v40 = vpop.f32.mrb[109].mxu1  ;;  %v5193_v55 = vpop.f32.mrb[165].mxu0  ;;  %v6623_v36 = vadd.f32 %v1765_v48, %v6332_v44  ;;  %v2656_v44 = vld [vmem:[#allocation2 + $0xc9] sm:$0xff]  ;;  %v2657_v62 = vld [vmem:[#allocation2 + $0xd1] sm:$0xff] }
 0x2b7   : > { %v1768_v63 = vpop.f32.mrb[110].mxu1  ;;  %v2091_v18 = vpop.f32.mrb[166].mxu0  ;;  %v2297_v48 = vld [vmem:[#allocation2 + $0x128] sm:$0xff] }
 0x2b8   : > { %v6626_v53 = vadd.f32 %v2091_v18, %v6508_v54  ;;  %v5132_v43 = vpop.f32.mrb[111].mxu1  ;;  %v5194_v52 = vpop.f32.mrb[167].mxu0  ;;  %v6631_v51 = vadd.f32 %v1768_v63, %v6337_v9 }
 0x2b9   : > { %v2321_v52 = vpack.c.bf16 %v2298_v49, %v2297_v48 }
 0x2ba   : > { %7756 = vst [vmem:[#allocation8_spill] sm:$0xff] %v6626_v53  ;;  %5326 = vmatmul.mubr.msk.bf16.gmra.mrb[216].mxu1 %vm813_vm6, %v2320_v39  ;;  %5388 = vmatmul.mubr.msk.bf16.gmra.mrb[16].mxu0 %vm813_vm6, %v6628_v42  ;;  %v6649_v39 = vpack.c.bf16 %v2657_v62, %v2656_v44  ;;  %v2300_v44 = vld [vmem:[#allocation2 + $0x140] sm:$0xff] }
 0x2bb   : > { %5329 = vmatprep.mubr.msk.bf16.mxu1 %vm5736_vm4, %v7752_v20  ;;  %5391 = vmatprep.mubr.msk.bf16.mxu0 %vm5736_vm4, %v7752_v20 }
 0x2bd   : > { %v1773_v12 = vpop.f32.mrb[112].mxu1  ;;  %v2096_v54 = vpop.f32.mrb[168].mxu0 }
 0x2be   : > { %v6641_v9 = vadd.f32 %v2096_v54, %v6521_v7  ;;  %v5135_v46 = vpop.f32.mrb[113].mxu1  ;;  %v5197_v59 = vpop.f32.mrb[169].mxu0  ;;  %v6644_v13 = vadd.f32 %v1773_v12, %v6349_v56  ;;  %v2658_v56 = vld [vmem:[#allocation2 + $0xd9] sm:$0xff]  ;;  %v2659_v54 = vld [vmem:[#allocation2 + $0xe1] sm:$0xff] }
 0x2bf   : > { %v1776_v40 = vpop.f32.mrb[114].mxu1  ;;  %v2099_v55 = vpop.f32.mrb[170].mxu0  ;;  %v2299_v12 = vld [vmem:[#allocation2 + $0x138] sm:$0xff] }
 0x2c0   : > { %v6647_v63 = vadd.f32 %v2099_v55, %v6526_v34  ;;  %v5136_v18 = vpop.f32.mrb[115].mxu1  ;;  %v5198_v43 = vpop.f32.mrb[171].mxu0  ;;  %v6652_v53 = vadd.f32 %v1776_v40, %v6354_v17 }
 0x2c1   : > { %v2322_v43 = vpack.c.bf16 %v2300_v44, %v2299_v12 }
 0x2c2   : > { %7757 = vst [vmem:[#allocation9_spill] sm:$0xff] %v6647_v63  ;;  %5330 = vmatmul.mubr.msk.bf16.gmra.mrb[220].mxu1 %vm813_vm6, %v2321_v52  ;;  %5392 = vmatmul.mubr.msk.bf16.gmra.mrb[20].mxu0 %vm813_vm6, %v6649_v39  ;;  %v6670_v52 = vpack.c.bf16 %v2659_v54, %v2658_v56  ;;  %v2302_v56 = vld [vmem:[#allocation2 + $0x150] sm:$0xff] }
 0x2c3   : > { %5333 = vmatprep.mubr.msk.bf16.mxu1 %vm5736_vm4, %v7752_v20  ;;  %5395 = vmatprep.mubr.msk.bf16.mxu0 %vm5736_vm4, %v7752_v20 }
 0x2c5   : > { %v1781_v7 = vpop.f32.mrb[116].mxu1  ;;  %v2104_v34 = vpop.f32.mrb[172].mxu0 }
 0x2c6   : > { %v6662_v17 = vadd.f32 %v2104_v34, %v6539_v35  ;;  %v5139_v48 = vpop.f32.mrb[117].mxu1  ;;  %v5201_v49 = vpop.f32.mrb[173].mxu0  ;;  %v6665_v62 = vadd.f32 %v1781_v7, %v6366_v8  ;;  %v2301_v7 = vld [vmem:[#allocation2 + $0x148] sm:$0xff]  ;;  %v2661_v34 = vld [vmem:[#allocation2 + $0xf1] sm:$0xff] }
 0x2c7   : > { %v1784_v46 = vpop.f32.mrb[118].mxu1  ;;  %v2107_v59 = vpop.f32.mrb[174].mxu0 }
 0x2c8   : > { %v6668_v40 = vadd.f32 %v2107_v59, %v6547_v30  ;;  %v5140_v55 = vpop.f32.mrb[119].mxu1  ;;  %v5202_v18 = vpop.f32.mrb[175].mxu0  ;;  %v6673_v63 = vadd.f32 %v1784_v46, %v6371_v45  ;;  %v2660_v30 = vld [vmem:[#allocation2 + $0xe9] sm:$0xff] }
 0x2c9   : > { %v2323_v18 = vpack.c.bf16 %v2302_v56, %v2301_v7 }
 0x2ca   : > { %7758 = vst [vmem:[#allocation10_spill] sm:$0xff] %v6668_v40  ;;  %5334 = vmatmul.mubr.msk.bf16.gmra.mrb[224].mxu1 %vm813_vm6, %v2322_v43  ;;  %5396 = vmatmul.mubr.msk.bf16.gmra.mrb[24].mxu0 %vm813_vm6, %v6670_v52  ;;  %v6691_v43 = vpack.c.bf16 %v2661_v34, %v2660_v30  ;;  %v2663_v30 = vld [vmem:[#allocation2 + $0x101] sm:$0xff] }
 0x2cb   : > { %5337 = vmatprep.mubr.msk.bf16.mxu1 %vm5736_vm4, %v7752_v20  ;;  %5399 = vmatprep.mubr.msk.bf16.mxu0 %vm5736_vm4, %v7752_v20 }
 0x2cd   : > { %v1789_v8 = vpop.f32.mrb[120].mxu1  ;;  %v2112_v35 = vpop.f32.mrb[176].mxu0 }
 0x2ce   : > { %v6683_v45 = vadd.f32 %v2112_v35, %v6560_v61  ;;  %v5143_v12 = vpop.f32.mrb[121].mxu1  ;;  %v5205_v44 = vpop.f32.mrb[177].mxu0  ;;  %v6686_v54 = vadd.f32 %v1789_v8, %v6383_v3  ;;  %v2303_v61 = vld [vmem:[#allocation2 + $0x158] sm:$0xff] }
 0x2cf   : > { %v1792_v48 = vpop.f32.mrb[122].mxu1  ;;  %v2115_v49 = vpop.f32.mrb[178].mxu0  ;;  %v2662_v8 = vld [vmem:[#allocation2 + $0xf9] sm:$0xff] }
 0x2d0   : > { %v6689_v46 = vadd.f32 %v2115_v49, %v6568_v10  ;;  %v5144_v59 = vpop.f32.mrb[123].mxu1  ;;  %v5206_v55 = vpop.f32.mrb[179].mxu0  ;;  %v6694_v40 = vadd.f32 %v1792_v48, %v6388_v16 }
 0x2d1   : > { %v2324_v59 = vpack.c.bf16 %v2303_v61, %v2303_v61  ;;  %v6712_v55 = vpack.c.bf16 %v2663_v30, %v2662_v8 }
 0x2d2   : > { %5338 = vmatmul.mubr.msk.bf16.gmra.mrb[228].mxu1 %vm813_vm6, %v2323_v18  ;;  %5400 = vmatmul.mubr.msk.bf16.gmra.mrb[28].mxu0 %vm813_vm6, %v6691_v43 }
 0x2d3   : > { %5341 = vmatprep.mubr.msk.bf16.mxu1 %vm5736_vm4, %v7752_v20  ;;  %5403 = vmatprep.mubr.msk.bf16.mxu0 %vm5736_vm4, %v7752_v20 }
 0x2d5   : > { %v1797_v3 = vpop.f32.mrb[124].mxu1  ;;  %v2120_v10 = vpop.f32.mrb[180].mxu0 }
 0x2d6   : > { %v6704_v35 = vadd.f32 %v2120_v10, %v6581_v15  ;;  %v5147_v16 = vpop.f32.mrb[125].mxu1  ;;  %v5209_v7 = vpop.f32.mrb[181].mxu0  ;;  %v6707_v56 = vadd.f32 %v1797_v3, %v6400_v60  ;;  %v2664_v15 = vld [vmem:[#allocation2 + $0x109] sm:$0xff]  ;;  %v2665_v3 = vld [vmem:[#allocation2 + $0x111] sm:$0xff] }
 0x2d7   : > { %v1800_v34 = vpop.f32.mrb[126].mxu1  ;;  %v2123_v12 = vpop.f32.mrb[182].mxu0 }
 0x2d8   : > { %v6710_v44 = vadd.f32 %v2123_v12, %v6589_v5  ;;  %v5148_v48 = vpop.f32.mrb[127].mxu1  ;;  %v5210_v49 = vpop.f32.mrb[183].mxu0  ;;  %v6715_v18 = vadd.f32 %v1800_v34, %v6403_v50  ;;  %v4617_v50 = vld [vmem:[%s7745_s2 + $0x20] sm:$0xf] }
 0x2d9   : > { %v6736_v49 = vpack.c.bf16 %v2665_v3, %v2664_v15 }
 0x2da   : > { %7759 = vst [vmem:[#allocation11_spill] sm:$0xff] %v6710_v44  ;;  %5342 = vmatmul.mubr.msk.bf16.gmra.mrb[232].mxu1 %vm813_vm6, %v2324_v59  ;;  %5404 = vmatmul.mubr.msk.bf16.gmra.mrb[32].mxu0 %vm813_vm6, %v6712_v55  ;;  %v3875_v59 = vsel %vm1051_vm3, %v4617_v50, 0 }
 0x2db   : > { %5407 = vmatprep.mubr.msk.bf16.mxu0 %vm5736_vm4, %v7752_v20  ;;  %5433 = vmatprep.mubr.msk.bf16.mxu1 %vm5736_vm4, %v7752_v20 }
 0x2dd   : > { %v1805_v60 = vpop.f32.mrb[128].mxu1  ;;  %v2128_v5 = vpop.f32.mrb[184].mxu0 }
 0x2de   : > { %v6728_v10 = vadd.f32 %v2128_v5, %v6602_v14  ;;  %v5151_v61 = vpop.f32.mrb[129].mxu1  ;;  %v5213_v8 = vpop.f32.mrb[185].mxu0  ;;  %v6731_v30 = vadd.f32 %v1805_v60, %v6412_v0  ;;  %v2666_v14 = vld [vmem:[#allocation2 + $0x119] sm:$0xff]  ;;  %v2667_v60 = vld [vmem:[#allocation2 + $0x121] sm:$0xff] }
 0x2df   : > { %v1808_v16 = vpop.f32.mrb[130].mxu1  ;;  %v2131_v7 = vpop.f32.mrb[186].mxu0 }
 0x2e0   : > { %v6734_v34 = vadd.f32 %v2131_v7, %v6610_v32  ;;  %v5152_v12 = vpop.f32.mrb[131].mxu1  ;;  %v5214_v48 = vpop.f32.mrb[187].mxu0  ;;  %v6740_v44 = vadd.f32 %v1808_v16, %v6421_v58  ;;  %v6759_v7 = vpack.c.bf16 %v2667_v60, %v2666_v14 }
 0x2e1   : > { %v2669_v48 = vld [vmem:[#allocation2 + $0x131] sm:$0xff] }
 0x2e2   : > { %5408 = vmatmul.mubr.msk.bf16.gmra.mrb[36].mxu0 %vm813_vm6, %v6736_v49  ;;  %5434 = vmatmul.mubr.msk.bf16.vlgmr.msra.gmra.mrb[236].mxu1 %vm813_vm6, %v6442_v33 }
 0x2e3   : > { %5604 = vmatpush3.bf16.msra.mxu1 %v3875_v59  ;;  %5411 = vmatprep.mubr.msk.bf16.mxu0 %vm5736_vm4, %v7752_v20 }
 0x2e4   : > { %5437 = vmatprep.mubr.msk.bf16.mxu1 %vm5736_vm4, %v7752_v20 }
 0x2e5   : > { %v1813_v0 = vpop.f32.mrb[132].mxu1  ;;  %v2136_v32 = vpop.f32.mrb[188].mxu0 }
 0x2e6   : > { %v6751_v58 = vadd.f32 %v2136_v32, %v6623_v36  ;;  %v5155_v5 = vpop.f32.mrb[133].mxu1  ;;  %v5217_v15 = vpop.f32.mrb[189].mxu0  ;;  %v6754_v3 = vadd.f32 %v1813_v0, %v6434_v2  ;;  %v2668_v36 = vld [vmem:[#allocation2 + $0x129] sm:$0xff] }
 0x2e7   : > { %v1816_v33 = vpop.f32.mrb[134].mxu1  ;;  %v2139_v50 = vpop.f32.mrb[190].mxu0 }
 0x2e8   : > { %v6757_v61 = vadd.f32 %v2139_v50, %v6631_v51  ;;  %v5156_v8 = vpop.f32.mrb[135].mxu1  ;;  %v5218_v16 = vpop.f32.mrb[191].mxu0  ;;  %v6762_v12 = vadd.f32 %v1816_v33, %v6440_v21  ;;  %v6781_v33 = vpack.c.bf16 %v2669_v48, %v2668_v36 }
 0x2e9   : > { %v2671_v8 = vld [vmem:[#allocation2 + $0x141] sm:$0xff] }
 0x2ea   : > { %5412 = vmatmul.mubr.msk.bf16.gmra.mrb[40].mxu0 %vm813_vm6, %v6759_v7  ;;  %5438 = vmatmul.mubr.msk.bf16.gmra.mrb[240].mxu1 %vm813_vm6, %v6463_v23 }
 0x2eb   : > { %5415 = vmatprep.mubr.msk.bf16.mxu0 %vm5736_vm4, %v7752_v20  ;;  %5441 = vmatprep.mubr.msk.bf16.mxu1 %vm5736_vm4, %v7752_v20 }
 0x2ed   : > { %v1821_v2 = vpop.f32.mrb[136].mxu1  ;;  %v2144_v51 = vpop.f32.mrb[192].mxu0 }
 0x2ee   : > { %v6773_v59 = vadd.f32 %v2144_v51, %v6644_v13  ;;  %v5159_v21 = vpop.f32.mrb[137].mxu1  ;;  %v5221_v0 = vpop.f32.mrb[193].mxu0  ;;  %v6776_v32 = vadd.f32 %v1821_v2, %v6455_v37  ;;  %v2670_v13 = vld [vmem:[#allocation2 + $0x139] sm:$0xff] }
 0x2ef   : > { %v1824_v14 = vpop.f32.mrb[138].mxu1  ;;  %v2147_v23 = vpop.f32.mrb[194].mxu0 }
 0x2f0   : > { %v6779_v60 = vadd.f32 %v2147_v23, %v6652_v53  ;;  %v5160_v5 = vpop.f32.mrb[139].mxu1  ;;  %v5222_v15 = vpop.f32.mrb[195].mxu0  ;;  %v6784_v50 = vadd.f32 %v1824_v14, %v6461_v25  ;;  %v6803_v14 = vpack.c.bf16 %v2671_v8, %v2670_v13 }
 0x2f1   : > { %v2673_v5 = vld [vmem:[#allocation2 + $0x151] sm:$0xff] }
 0x2f2   : > { %5416 = vmatmul.mubr.msk.bf16.gmra.mrb[44].mxu0 %vm813_vm6, %v6781_v33  ;;  %5442 = vmatmul.mubr.msk.bf16.gmra.mrb[244].mxu1 %vm813_vm6, %v6484_v38 }
 0x2f3   : > { %5419 = vmatprep.mubr.msk.bf16.mxu0 %vm5736_vm4, %v7752_v20  ;;  %5445 = vmatprep.mubr.msk.bf16.mxu1 %vm5736_vm4, %v7752_v20 }
 0x2f5   : > { %v1829_v37 = vpop.f32.mrb[140].mxu1  ;;  %v2152_v53 = vpop.f32.mrb[196].mxu0 }
 0x2f6   : > { %v6795_v16 = vadd.f32 %v2152_v53, %v6665_v62  ;;  %v5163_v25 = vpop.f32.mrb[141].mxu1  ;;  %v5225_v2 = vpop.f32.mrb[197].mxu0  ;;  %v6798_v51 = vadd.f32 %v1829_v37, %v6476_v22  ;;  %v2672_v62 = vld [vmem:[#allocation2 + $0x149] sm:$0xff] }
 0x2f7   : > { %v1832_v36 = vpop.f32.mrb[142].mxu1  ;;  %v2155_v38 = vpop.f32.mrb[198].mxu0 }
 0x2f8   : > { %v6801_v48 = vadd.f32 %v2155_v38, %v6673_v63  ;;  %v5164_v21 = vpop.f32.mrb[143].mxu1  ;;  %v5226_v0 = vpop.f32.mrb[199].mxu0  ;;  %v6806_v23 = vadd.f32 %v1832_v36, %v6482_v11  ;;  %v6825_v36 = vpack.c.bf16 %v2673_v5, %v2672_v62 }
 0x2fa   : > { %5420 = vmatmul.mubr.msk.bf16.gmra.mrb[48].mxu0 %vm813_vm6, %v6803_v14  ;;  %5446 = vmatmul.mubr.msk.bf16.gmra.mrb[248].mxu1 %vm813_vm6, %v6505_v57 }
 0x2fb   : > { %5423 = vmatprep.mubr.msk.bf16.mxu0 %vm5736_vm4, %v7752_v20  ;;  %5449 = vmatprep.mubr.msk.bf16.mxu1 %vm5736_vm4, %v7752_v20 }
 0x2fd   : > { %v1837_v22 = vpop.f32.mrb[144].mxu1  ;;  %v2160_v63 = vpop.f32.mrb[200].mxu0 }
 0x2fe   : > { %v6817_v15 = vadd.f32 %v2160_v63, %v6686_v54  ;;  %v5167_v11 = vpop.f32.mrb[145].mxu1  ;;  %v5229_v37 = vpop.f32.mrb[201].mxu0  ;;  %v6820_v53 = vadd.f32 %v1837_v22, %v6497_v19  ;;  %v6838_v54 = vld [vmem:[#allocation2 + $0x159] sm:$0xff] }
 0x2ff   : > { %v1840_v13 = vpop.f32.mrb[146].mxu1  ;;  %v2163_v57 = vpop.f32.mrb[202].mxu0  ;;  %v2695_v37 = vpack.c.bf16 %v6838_v54, %v6838_v54 }
 0x300   : > { %v6823_v8 = vadd.f32 %v2163_v57, %v6694_v40  ;;  %v5168_v25 = vpop.f32.mrb[147].mxu1  ;;  %v5230_v2 = vpop.f32.mrb[203].mxu0  ;;  %v6828_v38 = vadd.f32 %v1840_v13, %v6503_v6 }
 0x301   : > { %v7760_v25 = vld [vmem:[#allocation3_spill] sm:$0xff] }
 0x302   : > { %5424 = vmatmul.mubr.msk.bf16.gmra.mrb[52].mxu0 %vm813_vm6, %v6825_v36  ;;  %5450 = vmatmul.mubr.msk.bf16.gmra.mrb[252].mxu1 %vm813_vm6, %v6523_v28 }
 0x303   : > { %5427 = vmatprep.mubr.msk.bf16.mxu0 %vm5736_vm4, %v7752_v20  ;;  %5453 = vmatprep.mubr.msk.bf16.mxu1 %vm5736_vm4, %v7752_v20 }
 0x305   : > { %v1845_v19 = vpop.f32.mrb[148].mxu1  ;;  %v2168_v40 = vpop.f32.mrb[204].mxu0 }
 0x306   : > { %v6841_v21 = vadd.f32 %v1845_v19, %v6518_v41  ;;  %v6844_v6 = vadd.f32 %v2168_v40, %v6707_v56  ;;  %v5171_v0 = vpop.f32.mrb[149].mxu1  ;;  %v5233_v22 = vpop.f32.mrb[205].mxu0  ;;  %v3377_v41 = vld [vmem:[#allocation2 + $0x32] sm:$0xff]  ;;  %v3376_v56 = vld [vmem:[#allocation2 + $0x2a] sm:$0xff] }
 0x307   : > { %v1848_v63 = vpop.f32.mrb[150].mxu1  ;;  %v2171_v28 = vpop.f32.mrb[206].mxu0  ;;  %v3417_v22 = vpack.c.bf16 %v3377_v41, %v3376_v56 }
 0x308   : > { %v6847_v62 = vadd.f32 %v2171_v28, %v6715_v18  ;;  %v5172_v5 = vpop.f32.mrb[151].mxu1  ;;  %v5234_v11 = vpop.f32.mrb[207].mxu0  ;;  %v7761_v28 = vld [vmem:[#allocation4_spill] sm:$0xff] }
 0x30a   : > { %5428 = vmatmul.mubr.msk.bf16.gmra.mrb[56].mxu0 %vm813_vm6, %v2695_v37  ;;  %5454 = vmatmul.mubr.msk.bf16.gmra.mrb[0].mxu1 %vm813_vm6, %v6544_v47 }
 0x30b   : > { %5457 = vmatprep.mubr.msk.bf16.mxu1 %vm5736_vm4, %v7752_v20  ;;  %5519 = vmatprep.mubr.msk.bf16.mxu0 %vm5736_vm4, %v7752_v20 }
 0x30d   : > { %v2176_v18 = vpop.f32.mrb[208].mxu0  ;;  %v2427_v13 = vpop.f32.mrb[152].mxu1 }
 0x30e   : > { %v6859_v57 = vadd.f32 %v2176_v18, %v6731_v30  ;;  %v6862_v2 = vadd.f32 %v2427_v13, %v7760_v25  ;;  %v5237_v19 = vpop.f32.mrb[209].mxu0  ;;  %v5263_v40 = vpop.f32.mrb[153].mxu1 }
 0x30f   : > { %v2179_v0 = vpop.f32.mrb[210].mxu0  ;;  %v2430_v47 = vpop.f32.mrb[154].mxu1  ;;  %v3378_v40 = vld [vmem:[#allocation2 + $0x3a] sm:$0xff] }
 0x310   : > { %v6865_v63 = vadd.f32 %v2179_v0, %v6740_v44  ;;  %v6868_v5 = vadd.f32 %v2430_v47, %v7761_v28  ;;  %v5238_v11 = vpop.f32.mrb[211].mxu0  ;;  %v5264_v37 = vpop.f32.mrb[155].mxu1  ;;  %v3379_v44 = vld [vmem:[#allocation2 + $0x42] sm:$0xff] }
 0x311   : > { %v7762_v47 = vld [vmem:[#allocation5_spill] sm:$0xff]  ;;  %v3418_v37 = vpack.c.bf16 %v3379_v44, %v3378_v40  ;;  %v7763_v40 = vld [vmem:[#allocation6_spill] sm:$0xff] }
 0x312   : > { %5458 = vmatmul.mubr.msk.bf16.gmra.mrb[4].mxu1 %vm813_vm6, %v6565_v29  ;;  %5520 = vmatmul.mubr.msk.bf16.vlgmr.msra.gmra.mrb[60].mxu0 %vm813_vm6, %v3417_v22 }
 0x313   : > { %5461 = vmatprep.mubr.msk.bf16.mxu1 %vm5736_vm4, %v7752_v20  ;;  %5523 = vmatprep.mubr.msk.bf16.mxu0 %vm5736_vm4, %v7752_v20 }
 0x315   : > { %v2184_v30 = vpop.f32.mrb[212].mxu0  ;;  %v2435_v41 = vpop.f32.mrb[156].mxu1 }
 0x316   : > { %v6878_v56 = vadd.f32 %v2184_v30, %v6754_v3  ;;  %v6881_v18 = vadd.f32 %v2435_v41, %v6557_v1  ;;  %v5241_v13 = vpop.f32.mrb[213].mxu0  ;;  %v5267_v25 = vpop.f32.mrb[157].mxu1  ;;  %v3381_v30 = vld [vmem:[#allocation2 + $0x52] sm:$0xff] }
 0x317   : > { %v2187_v29 = vpop.f32.mrb[214].mxu0  ;;  %v2438_v19 = vpop.f32.mrb[158].mxu1 }
 0x318   : > { %v6884_v0 = vadd.f32 %v2187_v29, %v6762_v12  ;;  %v6887_v22 = vadd.f32 %v2438_v19, %v7762_v47  ;;  %v5242_v28 = vpop.f32.mrb[215].mxu0  ;;  %v5268_v11 = vpop.f32.mrb[159].mxu1  ;;  %v3380_v12 = vld [vmem:[#allocation2 + $0x4a] sm:$0xff] }
 0x31a   : > { %5462 = vmatmul.mubr.msk.bf16.gmra.mrb[8].mxu1 %vm813_vm6, %v6586_v31  ;;  %5524 = vmatmul.mubr.msk.bf16.gmra.mrb[64].mxu0 %vm813_vm6, %v3418_v37  ;;  %v3419_v37 = vpack.c.bf16 %v3381_v30, %v3380_v12 }
 0x31b   : > { %5465 = vmatprep.mubr.msk.bf16.mxu1 %vm5736_vm4, %v7752_v20  ;;  %5527 = vmatprep.mubr.msk.bf16.mxu0 %vm5736_vm4, %v7752_v20 }
 0x31d   : > { %v2192_v1 = vpop.f32.mrb[216].mxu0  ;;  %v2443_v3 = vpop.f32.mrb[160].mxu1 }
 0x31e   : > { %v6897_v41 = vadd.f32 %v2192_v1, %v6776_v32  ;;  %v6900_v44 = vadd.f32 %v2443_v3, %v6578_v4  ;;  %v5245_v13 = vpop.f32.mrb[217].mxu0  ;;  %v5271_v31 = vpop.f32.mrb[161].mxu1 }
 0x31f   : > { %v2195_v25 = vpop.f32.mrb[218].mxu0  ;;  %v2446_v29 = vpop.f32.mrb[162].mxu1  ;;  %v3382_v31 = vld [vmem:[#allocation2 + $0x5a] sm:$0xff] }
 0x320   : > { %v6903_v19 = vadd.f32 %v2195_v25, %v6784_v50  ;;  %v6906_v47 = vadd.f32 %v2446_v29, %v7763_v40  ;;  %v5246_v28 = vpop.f32.mrb[219].mxu0  ;;  %v5272_v11 = vpop.f32.mrb[163].mxu1  ;;  %v3383_v50 = vld [vmem:[#allocation2 + $0x62] sm:$0xff]  ;;  %v7764_v29 = vld [vmem:[#allocation7_spill] sm:$0xff] }
 0x322   : > { %5466 = vmatmul.mubr.msk.bf16.gmra.mrb[12].mxu1 %vm813_vm6, %v6607_v24  ;;  %5528 = vmatmul.mubr.msk.bf16.gmra.mrb[68].mxu0 %vm813_vm6, %v3419_v37  ;;  %v3420_v37 = vpack.c.bf16 %v3383_v50, %v3382_v31  ;;  %v7765_v31 = vld [vmem:[#allocation8_spill] sm:$0xff] }
 0x323   : > { %5469 = vmatprep.mubr.msk.bf16.mxu1 %vm5736_vm4, %v7752_v20  ;;  %5531 = vmatprep.mubr.msk.bf16.mxu0 %vm5736_vm4, %v7752_v20 }
 0x325   : > { %v2200_v4 = vpop.f32.mrb[220].mxu0  ;;  %v2451_v32 = vpop.f32.mrb[164].mxu1 }
 0x326   : > { %v6916_v1 = vadd.f32 %v2200_v4, %v6798_v51  ;;  %v6919_v3 = vadd.f32 %v2451_v32, %v6599_v27  ;;  %v5249_v12 = vpop.f32.mrb[221].mxu0  ;;  %v5275_v30 = vpop.f32.mrb[165].mxu1  ;;  %v3385_v4 = vld [vmem:[#allocation2 + $0x72] sm:$0xff] }
 0x327   : > { %v2203_v24 = vpop.f32.mrb[222].mxu0  ;;  %v2454_v13 = vpop.f32.mrb[166].mxu1 }
 0x328   : > { %v6922_v25 = vadd.f32 %v2203_v24, %v6806_v23  ;;  %v6925_v40 = vadd.f32 %v2454_v13, %v7764_v29  ;;  %v5250_v28 = vpop.f32.mrb[223].mxu0  ;;  %v5276_v11 = vpop.f32.mrb[167].mxu1  ;;  %v3384_v23 = vld [vmem:[#allocation2 + $0x6a] sm:$0xff] }
 0x32a   : > { %5470 = vmatmul.mubr.msk.bf16.gmra.mrb[16].mxu1 %vm813_vm6, %v6628_v42  ;;  %5532 = vmatmul.mubr.msk.bf16.gmra.mrb[72].mxu0 %vm813_vm6, %v3420_v37  ;;  %v3421_v37 = vpack.c.bf16 %v3385_v4, %v3384_v23 }
 0x32b   : > { %5473 = vmatprep.mubr.msk.bf16.mxu1 %vm5736_vm4, %v7752_v20  ;;  %5535 = vmatprep.mubr.msk.bf16.mxu0 %vm5736_vm4, %v7752_v20 }
 0x32d   : > { %v2208_v27 = vpop.f32.mrb[224].mxu0  ;;  %v2459_v51 = vpop.f32.mrb[168].mxu1 }
 0x32e   : > { %v6935_v32 = vadd.f32 %v2208_v27, %v6820_v53  ;;  %v6938_v50 = vadd.f32 %v2459_v51, %v6620_v26  ;;  %v5253_v12 = vpop.f32.mrb[225].mxu0  ;;  %v5279_v42 = vpop.f32.mrb[169].mxu1 }
 0x32f   : > { %v2211_v30 = vpop.f32.mrb[226].mxu0  ;;  %v2462_v24 = vpop.f32.mrb[170].mxu1  ;;  %v3386_v42 = vld [vmem:[#allocation2 + $0x7a] sm:$0xff] }
 0x330   : > { %v6941_v13 = vadd.f32 %v2211_v30, %v6828_v38  ;;  %v6944_v29 = vadd.f32 %v2462_v24, %v7765_v31  ;;  %v5254_v28 = vpop.f32.mrb[227].mxu0  ;;  %v5280_v11 = vpop.f32.mrb[171].mxu1  ;;  %v3387_v38 = vld [vmem:[#allocation2 + $0x82] sm:$0xff] }
 0x331   : > { %v7766_v30 = vld [vmem:[#allocation9_spill] sm:$0xff]  ;;  %v3422_v11 = vpack.c.bf16 %v3387_v38, %v3386_v42 }
 0x332   : > { %5474 = vmatmul.mubr.msk.bf16.gmra.mrb[20].mxu1 %vm813_vm6, %v6649_v39  ;;  %5536 = vmatmul.mubr.msk.bf16.gmra.mrb[76].mxu0 %vm813_vm6, %v3421_v37  ;;  %v3388_v37 = vld [vmem:[#allocation2 + $0x8a] sm:$0xff] }
 0x333   : > { %5477 = vmatprep.mubr.msk.bf16.mxu1 %vm5736_vm4, %v7752_v20  ;;  %5539 = vmatprep.mubr.msk.bf16.mxu0 %vm5736_vm4, %v7752_v20 }
 0x335   : > { %v2216_v26 = vpop.f32.mrb[228].mxu0  ;;  %v2467_v53 = vpop.f32.mrb[172].mxu1 }
 0x336   : > { %v6954_v27 = vadd.f32 %v2216_v26, %v6841_v21  ;;  %v6957_v51 = vadd.f32 %v2467_v53, %v6641_v9  ;;  %v5257_v23 = vpop.f32.mrb[229].mxu0  ;;  %v5283_v4 = vpop.f32.mrb[173].mxu1  ;;  %v3389_v26 = vld [vmem:[#allocation2 + $0x92] sm:$0xff] }
 0x337   : > { %v2219_v39 = vpop.f32.mrb[230].mxu0  ;;  %v2470_v12 = vpop.f32.mrb[174].mxu1 }
 0x338   : > { %v6960_v24 = vadd.f32 %v2470_v12, %v7766_v30  ;;  %v5258_v31 = vpop.f32.mrb[231].mxu0  ;;  %v5284_v28 = vpop.f32.mrb[175].mxu1  ;;  %v7767_v12 = vld [vmem:[#allocation10_spill] sm:$0xff] }
 0x33a   : > { %5478 = vmatmul.mubr.msk.bf16.gmra.mrb[24].mxu1 %vm813_vm6, %v6670_v52  ;;  %5540 = vmatmul.mubr.msk.bf16.gmra.mrb[80].mxu0 %vm813_vm6, %v3422_v11  ;;  %v3423_v11 = vpack.c.bf16 %v3389_v26, %v3388_v37 }
 0x33b   : > { %5481 = vmatprep.mubr.msk.bf16.mxu1 %vm5736_vm4, %v7752_v20  ;;  %5543 = vmatprep.mubr.msk.bf16.mxu0 %vm5736_vm4, %v7752_v20 }
 0x33d   : > { %v2475_v9 = vpop.f32.mrb[176].mxu1  ;;  %v2798_v21 = vpop.f32.mrb[232].mxu0 }
 0x33e   : > { %v6970_v53 = vadd.f32 %v2475_v9, %v6662_v17  ;;  %v6973_v38 = vadd.f32 %v2798_v21, %v6862_v2  ;;  %v5287_v23 = vpop.f32.mrb[177].mxu1  ;;  %v5349_v52 = vpop.f32.mrb[233].mxu0  ;;  %v3391_v9 = vld [vmem:[#allocation2 + $0xa2] sm:$0xff] }
 0x33f   : > { %v2478_v4 = vpop.f32.mrb[178].mxu1  ;;  %v2801_v39 = vpop.f32.mrb[234].mxu0  ;;  %v3390_v52 = vld [vmem:[#allocation2 + $0x9a] sm:$0xff] }
 0x340   : > { %v6976_v42 = vadd.f32 %v2478_v4, %v7767_v12  ;;  %v6979_v30 = vadd.f32 %v2801_v39, %v6868_v5  ;;  %v5288_v31 = vpop.f32.mrb[179].mxu1  ;;  %v5350_v28 = vpop.f32.mrb[235].mxu0 }
 0x341   : > { %v3424_v28 = vpack.c.bf16 %v3391_v9, %v3390_v52 }
 0x342   : > { %5482 = vmatmul.mubr.msk.bf16.gmra.mrb[28].mxu1 %vm813_vm6, %v6691_v43  ;;  %5544 = vmatmul.mubr.msk.bf16.gmra.mrb[84].mxu0 %vm813_vm6, %v3423_v11  ;;  %v3393_v11 = vld [vmem:[#allocation2 + $0xb2] sm:$0xff] }
 0x343   : > { %5485 = vmatprep.mubr.msk.bf16.mxu1 %vm5736_vm4, %v7752_v20  ;;  %5547 = vmatprep.mubr.msk.bf16.mxu0 %vm5736_vm4, %v7752_v20 }
 0x345   : > { %v2483_v17 = vpop.f32.mrb[180].mxu1  ;;  %v2806_v2 = vpop.f32.mrb[236].mxu0 }
 0x346   : > { %v6989_v5 = vadd.f32 %v2483_v17, %v6683_v45  ;;  %v6992_v21 = vadd.f32 %v2806_v2, %v6881_v18  ;;  %v5291_v37 = vpop.f32.mrb[181].mxu1  ;;  %v5353_v26 = vpop.f32.mrb[237].mxu0  ;;  %v3392_v18 = vld [vmem:[#allocation2 + $0xaa] sm:$0xff] }
 0x347   : > { %v2486_v43 = vpop.f32.mrb[182].mxu1  ;;  %v2809_v23 = vpop.f32.mrb[238].mxu0  ;;  %v7768_v26 = vld [vmem:[#allocation11_spill] sm:$0xff] }
 0x348   : > { %v6995_v4 = vadd.f32 %v2486_v43, %v6689_v46  ;;  %v6998_v39 = vadd.f32 %v2809_v23, %v6887_v22  ;;  %v5292_v12 = vpop.f32.mrb[183].mxu1  ;;  %v5354_v31 = vpop.f32.mrb[239].mxu0 }
 0x349   : > { %v3425_v31 = vpack.c.bf16 %v3393_v11, %v3392_v18 }
 0x34a   : > { %5486 = vmatmul.mubr.msk.bf16.gmra.mrb[32].mxu1 %vm813_vm6, %v6712_v55  ;;  %5548 = vmatmul.mubr.msk.bf16.gmra.mrb[88].mxu0 %vm813_vm6, %v3424_v28  ;;  %v3394_v28 = vld [vmem:[#allocation2 + $0xba] sm:$0xff] }
 0x34b   : > { %5489 = vmatprep.mubr.msk.bf16.mxu1 %vm5736_vm4, %v7752_v20  ;;  %5551 = vmatprep.mubr.msk.bf16.mxu0 %vm5736_vm4, %v7752_v20 }
 0x34d   : > { %v2491_v45 = vpop.f32.mrb[184].mxu1  ;;  %v2814_v46 = vpop.f32.mrb[240].mxu0 }
 0x34e   : > { %v7008_v22 = vadd.f32 %v2491_v45, %v6704_v35  ;;  %v7011_v17 = vadd.f32 %v2814_v46, %v6900_v44  ;;  %v5295_v2 = vpop.f32.mrb[185].mxu1  ;;  %v5357_v55 = vpop.f32.mrb[241].mxu0  ;;  %v3395_v45 = vld [vmem:[#allocation2 + $0xc2] sm:$0xff] }
 0x34f   : > { %v2494_v9 = vpop.f32.mrb[186].mxu1  ;;  %v2817_v37 = vpop.f32.mrb[242].mxu0 }
 0x350   : > { %v7014_v43 = vadd.f32 %v2494_v9, %v7768_v26  ;;  %v7017_v23 = vadd.f32 %v2817_v37, %v6906_v47  ;;  %v5296_v52 = vpop.f32.mrb[187].mxu1  ;;  %v5358_v12 = vpop.f32.mrb[243].mxu0 }
 0x351   : > { %v3426_v52 = vpack.c.bf16 %v3395_v45, %v3394_v28  ;;  %v3397_v12 = vld [vmem:[#allocation2 + $0xd2] sm:$0xff] }
 0x352   : > { %5490 = vmatmul.mubr.msk.bf16.gmra.mrb[36].mxu1 %vm813_vm6, %v6736_v49  ;;  %5552 = vmatmul.mubr.msk.bf16.gmra.mrb[92].mxu0 %vm813_vm6, %v3425_v31 }
 0x353   : > { %5493 = vmatprep.mubr.msk.bf16.mxu1 %vm5736_vm4, %v7752_v20  ;;  %5555 = vmatprep.mubr.msk.bf16.mxu0 %vm5736_vm4, %v7752_v20 }
 0x355   : > { %v2499_v35 = vpop.f32.mrb[188].mxu1  ;;  %v2822_v44 = vpop.f32.mrb[244].mxu0 }
 0x356   : > { %v7027_v47 = vadd.f32 %v2499_v35, %v6728_v10  ;;  %v7030_v46 = vadd.f32 %v2822_v44, %v6919_v3  ;;  %v5299_v18 = vpop.f32.mrb[189].mxu1  ;;  %v5361_v49 = vpop.f32.mrb[245].mxu0  ;;  %v3396_v3 = vld [vmem:[#allocation2 + $0xca] sm:$0xff] }
 0x357   : > { %v2502_v11 = vpop.f32.mrb[190].mxu1  ;;  %v2825_v2 = vpop.f32.mrb[246].mxu0 }
 0x358   : > { %v7033_v55 = vadd.f32 %v2502_v11, %v6734_v34  ;;  %v7036_v9 = vadd.f32 %v2825_v2, %v6925_v40  ;;  %v5300_v37 = vpop.f32.mrb[191].mxu1  ;;  %v5362_v26 = vpop.f32.mrb[247].mxu0  ;;  %v3427_v2 = vpack.c.bf16 %v3397_v12, %v3396_v3 }
 0x359   : > { %v3399_v37 = vld [vmem:[#allocation2 + $0xe2] sm:$0xff] }
 0x35a   : > { %5494 = vmatmul.mubr.msk.bf16.gmra.mrb[40].mxu1 %vm813_vm6, %v6759_v7  ;;  %5556 = vmatmul.mubr.msk.bf16.gmra.mrb[96].mxu0 %vm813_vm6, %v3426_v52 }
 0x35b   : > { %5497 = vmatprep.mubr.msk.bf16.mxu1 %vm5736_vm4, %v7752_v20  ;;  %5559 = vmatprep.mubr.msk.bf16.mxu0 %vm5736_vm4, %v7752_v20 }
 0x35d   : > { %v2507_v10 = vpop.f32.mrb[192].mxu1  ;;  %v2830_v34 = vpop.f32.mrb[248].mxu0 }
 0x35e   : > { %v7046_v40 = vadd.f32 %v2507_v10, %v6751_v58  ;;  %v7049_v31 = vadd.f32 %v2830_v34, %v6938_v50  ;;  %v5303_v35 = vpop.f32.mrb[193].mxu1  ;;  %v5365_v7 = vpop.f32.mrb[249].mxu0  ;;  %v3398_v50 = vld [vmem:[#allocation2 + $0xda] sm:$0xff] }
 0x35f   : > { %v2510_v44 = vpop.f32.mrb[194].mxu1  ;;  %v2833_v28 = vpop.f32.mrb[250].mxu0 }
 0x360   : > { %v7052_v45 = vadd.f32 %v2510_v44, %v6757_v61  ;;  %v7055_v18 = vadd.f32 %v2833_v28, %v6944_v29  ;;  %v5304_v49 = vpop.f32.mrb[195].mxu1  ;;  %v5366_v11 = vpop.f32.mrb[251].mxu0  ;;  %v3428_v44 = vpack.c.bf16 %v3399_v37, %v3398_v50  ;;  %v3401_v28 = vld [vmem:[#allocation2 + $0xf2] sm:$0xff] }
 0x362   : > { %5498 = vmatmul.mubr.msk.bf16.gmra.mrb[44].mxu1 %vm813_vm6, %v6781_v33  ;;  %5560 = vmatmul.mubr.msk.bf16.gmra.mrb[100].mxu0 %vm813_vm6, %v3427_v2 }
 0x363   : > { %5501 = vmatprep.mubr.msk.bf16.mxu1 %vm5736_vm4, %v7752_v20  ;;  %5563 = vmatprep.mubr.msk.bf16.mxu0 %vm5736_vm4, %v7752_v20 }
 0x365   : > { %v2515_v58 = vpop.f32.mrb[196].mxu1  ;;  %v2838_v61 = vpop.f32.mrb[252].mxu0 }
 0x366   : > { %v7065_v29 = vadd.f32 %v2515_v58, %v6773_v59  ;;  %v7068_v26 = vadd.f32 %v2838_v61, %v6957_v51  ;;  %v5307_v52 = vpop.f32.mrb[197].mxu1  ;;  %v5369_v33 = vpop.f32.mrb[253].mxu0  ;;  %v3400_v51 = vld [vmem:[#allocation2 + $0xea] sm:$0xff] }
 0x367   : > { %v2518_v10 = vpop.f32.mrb[198].mxu1  ;;  %v2841_v34 = vpop.f32.mrb[254].mxu0  ;;  %v3429_v33 = vpack.c.bf16 %v3401_v28, %v3400_v51 }
 0x368   : > { %v7071_v3 = vadd.f32 %v2518_v10, %v6779_v60  ;;  %v7074_v12 = vadd.f32 %v2841_v34, %v6960_v24  ;;  %v5308_v35 = vpop.f32.mrb[199].mxu1  ;;  %v5370_v7 = vpop.f32.mrb[255].mxu0  ;;  %v3402_v10 = vld [vmem:[#allocation2 + $0xfa] sm:$0xff] }
 0x36a   : > { %5502 = vmatmul.mubr.msk.bf16.gmra.mrb[48].mxu1 %vm813_vm6, %v6803_v14  ;;  %5564 = vmatmul.mubr.msk.bf16.gmra.mrb[104].mxu0 %vm813_vm6, %v3428_v44 }
 0x36b   : > { %5505 = vmatprep.mubr.msk.bf16.mxu1 %vm5736_vm4, %v7752_v20  ;;  %5567 = vmatprep.mubr.msk.bf16.mxu0 %vm5736_vm4, %v7752_v20 }
 0x36d   : > { %v2523_v59 = vpop.f32.mrb[200].mxu1  ;;  %v2846_v60 = vpop.f32.mrb[0].mxu0 }
 0x36e   : > { %v7084_v24 = vadd.f32 %v2523_v59, %v6795_v16  ;;  %v7087_v49 = vadd.f32 %v2846_v60, %v6970_v53  ;;  %v5311_v11 = vpop.f32.mrb[201].mxu1  ;;  %v5373_v14 = vpop.f32.mrb[1].mxu0  ;;  %v3044_v53 = vld [vmem:[#allocation2 + $0x161] sm:$0xff] }
 0x36f   : > { %v2526_v2 = vpop.f32.mrb[202].mxu1  ;;  %v2849_v58 = vpop.f32.mrb[2].mxu0  ;;  %v3065_v14 = vpack.c.bf16 %v3044_v53, %v6838_v54 }
 0x370   : > { %v7090_v61 = vadd.f32 %v2526_v2, %v6801_v48  ;;  %v7093_v50 = vadd.f32 %v2849_v58, %v6976_v42  ;;  %v5312_v37 = vpop.f32.mrb[203].mxu1  ;;  %v5374_v52 = vpop.f32.mrb[3].mxu0  ;;  %v3403_v42 = vld [vmem:[#allocation2 + $0x102] sm:$0xff]  ;;  %v3405_v58 = vld [vmem:[#allocation2 + $0x112] sm:$0xff] }
 0x371   : > { %v3430_v2 = vpack.c.bf16 %v3403_v42, %v3402_v10 }
 0x372   : > { %5506 = vmatmul.mubr.msk.bf16.gmra.mrb[52].mxu1 %vm813_vm6, %v6825_v36  ;;  %5568 = vmatmul.mubr.msk.bf16.gmra.mrb[108].mxu0 %vm813_vm6, %v3429_v33 }
 0x373   : > { %5509 = vmatprep.mubr.msk.bf16.mxu1 %vm5736_vm4, %v7752_v20  ;;  %5571 = vmatprep.mubr.msk.bf16.mxu0 %vm5736_vm4, %v7752_v20 }
 0x375   : > { %v2531_v16 = vpop.f32.mrb[204].mxu1  ;;  %v2854_v48 = vpop.f32.mrb[4].mxu0 }
 0x376   : > { %v7103_v34 = vadd.f32 %v2531_v16, %v6817_v15  ;;  %v7106_v35 = vadd.f32 %v2854_v48, %v6989_v5  ;;  %v5315_v36 = vpop.f32.mrb[205].mxu1  ;;  %v5377_v7 = vpop.f32.mrb[5].mxu0  ;;  %v3045_v5 = vld [vmem:[#allocation2 + $0x169] sm:$0xff] }
 0x377   : > { %v2534_v44 = vpop.f32.mrb[206].mxu1  ;;  %v2857_v59 = vpop.f32.mrb[6].mxu0  ;;  %v3066_v7 = vpack.c.bf16 %v3045_v5, %v3045_v5 }
 0x378   : > { %v7109_v60 = vadd.f32 %v2534_v44, %v6823_v8  ;;  %v7112_v51 = vadd.f32 %v2857_v59, %v6995_v4  ;;  %v5316_v28 = vpop.f32.mrb[207].mxu1  ;;  %v5378_v11 = vpop.f32.mrb[7].mxu0  ;;  %v3404_v4 = vld [vmem:[#allocation2 + $0x10a] sm:$0xff] }
 0x379   : > { %v3431_v44 = vpack.c.bf16 %v3405_v58, %v3404_v4  ;;  %v3407_v28 = vld [vmem:[#allocation2 + $0x122] sm:$0xff] }
 0x37a   : > { %5510 = vmatmul.mubr.msk.bf16.gmra.mrb[56].mxu1 %vm813_vm6, %v3065_v14  ;;  %5572 = vmatmul.mubr.msk.bf16.gmra.mrb[112].mxu0 %vm813_vm6, %v3430_v2 }
 0x37b   : > { %5513 = vmatprep.mubr.msk.bf16.mxu1 %vm5736_vm4, %v7752_v20  ;;  %5575 = vmatprep.mubr.msk.bf16.mxu0 %vm5736_vm4, %v7752_v20 }
 0x37d   : > { %v2539_v15 = vpop.f32.mrb[208].mxu1  ;;  %v2862_v8 = vpop.f32.mrb[8].mxu0 }
 0x37e   : > { %v7122_v37 = vadd.f32 %v2539_v15, %v6844_v6  ;;  %v7125_v54 = vadd.f32 %v2862_v8, %v7008_v22  ;;  %v5319_v52 = vpop.f32.mrb[209].mxu1  ;;  %v5381_v33 = vpop.f32.mrb[9].mxu0  ;;  %v3748_v6 = vld [vmem:[#allocation2 + $0x33] sm:$0xff] }
 0x37f   : > { %v2542_v16 = vpop.f32.mrb[210].mxu1  ;;  %v2865_v48 = vpop.f32.mrb[10].mxu0 }
 0x380   : > { %v7128_v53 = vadd.f32 %v2542_v16, %v6847_v62  ;;  %v7131_v10 = vadd.f32 %v2865_v48, %v7014_v43  ;;  %v5320_v42 = vpop.f32.mrb[211].mxu1  ;;  %v5382_v36 = vpop.f32.mrb[11].mxu0  ;;  %v3747_v62 = vld [vmem:[#allocation2 + $0x2b] sm:$0xff]  ;;  %v3406_v43 = vld [vmem:[#allocation2 + $0x11a] sm:$0xff] }
 0x381   : > { %v3788_v4 = vpack.c.bf16 %v3748_v6, %v3747_v62  ;;  %v3432_v48 = vpack.c.bf16 %v3407_v28, %v3406_v43  ;;  %v3409_v42 = vld [vmem:[#allocation2 + $0x132] sm:$0xff]  ;;  %v3750_v36 = vld [vmem:[#allocation2 + $0x43] sm:$0xff] }
 0x382   : > { %5514 = vmatmul.mubr.msk.bf16.gmra.mrb[60].mxu1 %vm813_vm6, %v3066_v7  ;;  %5576 = vmatmul.mubr.msk.bf16.gmra.mrb[116].mxu0 %vm813_vm6, %v3431_v44 }
 0x383   : > { %5579 = vmatprep.mubr.msk.bf16.mxu0 %vm5736_vm4, %v7752_v20  ;;  %5605 = vmatprep.mubr.msk.bf16.mxu1 %vm5736_vm4, %v7752_v20 }
 0x385   : > { %v2547_v22 = vpop.f32.mrb[212].mxu1  ;;  %v2870_v59 = vpop.f32.mrb[12].mxu0 }
 0x386   : > { %v7140_v11 = vadd.f32 %v2547_v22, %v6859_v57  ;;  %v7143_v14 = vadd.f32 %v2870_v59, %v7027_v47  ;;  %v5323_v2 = vpop.f32.mrb[213].mxu1  ;;  %v5385_v15 = vpop.f32.mrb[13].mxu0  ;;  %v3749_v59 = vld [vmem:[#allocation2 + $0x3b] sm:$0xff] }
 0x387   : > { %v2550_v8 = vpop.f32.mrb[214].mxu1  ;;  %v2873_v5 = vpop.f32.mrb[14].mxu0 }
 0x388   : > { %v7146_v58 = vadd.f32 %v2550_v8, %v6865_v63  ;;  %v7149_v52 = vadd.f32 %v2873_v5, %v7033_v55  ;;  %v5324_v33 = vpop.f32.mrb[215].mxu1  ;;  %v5386_v16 = vpop.f32.mrb[15].mxu0  ;;  %v3408_v63 = vld [vmem:[#allocation2 + $0x12a] sm:$0xff]  ;;  %v3789_v5 = vpack.c.bf16 %v3750_v36, %v3749_v59 }
 0x389   : > { %v3433_v8 = vpack.c.bf16 %v3409_v42, %v3408_v63  ;;  %v3752_v33 = vld [vmem:[#allocation2 + $0x53] sm:$0xff] }
 0x38a   : > { %5580 = vmatmul.mubr.msk.bf16.gmra.mrb[120].mxu0 %vm813_vm6, %v3432_v48  ;;  %5606 = vmatmul.mubr.msk.bf16.vlgmr.msra.gmra.mrb[64].mxu1 %vm813_vm6, %v3788_v4  ;;  %v3411_v4 = vld [vmem:[#allocation2 + $0x142] sm:$0xff] }
 0x38b   : > { %5583 = vmatprep.mubr.msk.bf16.mxu0 %vm5736_vm4, %v7752_v20  ;;  %5609 = vmatprep.mubr.msk.bf16.mxu1 %vm5736_vm4, %v7752_v20 }
 0x38d   : > { %v2555_v57 = vpop.f32.mrb[216].mxu1  ;;  %v2878_v47 = vpop.f32.mrb[16].mxu0 }
 0x38e   : > { %v7158_v55 = vadd.f32 %v2555_v57, %v6878_v56  ;;  %v7161_v7 = vadd.f32 %v2878_v47, %v7046_v40  ;;  %v5327_v44 = vpop.f32.mrb[217].mxu1  ;;  %v5389_v6 = vpop.f32.mrb[17].mxu0  ;;  %v3410_v56 = vld [vmem:[#allocation2 + $0x13a] sm:$0xff] }
 0x38f   : > { %v2558_v62 = vpop.f32.mrb[218].mxu1  ;;  %v2881_v22 = vpop.f32.mrb[18].mxu0 }
 0x390   : > { %v7164_v43 = vadd.f32 %v2558_v62, %v6884_v0  ;;  %v7167_v28 = vadd.f32 %v2881_v22, %v7052_v45  ;;  %v5328_v2 = vpop.f32.mrb[219].mxu1  ;;  %v5390_v15 = vpop.f32.mrb[19].mxu0  ;;  %v3751_v45 = vld [vmem:[#allocation2 + $0x4b] sm:$0xff]  ;;  %v3434_v22 = vpack.c.bf16 %v3411_v4, %v3410_v56  ;;  %v3753_v4 = vld [vmem:[#allocation2 + $0x5b] sm:$0xff] }
 0x391   : > { %v3790_v59 = vpack.c.bf16 %v3752_v33, %v3751_v45  ;;  %v3413_v2 = vld [vmem:[#allocation2 + $0x152] sm:$0xff] }
 0x392   : > { %5584 = vmatmul.mubr.msk.bf16.gmra.mrb[124].mxu0 %vm813_vm6, %v3433_v8  ;;  %5610 = vmatmul.mubr.msk.bf16.gmra.mrb[68].mxu1 %vm813_vm6, %v3789_v5 }
 0x393   : > { %5587 = vmatprep.mubr.msk.bf16.mxu0 %vm5736_vm4, %v7752_v20  ;;  %5613 = vmatprep.mubr.msk.bf16.mxu1 %vm5736_vm4, %v7752_v20 }
 0x395   : > { %v2563_v0 = vpop.f32.mrb[220].mxu1  ;;  %v2886_v40 = vpop.f32.mrb[20].mxu0 }
 0x396   : > { %v7176_v16 = vadd.f32 %v2563_v0, %v6897_v41  ;;  %v7179_v48 = vadd.f32 %v2886_v40, %v7065_v29  ;;  %v5331_v57 = vpop.f32.mrb[221].mxu1  ;;  %v5393_v47 = vpop.f32.mrb[21].mxu0  ;;  %v3412_v29 = vld [vmem:[#allocation2 + $0x14a] sm:$0xff] }
 0x397   : > { %v2566_v63 = vpop.f32.mrb[222].mxu1  ;;  %v2889_v42 = vpop.f32.mrb[22].mxu0 }
 0x398   : > { %v7182_v36 = vadd.f32 %v2566_v63, %v6903_v19  ;;  %v7185_v44 = vadd.f32 %v2889_v42, %v7071_v3  ;;  %v5332_v6 = vpop.f32.mrb[223].mxu1  ;;  %v5394_v62 = vpop.f32.mrb[23].mxu0  ;;  %v3754_v3 = vld [vmem:[#allocation2 + $0x63] sm:$0xff]  ;;  %v3435_v63 = vpack.c.bf16 %v3413_v2, %v3412_v29 }
 0x399   : > { %v3791_v42 = vpack.c.bf16 %v3754_v3, %v3753_v4  ;;  %v3415_v6 = vld [vmem:[#allocation2 + $0x162] sm:$0xff]  ;;  %v3756_v62 = vld [vmem:[#allocation2 + $0x73] sm:$0xff] }
 0x39a   : > { %5588 = vmatmul.mubr.msk.bf16.gmra.mrb[128].mxu0 %vm813_vm6, %v3434_v22  ;;  %5614 = vmatmul.mubr.msk.bf16.gmra.mrb[72].mxu1 %vm813_vm6, %v3790_v59 }
 0x39b   : > { %5591 = vmatprep.mubr.msk.bf16.mxu0 %vm5736_vm4, %v7752_v20  ;;  %5617 = vmatprep.mubr.msk.bf16.mxu1 %vm5736_vm4, %v7752_v20 }
 0x39d   : > { %v2571_v41 = vpop.f32.mrb[224].mxu1  ;;  %v2894_v19 = vpop.f32.mrb[24].mxu0 }
 0x39e   : > { %v7194_v15 = vadd.f32 %v2571_v41, %v6916_v1  ;;  %v7197_v8 = vadd.f32 %v2894_v19, %v7084_v24  ;;  %v5335_v5 = vpop.f32.mrb[225].mxu1  ;;  %v5397_v56 = vpop.f32.mrb[25].mxu0  ;;  %v3414_v1 = vld [vmem:[#allocation2 + $0x15a] sm:$0xff] }
 0x39f   : > { %v2574_v0 = vpop.f32.mrb[226].mxu1  ;;  %v2897_v40 = vpop.f32.mrb[26].mxu0 }
 0x3a0   : > { %v7200_v45 = vadd.f32 %v2574_v0, %v6922_v25  ;;  %v7203_v33 = vadd.f32 %v2897_v40, %v7090_v61  ;;  %v5336_v57 = vpop.f32.mrb[227].mxu1  ;;  %v5398_v47 = vpop.f32.mrb[27].mxu0  ;;  %v3755_v61 = vld [vmem:[#allocation2 + $0x6b] sm:$0xff]  ;;  %v3436_v40 = vpack.c.bf16 %v3415_v6, %v3414_v1 }
 0x3a1   : > { %v3792_v4 = vpack.c.bf16 %v3756_v62, %v3755_v61  ;;  %v3758_v57 = vld [vmem:[#allocation2 + $0x83] sm:$0xff] }
 0x3a2   : > { %5592 = vmatmul.mubr.msk.bf16.gmra.mrb[132].mxu0 %vm813_vm6, %v3435_v63  ;;  %5618 = vmatmul.mubr.msk.bf16.gmra.mrb[76].mxu1 %vm813_vm6, %v3791_v42 }
 0x3a3   : > { %5595 = vmatprep.mubr.msk.bf16.mxu0 %vm5736_vm4, %v7752_v20  ;;  %5621 = vmatprep.mubr.msk.bf16.mxu1 %vm5736_vm4, %v7752_v20 }
 0x3a5   : > { %v2579_v25 = vpop.f32.mrb[228].mxu1  ;;  %v2902_v24 = vpop.f32.mrb[28].mxu0 }
 0x3a6   : > { %v7212_v22 = vadd.f32 %v2579_v25, %v6935_v32  ;;  %v7215_v59 = vadd.f32 %v2902_v24, %v7103_v34  ;;  %v5339_v41 = vpop.f32.mrb[229].mxu1  ;;  %v5401_v19 = vpop.f32.mrb[29].mxu0  ;;  %v3416_v34 = vld [vmem:[#allocation2 + $0x16a] sm:$0xff]  ;;  %v3757_v24 = vld [vmem:[#allocation2 + $0x7b] sm:$0xff] }
 0x3a7   : > { %v2582_v29 = vpop.f32.mrb[230].mxu1  ;;  %v2905_v2 = vpop.f32.mrb[30].mxu0  ;;  %v3437_v41 = vpack.c.bf16 %v3416_v34, %v3416_v34  ;;  %v3793_v19 = vpack.c.bf16 %v3758_v57, %v3757_v24 }
 0x3a8   : > { %v7218_v3 = vadd.f32 %v2582_v29, %v6941_v13  ;;  %v7221_v5 = vadd.f32 %v2905_v2, %v7109_v60  ;;  %v5340_v56 = vpop.f32.mrb[231].mxu1  ;;  %v5402_v0 = vpop.f32.mrb[31].mxu0  ;;  %v3759_v29 = vld [vmem:[#allocation2 + $0x8b] sm:$0xff]  ;;  %v3760_v2 = vld [vmem:[#allocation2 + $0x93] sm:$0xff] }
 0x3aa   : > { %5596 = vmatmul.mubr.msk.bf16.gmra.mrb[136].mxu0 %vm813_vm6, %v3436_v40  ;;  %5622 = vmatmul.mubr.msk.bf16.gmra.mrb[80].mxu1 %vm813_vm6, %v3792_v4 }
 0x3ab   : > { %5599 = vmatprep.mubr.msk.bf16.mxu0 %vm5736_vm4, %v7752_v20  ;;  %5625 = vmatprep.mubr.msk.bf16.mxu1 %vm5736_vm4, %v7752_v20 }
 0x3ad   : > { %v2587_v32 = vpop.f32.mrb[232].mxu1  ;;  %v2910_v13 = vpop.f32.mrb[32].mxu0 }
 0x3ae   : > { %v7230_v60 = vadd.f32 %v2587_v32, %v6954_v27  ;;  %v7233_v47 = vadd.f32 %v2910_v13, %v7122_v37  ;;  %v5343_v63 = vpop.f32.mrb[233].mxu1  ;;  %v5405_v42 = vpop.f32.mrb[33].mxu0 }
 0x3af   : > { %v2590_v1 = vpop.f32.mrb[234].mxu1  ;;  %v2913_v25 = vpop.f32.mrb[34].mxu0  ;;  %v3794_v42 = vpack.c.bf16 %v3760_v2, %v3759_v29 }
 0x3b0   : > { %v7236_v6 = vadd.f32 %v2913_v25, %v7128_v53  ;;  %v5344_v61 = vpop.f32.mrb[235].mxu1  ;;  %v5406_v62 = vpop.f32.mrb[35].mxu0  ;;  %v3762_v1 = vld [vmem:[#allocation2 + $0xa3] sm:$0xff] }
 0x3b2   : > { %5600 = vmatmul.mubr.msk.bf16.gmra.mrb[140].mxu0 %vm813_vm6, %v3437_v41  ;;  %5626 = vmatmul.mubr.msk.bf16.gmra.mrb[84].mxu1 %vm813_vm6, %v3793_v19  ;;  %v3761_v41 = vld [vmem:[#allocation2 + $0x9b] sm:$0xff] }
 0x3b3   : > { %5629 = vmatprep.mubr.msk.bf16.mxu1 %vm5736_vm4, %v7752_v20  ;;  %v3795_v2 = vpack.c.bf16 %v3762_v1, %v3761_v41 }
 0x3b5   : > { %v2918_v27 = vpop.f32.mrb[36].mxu0  ;;  %v3169_v37 = vpop.f32.mrb[236].mxu1 }
 0x3b6   : > { %v7243_v56 = vadd.f32 %v2918_v27, %v7140_v11  ;;  %v7246_v53 = vadd.f32 %v3169_v37, %v6973_v38  ;;  %v5409_v0 = vpop.f32.mrb[37].mxu0  ;;  %v5435_v40 = vpop.f32.mrb[237].mxu1 }
 0x3b7   : > { %v2921_v4 = vpop.f32.mrb[38].mxu0  ;;  %v3172_v32 = vpop.f32.mrb[238].mxu1  ;;  %v3763_v0 = vld [vmem:[#allocation2 + $0xab] sm:$0xff]  ;;  %v3764_v40 = vld [vmem:[#allocation2 + $0xb3] sm:$0xff] }
 0x3b8   : > { %v7249_v13 = vadd.f32 %v2921_v4, %v7146_v58  ;;  %v7252_v34 = vadd.f32 %v3172_v32, %v6979_v30  ;;  %v5410_v57 = vpop.f32.mrb[39].mxu0  ;;  %v5436_v63 = vpop.f32.mrb[239].mxu1 }
 0x3ba   : > { %5630 = vmatmul.mubr.msk.bf16.gmra.mrb[88].mxu1 %vm813_vm6, %v3794_v42 }
 0x3bb   : > { %5633 = vmatprep.mubr.msk.bf16.mxu1 %vm5736_vm4, %v7752_v20 }
 0x3bd   : > { %v2926_v38 = vpop.f32.mrb[40].mxu0  ;;  %v3177_v11 = vpop.f32.mrb[240].mxu1 }
 0x3be   : > { %v7258_v25 = vadd.f32 %v2926_v38, %v7158_v55  ;;  %v7261_v58 = vadd.f32 %v3177_v11, %v6992_v21  ;;  %v5413_v24 = vpop.f32.mrb[41].mxu0  ;;  %v5439_v30 = vpop.f32.mrb[241].mxu1 }
 0x3bf   : > { %v2929_v61 = vpop.f32.mrb[42].mxu0  ;;  %v3180_v62 = vpop.f32.mrb[242].mxu1  ;;  %v3796_v24 = vpack.c.bf16 %v3764_v40, %v3763_v0  ;;  %v3765_v30 = vld [vmem:[#allocation2 + $0xbb] sm:$0xff] }
 0x3c0   : > { %v7264_v19 = vadd.f32 %v2929_v61, %v7164_v43  ;;  %v7267_v27 = vadd.f32 %v3180_v62, %v6998_v39  ;;  %v5414_v37 = vpop.f32.mrb[43].mxu0  ;;  %v5440_v29 = vpop.f32.mrb[243].mxu1  ;;  %v3766_v61 = vld [vmem:[#allocation2 + $0xc3] sm:$0xff] }
 0x3c1   : > { %v3797_v40 = vpack.c.bf16 %v3766_v61, %v3765_v30 }
 0x3c2   : > { %5634 = vmatmul.mubr.msk.bf16.gmra.mrb[92].mxu1 %vm813_vm6, %v3795_v2 }
 0x3c3   : > { %5637 = vmatprep.mubr.msk.bf16.mxu1 %vm5736_vm4, %v7752_v20 }
 0x3c5   : > { %v2934_v21 = vpop.f32.mrb[44].mxu0  ;;  %v3185_v55 = vpop.f32.mrb[244].mxu1 }
 0x3c6   : > { %v7273_v4 = vadd.f32 %v2934_v21, %v7176_v16  ;;  %v7276_v43 = vadd.f32 %v3185_v55, %v7011_v17  ;;  %v5417_v39 = vpop.f32.mrb[45].mxu0  ;;  %v5443_v32 = vpop.f32.mrb[245].mxu1 }
 0x3c7   : > { %v2937_v57 = vpop.f32.mrb[46].mxu0  ;;  %v3188_v63 = vpop.f32.mrb[246].mxu1  ;;  %v3767_v39 = vld [vmem:[#allocation2 + $0xcb] sm:$0xff]  ;;  %v3768_v32 = vld [vmem:[#allocation2 + $0xd3] sm:$0xff] }
 0x3c8   : > { %v7279_v42 = vadd.f32 %v2937_v57, %v7182_v36  ;;  %v7282_v38 = vadd.f32 %v3188_v63, %v7017_v23  ;;  %v5418_v11 = vpop.f32.mrb[47].mxu0  ;;  %v5444_v1 = vpop.f32.mrb[247].mxu1  ;;  %v3798_v61 = vpack.c.bf16 %v3768_v32, %v3767_v39 }
 0x3ca   : > { %5638 = vmatmul.mubr.msk.bf16.gmra.mrb[96].mxu1 %vm813_vm6, %v3796_v24 }
 0x3cb   : > { %5641 = vmatprep.mubr.msk.bf16.mxu1 %vm5736_vm4, %v7752_v20 }
 0x3cd   : > { %v2942_v17 = vpop.f32.mrb[48].mxu0  ;;  %v3193_v16 = vpop.f32.mrb[248].mxu1 }
 0x3ce   : > { %v7288_v62 = vadd.f32 %v2942_v17, %v7194_v15  ;;  %v7291_v36 = vadd.f32 %v3193_v16, %v7030_v46  ;;  %v5421_v23 = vpop.f32.mrb[49].mxu0  ;;  %v5447_v41 = vpop.f32.mrb[249].mxu1 }
 0x3cf   : > { %v2945_v37 = vpop.f32.mrb[50].mxu0  ;;  %v3196_v29 = vpop.f32.mrb[250].mxu1  ;;  %v3769_v23 = vld [vmem:[#allocation2 + $0xdb] sm:$0xff]  ;;  %v3770_v41 = vld [vmem:[#allocation2 + $0xe3] sm:$0xff] }
 0x3d0   : > { %v7294_v2 = vadd.f32 %v2945_v37, %v7200_v45  ;;  %v7297_v21 = vadd.f32 %v3196_v29, %v7036_v9  ;;  %v5422_v55 = vpop.f32.mrb[51].mxu0  ;;  %v5448_v0 = vpop.f32.mrb[251].mxu1  ;;  %v3799_v39 = vpack.c.bf16 %v3770_v41, %v3769_v23 }
 0x3d2   : > { %5642 = vmatmul.mubr.msk.bf16.gmra.mrb[100].mxu1 %vm813_vm6, %v3797_v40 }
 0x3d3   : > { %5645 = vmatprep.mubr.msk.bf16.mxu1 %vm5736_vm4, %v7752_v20 }
 0x3d5   : > { %v2950_v46 = vpop.f32.mrb[52].mxu0  ;;  %v3201_v15 = vpop.f32.mrb[252].mxu1 }
 0x3d6   : > { %v7303_v57 = vadd.f32 %v2950_v46, %v7212_v22  ;;  %v7306_v45 = vadd.f32 %v3201_v15, %v7049_v31  ;;  %v5425_v9 = vpop.f32.mrb[53].mxu0  ;;  %v5451_v63 = vpop.f32.mrb[253].mxu1 }
 0x3d7   : > { %v2953_v11 = vpop.f32.mrb[54].mxu0  ;;  %v3204_v1 = vpop.f32.mrb[254].mxu1  ;;  %v3771_v9 = vld [vmem:[#allocation2 + $0xeb] sm:$0xff] }
 0x3d8   : > { %v7309_v24 = vadd.f32 %v2953_v11, %v7218_v3  ;;  %v7312_v17 = vadd.f32 %v3204_v1, %v7055_v18  ;;  %v5426_v16 = vpop.f32.mrb[55].mxu0  ;;  %v5452_v30 = vpop.f32.mrb[255].mxu1 }
 0x3da   : > { %5646 = vmatmul.mubr.msk.bf16.gmra.mrb[104].mxu1 %vm813_vm6, %v3798_v61 }
 0x3db   : > { %5649 = vmatprep.mubr.msk.bf16.mxu1 %vm5736_vm4, %v7752_v20 }
 0x3dd   : > { %v2958_v31 = vpop.f32.mrb[56].mxu0  ;;  %v3209_v22 = vpop.f32.mrb[0].mxu1 }
 0x3de   : > { %v7318_v37 = vadd.f32 %v2958_v31, %v7230_v60  ;;  %v7321_v3 = vadd.f32 %v3209_v22, %v7068_v26  ;;  %v5429_v18 = vpop.f32.mrb[57].mxu0  ;;  %v5455_v29 = vpop.f32.mrb[1].mxu1  ;;  %v3772_v26 = vld [vmem:[#allocation2 + $0xf3] sm:$0xff] }
 0x3df   : > { %v2961_v55 = vpop.f32.mrb[58].mxu0  ;;  %v3212_v0 = vpop.f32.mrb[2].mxu1  ;;  %v3800_v41 = vpack.c.bf16 %v3772_v26, %v3771_v9  ;;  %v3773_v18 = vld [vmem:[#allocation2 + $0xfb] sm:$0xff]  ;;  %v3774_v29 = vld [vmem:[#allocation2 + $0x103] sm:$0xff] }
 0x3e0   : > { %v7324_v40 = vadd.f32 %v3212_v0, %v7074_v12  ;;  %v5430_v46 = vpop.f32.mrb[59].mxu0  ;;  %v5456_v15 = vpop.f32.mrb[3].mxu1  ;;  %v3801_v26 = vpack.c.bf16 %v3774_v29, %v3773_v18 }
 0x3e2   : > { %5650 = vmatmul.mubr.msk.bf16.gmra.mrb[108].mxu1 %vm813_vm6, %v3799_v39 }
 0x3e3   : > { %5653 = vmatprep.mubr.msk.bf16.mxu1 %vm5736_vm4, %v7752_v20 }
 0x3e5   : > { %v3217_v60 = vpop.f32.mrb[4].mxu1  ;;  %v3540_v32 = vpop.f32.mrb[60].mxu0 }
 0x3e6   : > { %v7330_v63 = vadd.f32 %v3217_v60, %v7087_v49  ;;  %v7333_v11 = vadd.f32 %v3540_v32, %v7246_v53  ;;  %v5459_v12 = vpop.f32.mrb[5].mxu1  ;;  %v5521_v1 = vpop.f32.mrb[61].mxu0 }
 0x3e7   : > { %v3220_v16 = vpop.f32.mrb[6].mxu1  ;;  %v3543_v30 = vpop.f32.mrb[62].mxu0  ;;  %v3775_v12 = vld [vmem:[#allocation2 + $0x10b] sm:$0xff]  ;;  %v3776_v1 = vld [vmem:[#allocation2 + $0x113] sm:$0xff] }
 0x3e8   : > { %v7336_v61 = vadd.f32 %v3220_v16, %v7093_v50  ;;  %v7339_v31 = vadd.f32 %v3543_v30, %v7252_v34  ;;  %v5460_v22 = vpop.f32.mrb[7].mxu1  ;;  %v5522_v23 = vpop.f32.mrb[63].mxu0  ;;  %v3802_v29 = vpack.c.bf16 %v3776_v1, %v3775_v12 }
 0x3ea   : > { %5654 = vmatmul.mubr.msk.bf16.gmra.mrb[112].mxu1 %vm813_vm6, %v3800_v41 }
 0x3eb   : > { %5657 = vmatprep.mubr.msk.bf16.mxu1 %vm5736_vm4, %v7752_v20 }
 0x3ed   : > { %v3225_v49 = vpop.f32.mrb[8].mxu1  ;;  %v3548_v53 = vpop.f32.mrb[64].mxu0 }
 0x3ee   : > { %v7345_v55 = vadd.f32 %v3225_v49, %v7106_v35  ;;  %v7348_v50 = vadd.f32 %v3548_v53, %v7261_v58  ;;  %v5463_v34 = vpop.f32.mrb[9].mxu1  ;;  %v5525_v0 = vpop.f32.mrb[65].mxu0 }
 0x3ef   : > { %v3228_v46 = vpop.f32.mrb[10].mxu1  ;;  %v3551_v15 = vpop.f32.mrb[66].mxu0  ;;  %v3777_v34 = vld [vmem:[#allocation2 + $0x11b] sm:$0xff]  ;;  %v3778_v0 = vld [vmem:[#allocation2 + $0x123] sm:$0xff] }
 0x3f0   : > { %v7351_v39 = vadd.f32 %v3228_v46, %v7112_v51  ;;  %v7354_v60 = vadd.f32 %v3551_v15, %v7267_v27  ;;  %v5464_v32 = vpop.f32.mrb[11].mxu1  ;;  %v5526_v9 = vpop.f32.mrb[67].mxu0  ;;  %v3803_v1 = vpack.c.bf16 %v3778_v0, %v3777_v34 }
 0x3f2   : > { %5658 = vmatmul.mubr.msk.bf16.gmra.mrb[116].mxu1 %vm813_vm6, %v3801_v26 }
 0x3f3   : > { %5661 = vmatprep.mubr.msk.bf16.mxu1 %vm5736_vm4, %v7752_v20 }
 0x3f5   : > { %v3233_v35 = vpop.f32.mrb[12].mxu1  ;;  %v3556_v58 = vpop.f32.mrb[68].mxu0 }
 0x3f6   : > { %v7360_v16 = vadd.f32 %v3233_v35, %v7125_v54  ;;  %v7363_v51 = vadd.f32 %v3556_v58, %v7276_v43  ;;  %v5467_v27 = vpop.f32.mrb[13].mxu1  ;;  %v5529_v30 = vpop.f32.mrb[69].mxu0 }
 0x3f7   : > { %v3236_v22 = vpop.f32.mrb[14].mxu1  ;;  %v3559_v23 = vpop.f32.mrb[70].mxu0  ;;  %v3779_v27 = vld [vmem:[#allocation2 + $0x12b] sm:$0xff]  ;;  %v3780_v30 = vld [vmem:[#allocation2 + $0x133] sm:$0xff] }
 0x3f8   : > { %v7366_v41 = vadd.f32 %v3236_v22, %v7131_v10  ;;  %v7369_v49 = vadd.f32 %v3559_v23, %v7282_v38  ;;  %v5468_v53 = vpop.f32.mrb[15].mxu1  ;;  %v5530_v18 = vpop.f32.mrb[71].mxu0  ;;  %v3804_v0 = vpack.c.bf16 %v3780_v30, %v3779_v27 }
 0x3fa   : > { %5662 = vmatmul.mubr.msk.bf16.gmra.mrb[120].mxu1 %vm813_vm6, %v3802_v29 }
 0x3fb   : > { %5665 = vmatprep.mubr.msk.bf16.mxu1 %vm5736_vm4, %v7752_v20 }
 0x3fd   : > { %v3241_v54 = vpop.f32.mrb[16].mxu1  ;;  %v3564_v43 = vpop.f32.mrb[72].mxu0 }
 0x3fe   : > { %v7375_v46 = vadd.f32 %v3241_v54, %v7143_v14  ;;  %v7378_v10 = vadd.f32 %v3564_v43, %v7291_v36  ;;  %v5471_v38 = vpop.f32.mrb[17].mxu1  ;;  %v5533_v15 = vpop.f32.mrb[73].mxu0 }
 0x3ff   : > { %v3244_v32 = vpop.f32.mrb[18].mxu1  ;;  %v3567_v9 = vpop.f32.mrb[74].mxu0  ;;  %v3781_v38 = vld [vmem:[#allocation2 + $0x13b] sm:$0xff]  ;;  %v3782_v15 = vld [vmem:[#allocation2 + $0x143] sm:$0xff] }
 0x400   : > { %v7381_v26 = vadd.f32 %v3244_v32, %v7149_v52  ;;  %v7384_v35 = vadd.f32 %v3567_v9, %v7297_v21  ;;  %v5472_v58 = vpop.f32.mrb[19].mxu1  ;;  %v5534_v12 = vpop.f32.mrb[75].mxu0  ;;  %v3805_v30 = vpack.c.bf16 %v3782_v15, %v3781_v38 }
 0x402   : > { %5666 = vmatmul.mubr.msk.bf16.gmra.mrb[124].mxu1 %vm813_vm6, %v3803_v1 }
 0x403   : > { %5669 = vmatprep.mubr.msk.bf16.mxu1 %vm5736_vm4, %v7752_v20 }
 0x405   : > { %v3249_v14 = vpop.f32.mrb[20].mxu1  ;;  %v3572_v36 = vpop.f32.mrb[76].mxu0 }
 0x406   : > { %v7390_v22 = vadd.f32 %v3249_v14, %v7161_v7  ;;  %v7393_v52 = vadd.f32 %v3572_v36, %v7306_v45  ;;  %v5475_v21 = vpop.f32.mrb[21].mxu1  ;;  %v5537_v23 = vpop.f32.mrb[77].mxu0 }
 0x407   : > { %v3252_v53 = vpop.f32.mrb[22].mxu1  ;;  %v3575_v18 = vpop.f32.mrb[78].mxu0  ;;  %v3783_v21 = vld [vmem:[#allocation2 + $0x14b] sm:$0xff]  ;;  %v3784_v23 = vld [vmem:[#allocation2 + $0x153] sm:$0xff] }
 0x408   : > { %v7396_v29 = vadd.f32 %v3252_v53, %v7167_v28  ;;  %v7399_v54 = vadd.f32 %v3575_v18, %v7312_v17  ;;  %v5476_v43 = vpop.f32.mrb[23].mxu1  ;;  %v5538_v34 = vpop.f32.mrb[79].mxu0  ;;  %v3806_v15 = vpack.c.bf16 %v3784_v23, %v3783_v21 }
 0x40a   : > { %5670 = vmatmul.mubr.msk.bf16.gmra.mrb[128].mxu1 %vm813_vm6, %v3804_v0 }
 0x40b   : > { %5673 = vmatprep.mubr.msk.bf16.mxu1 %vm5736_vm4, %v7752_v20 }
 0x40d   : > { %v3257_v7 = vpop.f32.mrb[24].mxu1  ;;  %v3580_v45 = vpop.f32.mrb[80].mxu0 }
 0x40e   : > { %v7405_v32 = vadd.f32 %v3257_v7, %v7179_v48  ;;  %v7408_v28 = vadd.f32 %v3580_v45, %v7321_v3  ;;  %v5479_v17 = vpop.f32.mrb[25].mxu1  ;;  %v5541_v9 = vpop.f32.mrb[81].mxu0 }
 0x40f   : > { %v3260_v58 = vpop.f32.mrb[26].mxu1  ;;  %v3583_v12 = vpop.f32.mrb[82].mxu0  ;;  %v3785_v17 = vld [vmem:[#allocation2 + $0x15b] sm:$0xff]  ;;  %v3786_v9 = vld [vmem:[#allocation2 + $0x163] sm:$0xff] }
 0x410   : > { %v7411_v1 = vadd.f32 %v3260_v58, %v7185_v44  ;;  %v7414_v14 = vadd.f32 %v3583_v12, %v7324_v40  ;;  %v5480_v36 = vpop.f32.mrb[27].mxu1  ;;  %v5542_v27 = vpop.f32.mrb[83].mxu0  ;;  %v3807_v23 = vpack.c.bf16 %v3786_v9, %v3785_v17 }
 0x412   : > { %5674 = vmatmul.mubr.msk.bf16.gmra.mrb[132].mxu1 %vm813_vm6, %v3805_v30 }
 0x413   : > { %5677 = vmatprep.mubr.msk.bf16.mxu1 %vm5736_vm4, %v7752_v20 }
 0x415   : > { %v3265_v48 = vpop.f32.mrb[28].mxu1  ;;  %v3588_v3 = vpop.f32.mrb[84].mxu0 }
 0x416   : > { %v7420_v53 = vadd.f32 %v3265_v48, %v7197_v8  ;;  %v7423_v44 = vadd.f32 %v3588_v3, %v7330_v63  ;;  %v5483_v40 = vpop.f32.mrb[29].mxu1  ;;  %v5545_v18 = vpop.f32.mrb[85].mxu0 }
 0x417   : > { %v3268_v43 = vpop.f32.mrb[30].mxu1  ;;  %v3591_v34 = vpop.f32.mrb[86].mxu0  ;;  %v3787_v40 = vld [vmem:[#allocation2 + $0x16b] sm:$0xff] }
 0x418   : > { %v7426_v0 = vadd.f32 %v3268_v43, %v7203_v33  ;;  %v7429_v7 = vadd.f32 %v3591_v34, %v7336_v61  ;;  %v5484_v45 = vpop.f32.mrb[31].mxu1  ;;  %v5546_v38 = vpop.f32.mrb[87].mxu0 }
 0x41a   : > { %5678 = vmatmul.mubr.msk.bf16.gmra.mrb[136].mxu1 %vm813_vm6, %v3806_v15 }
 0x41b   : > { %5681 = vmatprep.mubr.msk.bf16.mxu1 %vm5736_vm4, %v7752_v20 }
 0x41d   : > { %v3273_v8 = vpop.f32.mrb[32].mxu1  ;;  %v3596_v63 = vpop.f32.mrb[88].mxu0 }
 0x41e   : > { %v7435_v58 = vadd.f32 %v3273_v8, %v7215_v59  ;;  %v7438_v33 = vadd.f32 %v3596_v63, %v7345_v55  ;;  %v5487_v61 = vpop.f32.mrb[33].mxu1  ;;  %v5549_v12 = vpop.f32.mrb[89].mxu0  ;;  %v3808_v63 = vpack.c.bf16 %v3787_v40, %v3787_v40 }
 0x41f   : > { %v3276_v36 = vpop.f32.mrb[34].mxu1  ;;  %v3599_v27 = vpop.f32.mrb[90].mxu0 }
 0x420   : > { %v7441_v30 = vadd.f32 %v3276_v36, %v7221_v5  ;;  %v7444_v48 = vadd.f32 %v3599_v27, %v7351_v39  ;;  %v5488_v3 = vpop.f32.mrb[35].mxu1  ;;  %v5550_v21 = vpop.f32.mrb[91].mxu0 }
 0x422   : > { %5682 = vmatmul.mubr.msk.bf16.gmra.mrb[140].mxu1 %vm813_vm6, %v3807_v23 }
 0x423   : > { %5685 = vmatprep.mubr.msk.bf16.mxu1 %vm5736_vm4, %v7752_v20  ;;  %vm4289_vm4 = vcmask 130048  }
 0x425   : > { %v3281_v59 = vpop.f32.mrb[36].mxu1  ;;  %v3604_v55 = vpop.f32.mrb[92].mxu0 }
 0x426   : > { %v7450_v18 = vadd.f32 %v3281_v59, %v7233_v47  ;;  %v7453_v5 = vadd.f32 %v3604_v55, %v7360_v16  ;;  %v5491_v43 = vpop.f32.mrb[37].mxu1  ;;  %v5553_v39 = vpop.f32.mrb[93].mxu0 }
 0x427   : > { %v3284_v34 = vpop.f32.mrb[38].mxu1  ;;  %v3607_v45 = vpop.f32.mrb[94].mxu0 }
 0x428   : > { %v7456_v38 = vadd.f32 %v3284_v34, %v7236_v6  ;;  %v7459_v15 = vadd.f32 %v3607_v45, %v7366_v41  ;;  %v5492_v20 = vpop.f32.mrb[39].mxu1  ;;  %v5554_v8 = vpop.f32.mrb[95].mxu0 }
 0x42a   : > { %5686 = vmatmul.mubr.msk.bf16.gmra.mrb[144].mxu1 %vm813_vm6, %v3808_v63 }
 0x42d   : > { %v3289_v47 = vpop.f32.mrb[40].mxu1  ;;  %v3612_v17 = vpop.f32.mrb[96].mxu0 }
 0x42e   : > { %v7463_v16 = vadd.f32 %v3289_v47, %v7243_v56  ;;  %v7466_v9 = vadd.f32 %v3612_v17, %v7375_v46  ;;  %v5495_v61 = vpop.f32.mrb[41].mxu1  ;;  %v5557_v12 = vpop.f32.mrb[97].mxu0 }
 0x42f   : > { %v3292_v6 = vpop.f32.mrb[42].mxu1  ;;  %v3615_v36 = vpop.f32.mrb[98].mxu0 }
 0x430   : > { %v7469_v41 = vadd.f32 %v3292_v6, %v7249_v13  ;;  %v7472_v27 = vadd.f32 %v3615_v36, %v7381_v26  ;;  %v5496_v3 = vpop.f32.mrb[43].mxu1  ;;  %v5558_v21 = vpop.f32.mrb[99].mxu0 }
 0x435   : > { %v3297_v23 = vpop.f32.mrb[44].mxu1  ;;  %v3620_v59 = vpop.f32.mrb[100].mxu0 }
 0x436   : > { %v7475_v56 = vadd.f32 %v3297_v23, %v7258_v25  ;;  %v7478_v46 = vadd.f32 %v3620_v59, %v7390_v22  ;;  %v5499_v55 = vpop.f32.mrb[45].mxu1  ;;  %v5561_v40 = vpop.f32.mrb[101].mxu0 }
 0x437   : > { %v3300_v43 = vpop.f32.mrb[46].mxu1  ;;  %v3623_v39 = vpop.f32.mrb[102].mxu0 }
 0x438   : > { %v7481_v13 = vadd.f32 %v3300_v43, %v7264_v19  ;;  %v7484_v26 = vadd.f32 %v3623_v39, %v7396_v29  ;;  %v5500_v34 = vpop.f32.mrb[47].mxu1  ;;  %v5562_v45 = vpop.f32.mrb[103].mxu0 }
 0x43d   : > { %v3305_v20 = vpop.f32.mrb[48].mxu1  ;;  %v3628_v8 = vpop.f32.mrb[104].mxu0 }
 0x43e   : > { %v7487_v25 = vadd.f32 %v3305_v20, %v7273_v4  ;;  %v7490_v22 = vadd.f32 %v3628_v8, %v7405_v32  ;;  %v5503_v63 = vpop.f32.mrb[49].mxu1  ;;  %v5565_v47 = vpop.f32.mrb[105].mxu0 }
 0x43f   : > { %v3308_v17 = vpop.f32.mrb[50].mxu1  ;;  %v3631_v61 = vpop.f32.mrb[106].mxu0 }
 0x440   : > { %v7493_v19 = vadd.f32 %v3308_v17, %v7279_v42  ;;  %v7496_v29 = vadd.f32 %v3631_v61, %v7411_v1  ;;  %v5504_v12 = vpop.f32.mrb[51].mxu1  ;;  %v5566_v6 = vpop.f32.mrb[107].mxu0 }
 0x445   : > { %v3313_v36 = vpop.f32.mrb[52].mxu1  ;;  %v3636_v3 = vpop.f32.mrb[108].mxu0 }
 0x446   : > { %v7499_v4 = vadd.f32 %v3313_v36, %v7288_v62  ;;  %v7502_v32 = vadd.f32 %v3636_v3, %v7420_v53  ;;  %v5507_v21 = vpop.f32.mrb[53].mxu1  ;;  %v5569_v23 = vpop.f32.mrb[109].mxu0 }
 0x447   : > { %v3316_v59 = vpop.f32.mrb[54].mxu1  ;;  %v3639_v55 = vpop.f32.mrb[110].mxu0 }
 0x448   : > { %v7505_v42 = vadd.f32 %v3316_v59, %v7294_v2  ;;  %v7508_v1 = vadd.f32 %v3639_v55, %v7426_v0  ;;  %v5508_v40 = vpop.f32.mrb[55].mxu1  ;;  %v5570_v43 = vpop.f32.mrb[111].mxu0 }
 0x44d   : > { %v3321_v39 = vpop.f32.mrb[56].mxu1  ;;  %v3644_v34 = vpop.f32.mrb[112].mxu0 }
 0x44e   : > { %v7511_v62 = vadd.f32 %v3321_v39, %v7303_v57  ;;  %v7514_v53 = vadd.f32 %v3644_v34, %v7435_v58  ;;  %v5511_v45 = vpop.f32.mrb[57].mxu1  ;;  %v5573_v20 = vpop.f32.mrb[113].mxu0 }
 0x44f   : > { %v3324_v8 = vpop.f32.mrb[58].mxu1  ;;  %v3647_v63 = vpop.f32.mrb[114].mxu0 }
 0x450   : > { %v7517_v2 = vadd.f32 %v3324_v8, %v7309_v24  ;;  %v7520_v0 = vadd.f32 %v3647_v63, %v7441_v30  ;;  %v5512_v47 = vpop.f32.mrb[59].mxu1  ;;  %v5574_v17 = vpop.f32.mrb[115].mxu0 }
 0x455   : > { %v3329_v61 = vpop.f32.mrb[60].mxu1  ;;  %v3652_v57 = vpop.f32.mrb[116].mxu0 }
 0x456   : > { %v7525_v12 = vadd.f32 %v3329_v61, %v7318_v37  ;;  %v7528_v58 = vadd.f32 %v3652_v57, %v7450_v18  ;;  %v5515_v6 = vpop.f32.mrb[61].mxu1  ;;  %v5577_v36 = vpop.f32.mrb[117].mxu0  ;;  %v7536_v37 = vld [vmem:[%s7746_s3] ss:$0 sm:$0xff] }
 0x457   : > { %v3332_v3 = vpop.f32.mrb[62].mxu1  ;;  %v3655_v24 = vpop.f32.mrb[118].mxu0 }
 0x458   : > { %v7531_v30 = vadd.f32 %v3655_v24, %v7456_v38  ;;  %v5516_v21 = vpop.f32.mrb[63].mxu1  ;;  %v5578_v23 = vpop.f32.mrb[119].mxu0 }
 0x45d   : > { %v3660_v59 = vpop.f32.mrb[120].mxu0  ;;  %v3911_v55 = vpop.f32.mrb[64].mxu1 }
 0x45e   : > { %v7539_v18 = vadd.f32 %v3660_v59, %v7463_v16  ;;  %v4077_v40 = vadd.f32 %v3911_v55, %v7333_v11  ;;  %v5581_v43 = vpop.f32.mrb[121].mxu0  ;;  %v5607_v39 = vpop.f32.mrb[65].mxu1 }
 0x45f   : > { %v3663_v38 = vpop.f32.mrb[122].mxu0  ;;  %v3914_v34 = vpop.f32.mrb[66].mxu1 }
 0x460   : > { %v4125_v45 = vadd.f32 %v7536_v37, %v4077_v40  ;;  %v7544_v20 = vadd.f32 %v3663_v38, %v7469_v41  ;;  %v4078_v8 = vadd.f32 %v3914_v34, %v7339_v31  ;;  %v5582_v63 = vpop.f32.mrb[123].mxu0  ;;  %v5608_v47 = vpop.f32.mrb[67].mxu1 }
 0x462   : > { %vm4166_vm3 = vcmp.ge.f32.partialorder %v4125_v45, 0.0  ;;  %v4207_v11 = vmul.f32 0.2, %v4125_v45  ;;  %v4126_v16 = vadd.f32 %v7536_v37, %v4078_v8 }
 0x464   : > { %v4248_v17 = vsel %vm4166_vm3, %v4125_v45, %v4207_v11  ;;  %vm4167_vm6 = vcmp.ge.f32.partialorder %v4126_v16, 0.0  ;;  %v4208_v41 = vmul.f32 0.2, %v4126_v16 }
 0x465   : > { %4290 = vst.msk [vmem:[%s7550_s23] sm:$0xff] %vm4289_vm4, %v4248_v17  ;;  %v3668_v31 = vpop.f32.mrb[124].mxu0  ;;  %v3919_v61 = vpop.f32.mrb[68].mxu1 }
 0x466   : > { %v4249_v57 = vsel %vm4167_vm6, %v4126_v16, %v4208_v41  ;;  %v7556_v6 = vadd.f32 %v3668_v31, %v7475_v56  ;;  %v4079_v36 = vadd.f32 %v3919_v61, %v7348_v50  ;;  %v5585_v3 = vpop.f32.mrb[125].mxu0  ;;  %v5611_v24 = vpop.f32.mrb[69].mxu1 }
 0x467   : > { %4291 = vst.msk [vmem:[%s7550_s23 + $0x8] sm:$0xff] %vm4289_vm4, %v4249_v57  ;;  %v3671_v21 = vpop.f32.mrb[126].mxu0  ;;  %v3922_v23 = vpop.f32.mrb[70].mxu1 }
 0x468   : > { %v4127_v59 = vadd.f32 %v7536_v37, %v4079_v36  ;;  %v7563_v55 = vadd.f32 %v3671_v21, %v7481_v13  ;;  %v4080_v40 = vadd.f32 %v3922_v23, %v7354_v60  ;;  %v5586_v43 = vpop.f32.mrb[127].mxu0  ;;  %v5612_v56 = vpop.f32.mrb[71].mxu1 }
 0x46a   : > { %vm4168_vm14 = vcmp.ge.f32.partialorder %v4127_v59, 0.0  ;;  %v4209_v39 = vmul.f32 0.2, %v4127_v59  ;;  %v4128_v50 = vadd.f32 %v7536_v37, %v4080_v40 }
 0x46c   : > { %v4250_v38 = vsel %vm4168_vm14, %v4127_v59, %v4209_v39  ;;  %vm4169_vm15 = vcmp.ge.f32.partialorder %v4128_v50, 0.0  ;;  %v4210_v34 = vmul.f32 0.2, %v4128_v50 }
 0x46d   : > { %4292 = vst.msk [vmem:[%s7550_s23 + $0x10] sm:$0xff] %vm4289_vm4, %v4250_v38  ;;  %v3676_v45 = vpop.f32.mrb[128].mxu0  ;;  %v3927_v8 = vpop.f32.mrb[72].mxu1 }
 0x46e   : > { %v4251_v63 = vsel %vm4169_vm15, %v4128_v50, %v4210_v34  ;;  %v7570_v13 = vadd.f32 %v3676_v45, %v7487_v25  ;;  %v4081_v60 = vadd.f32 %v3927_v8, %v7363_v51  ;;  %v5589_v47 = vpop.f32.mrb[129].mxu0  ;;  %v5615_v11 = vpop.f32.mrb[73].mxu1 }
 0x46f   : > { %4293 = vst.msk [vmem:[%s7550_s23 + $0x18] sm:$0xff] %vm4289_vm4, %v4251_v63  ;;  %v3679_v16 = vpop.f32.mrb[130].mxu0  ;;  %v3930_v17 = vpop.f32.mrb[74].mxu1 }
 0x470   : > { %v4129_v41 = vadd.f32 %v7536_v37, %v4081_v60  ;;  %v7577_v31 = vadd.f32 %v3679_v16, %v7493_v19  ;;  %v4082_v61 = vadd.f32 %v3930_v17, %v7369_v49  ;;  %v5590_v57 = vpop.f32.mrb[131].mxu0  ;;  %v5616_v25 = vpop.f32.mrb[75].mxu1 }
 0x472   : > { %vm4170_vm0 = vcmp.ge.f32.partialorder %v4129_v41, 0.0  ;;  %v4211_v36 = vmul.f32 0.2, %v4129_v41  ;;  %v4130_v51 = vadd.f32 %v7536_v37, %v4082_v61 }
 0x474   : > { %v4252_v3 = vsel %vm4170_vm0, %v4129_v41, %v4211_v36  ;;  %vm4171_vm1 = vcmp.ge.f32.partialorder %v4130_v51, 0.0  ;;  %v4212_v24 = vmul.f32 0.2, %v4130_v51 }
 0x475   : > { %4294 = vst.msk [vmem:[%s7550_s23 + $0x20] sm:$0xff] %vm4289_vm4, %v4252_v3  ;;  %v3684_v21 = vpop.f32.mrb[132].mxu0  ;;  %v3935_v23 = vpop.f32.mrb[76].mxu1 }
 0x476   : > { %v4253_v59 = vsel %vm4171_vm1, %v4130_v51, %v4212_v24  ;;  %v7584_v19 = vadd.f32 %v3684_v21, %v7499_v4  ;;  %v4083_v49 = vadd.f32 %v3935_v23, %v7378_v10  ;;  %v5593_v40 = vpop.f32.mrb[133].mxu0  ;;  %v5619_v43 = vpop.f32.mrb[77].mxu1 }
 0x477   : > { %4295 = vst.msk [vmem:[%s7550_s23 + $0x28] sm:$0xff] %vm4289_vm4, %v4253_v59  ;;  %v3687_v56 = vpop.f32.mrb[134].mxu0  ;;  %v3938_v39 = vpop.f32.mrb[78].mxu1 }
 0x478   : > { %v4131_v50 = vadd.f32 %v7536_v37, %v4083_v49  ;;  %v7591_v38 = vadd.f32 %v3687_v56, %v7505_v42  ;;  %v4084_v34 = vadd.f32 %v3938_v39, %v7384_v35  ;;  %v5594_v45 = vpop.f32.mrb[135].mxu0  ;;  %v5620_v4 = vpop.f32.mrb[79].mxu1 }
 0x47a   : > { %vm4172_vm2 = vcmp.ge.f32.partialorder %v4131_v50, 0.0  ;;  %v4213_v8 = vmul.f32 0.2, %v4131_v50  ;;  %v4132_v10 = vadd.f32 %v7536_v37, %v4084_v34 }
 0x47c   : > { %v4254_v63 = vsel %vm4172_vm2, %v4131_v50, %v4213_v8  ;;  %vm4173_vm5 = vcmp.ge.f32.partialorder %v4132_v10, 0.0  ;;  %v4214_v60 = vmul.f32 0.2, %v4132_v10 }
 0x47d   : > { %4296 = vst.msk [vmem:[%s7550_s23 + $0x30] sm:$0xff] %vm4289_vm4, %v4254_v63  ;;  %v3692_v47 = vpop.f32.mrb[136].mxu0  ;;  %v3943_v11 = vpop.f32.mrb[80].mxu1 }
 0x47e   : > { %v4255_v16 = vsel %vm4173_vm5, %v4132_v10, %v4214_v60  ;;  %v7598_v42 = vadd.f32 %v3692_v47, %v7511_v62  ;;  %v4085_v35 = vadd.f32 %v3943_v11, %v7393_v52  ;;  %v5597_v17 = vpop.f32.mrb[137].mxu0  ;;  %v5623_v41 = vpop.f32.mrb[81].mxu1 }
 0x47f   : > { %4297 = vst.msk [vmem:[%s7550_s23 + $0x38] sm:$0xff] %vm4289_vm4, %v4255_v16  ;;  %v3695_v61 = vpop.f32.mrb[138].mxu0  ;;  %v3946_v57 = vpop.f32.mrb[82].mxu1 }
 0x480   : > { %v4133_v25 = vadd.f32 %v7536_v37, %v4085_v35  ;;  %v7605_v36 = vadd.f32 %v3695_v61, %v7517_v2  ;;  %v4086_v51 = vadd.f32 %v3946_v57, %v7399_v54  ;;  %v5598_v3 = vpop.f32.mrb[139].mxu0  ;;  %v5624_v62 = vpop.f32.mrb[83].mxu1 }
 0x482   : > { %vm4174_vm7 = vcmp.ge.f32.partialorder %v4133_v25, 0.0  ;;  %v4215_v24 = vmul.f32 0.2, %v4133_v25  ;;  %v4134_v52 = vadd.f32 %v7536_v37, %v4086_v51 }
 0x484   : > { %v4256_v21 = vsel %vm4174_vm7, %v4133_v25, %v4215_v24  ;;  %vm4175_vm8 = vcmp.ge.f32.partialorder %v4134_v52, 0.0  ;;  %v4216_v23 = vmul.f32 0.2, %v4134_v52 }
 0x485   : > { %4298 = vst.msk [vmem:[%s7550_s23 + $0x40] sm:$0xff] %vm4289_vm4, %v4256_v21  ;;  %v3700_v59 = vpop.f32.mrb[140].mxu0  ;;  %v3951_v49 = vpop.f32.mrb[84].mxu1 }
 0x486   : > { %v4257_v40 = vsel %vm4175_vm8, %v4134_v52, %v4216_v23  ;;  %v7612_v2 = vadd.f32 %v3700_v59, %v7525_v12  ;;  %v4087_v54 = vadd.f32 %v3951_v49, %v7408_v28  ;;  %v5601_v43 = vpop.f32.mrb[141].mxu0  ;;  %v5627_v56 = vpop.f32.mrb[85].mxu1 }
 0x487   : > { %4299 = vst.msk [vmem:[%s7550_s23 + $0x48] sm:$0xff] %vm4289_vm4, %v4257_v40  ;;  %v3703_v39 = vpop.f32.mrb[142].mxu0  ;;  %v3954_v50 = vpop.f32.mrb[86].mxu1 }
 0x488   : > { %v4135_v34 = vadd.f32 %v7536_v37, %v4087_v54  ;;  %v4088_v45 = vadd.f32 %v3954_v50, %v7414_v14  ;;  %v5602_v4 = vpop.f32.mrb[143].mxu0  ;;  %v5628_v8 = vpop.f32.mrb[87].mxu1 }
 0x48a   : > { %vm4176_vm9 = vcmp.ge.f32.partialorder %v4135_v34, 0.0  ;;  %v4217_v10 = vmul.f32 0.2, %v4135_v34  ;;  %v4136_v12 = vadd.f32 %v7536_v37, %v4088_v45 }
 0x48c   : > { %v4258_v63 = vsel %vm4176_vm9, %v4135_v34, %v4217_v10  ;;  %vm4177_vm10 = vcmp.ge.f32.partialorder %v4136_v12, 0.0  ;;  %v4218_v28 = vmul.f32 0.2, %v4136_v12 }
 0x48d   : > { %4300 = vst.msk [vmem:[%s7550_s23 + $0x50] sm:$0xff] %vm4289_vm4, %v4258_v63  ;;  %v3959_v60 = vpop.f32.mrb[88].mxu1 }
 0x48e   : > { %v4259_v47 = vsel %vm4177_vm10, %v4136_v12, %v4218_v28  ;;  %v4089_v11 = vadd.f32 %v3959_v60, %v7423_v44  ;;  %v5631_v16 = vpop.f32.mrb[89].mxu1 }
 0x48f   : > { %4301 = vst.msk [vmem:[%s7550_s23 + $0x58] sm:$0xff] %vm4289_vm4, %v4259_v47  ;;  %v3962_v14 = vpop.f32.mrb[90].mxu1 }
 0x490   : > { %v4137_v35 = vadd.f32 %v7536_v37, %v4089_v11  ;;  %v4090_v17 = vadd.f32 %v3962_v14, %v7429_v7  ;;  %v5632_v41 = vpop.f32.mrb[91].mxu1 }
 0x492   : > { %vm4178_vm11 = vcmp.ge.f32.partialorder %v4137_v35, 0.0  ;;  %v4219_v61 = vmul.f32 0.2, %v4137_v35  ;;  %v4138_v57 = vadd.f32 %v7536_v37, %v4090_v17 }
 0x494   : > { %v4260_v25 = vsel %vm4178_vm11, %v4137_v35, %v4219_v61  ;;  %vm4179_vm12 = vcmp.ge.f32.partialorder %v4138_v57, 0.0  ;;  %v4220_v51 = vmul.f32 0.2, %v4138_v57 }
 0x495   : > { %4302 = vst.msk [vmem:[%s7550_s23 + $0x60] sm:$0xff] %vm4289_vm4, %v4260_v25  ;;  %v3967_v44 = vpop.f32.mrb[92].mxu1 }
 0x496   : > { %v4261_v3 = vsel %vm4179_vm12, %v4138_v57, %v4220_v51  ;;  %v4091_v62 = vadd.f32 %v3967_v44, %v7438_v33  ;;  %v5635_v24 = vpop.f32.mrb[93].mxu1 }
 0x497   : > { %4303 = vst.msk [vmem:[%s7550_s23 + $0x68] sm:$0xff] %vm4289_vm4, %v4261_v3  ;;  %v3970_v7 = vpop.f32.mrb[94].mxu1 }
 0x498   : > { %v4139_v52 = vadd.f32 %v7536_v37, %v4091_v62  ;;  %v4092_v21 = vadd.f32 %v3970_v7, %v7444_v48  ;;  %v5636_v23 = vpop.f32.mrb[95].mxu1 }
 0x49a   : > { %vm4180_vm13 = vcmp.ge.f32.partialorder %v4139_v52, 0.0  ;;  %v4221_v59 = vmul.f32 0.2, %v4139_v52  ;;  %v4140_v49 = vadd.f32 %v7536_v37, %v4092_v21 }
 0x49c   : > { %v4262_v40 = vsel %vm4180_vm13, %v4139_v52, %v4221_v59  ;;  %vm4181_vm3 = vcmp.ge.f32.partialorder %v4140_v49, 0.0  ;;  %v4222_v54 = vmul.f32 0.2, %v4140_v49 }
 0x49d   : > { %4304 = vst.msk [vmem:[%s7550_s23 + $0x70] sm:$0xff] %vm4289_vm4, %v4262_v40  ;;  %v3975_v33 = vpop.f32.mrb[96].mxu1 }
 0x49e   : > { %v4263_v43 = vsel %vm4181_vm3, %v4140_v49, %v4222_v54  ;;  %v4093_v56 = vadd.f32 %v3975_v33, %v7453_v5  ;;  %v5639_v39 = vpop.f32.mrb[97].mxu1 }
 0x49f   : > { %4305 = vst.msk [vmem:[%s7550_s23 + $0x78] sm:$0xff] %vm4289_vm4, %v4263_v43  ;;  %v3978_v48 = vpop.f32.mrb[98].mxu1 }
 0x4a0   : > { %v4141_v50 = vadd.f32 %v7536_v37, %v4093_v56  ;;  %v4094_v34 = vadd.f32 %v3978_v48, %v7459_v15  ;;  %v5640_v45 = vpop.f32.mrb[99].mxu1 }
 0x4a2   : > { %vm4182_vm6 = vcmp.ge.f32.partialorder %v4141_v50, 0.0  ;;  %v4223_v4 = vmul.f32 0.2, %v4141_v50  ;;  %v4142_v8 = vadd.f32 %v7536_v37, %v4094_v34 }
 0x4a4   : > { %v4264_v10 = vsel %vm4182_vm6, %v4141_v50, %v4223_v4  ;;  %vm4183_vm14 = vcmp.ge.f32.partialorder %v4142_v8, 0.0  ;;  %v4224_v12 = vmul.f32 0.2, %v4142_v8 }
 0x4a5   : > { %4306 = vst.msk [vmem:[%s7550_s23 + $0x80] sm:$0xff] %vm4289_vm4, %v4264_v10  ;;  %v3983_v5 = vpop.f32.mrb[100].mxu1 }
 0x4a6   : > { %v4265_v63 = vsel %vm4183_vm14, %v4142_v8, %v4224_v12  ;;  %v4095_v28 = vadd.f32 %v3983_v5, %v7466_v9  ;;  %v5643_v60 = vpop.f32.mrb[101].mxu1 }
 0x4a7   : > { %4307 = vst.msk [vmem:[%s7550_s23 + $0x88] sm:$0xff] %vm4289_vm4, %v4265_v63  ;;  %v3986_v15 = vpop.f32.mrb[102].mxu1 }
 0x4a8   : > { %v4143_v47 = vadd.f32 %v7536_v37, %v4095_v28  ;;  %v4096_v11 = vadd.f32 %v3986_v15, %v7472_v27  ;;  %v5644_v16 = vpop.f32.mrb[103].mxu1 }
 0x4aa   : > { %vm4184_vm15 = vcmp.ge.f32.partialorder %v4143_v47, 0.0  ;;  %v4225_v14 = vmul.f32 0.2, %v4143_v47  ;;  %v4144_v35 = vadd.f32 %v7536_v37, %v4096_v11 }
 0x4ac   : > { %v4266_v17 = vsel %vm4184_vm15, %v4143_v47, %v4225_v14  ;;  %vm4185_vm0 = vcmp.ge.f32.partialorder %v4144_v35, 0.0  ;;  %v4226_v41 = vmul.f32 0.2, %v4144_v35 }
 0x4ad   : > { %4308 = vst.msk [vmem:[%s7550_s23 + $0x90] sm:$0xff] %vm4289_vm4, %v4266_v17  ;;  %v3991_v9 = vpop.f32.mrb[104].mxu1 }
 0x4ae   : > { %v4267_v61 = vsel %vm4185_vm0, %v4144_v35, %v4226_v41  ;;  %v4097_v57 = vadd.f32 %v3991_v9, %v7478_v46  ;;  %v5647_v25 = vpop.f32.mrb[105].mxu1 }
 0x4af   : > { %4309 = vst.msk [vmem:[%s7550_s23 + $0x98] sm:$0xff] %vm4289_vm4, %v4267_v61  ;;  %v3994_v27 = vpop.f32.mrb[106].mxu1 }
 0x4b0   : > { %v4145_v51 = vadd.f32 %v7536_v37, %v4097_v57  ;;  %v4098_v44 = vadd.f32 %v3994_v27, %v7484_v26  ;;  %v5648_v3 = vpop.f32.mrb[107].mxu1 }
 0x4b2   : > { %vm4186_vm1 = vcmp.ge.f32.partialorder %v4145_v51, 0.0  ;;  %v4227_v62 = vmul.f32 0.2, %v4145_v51  ;;  %v4146_v24 = vadd.f32 %v7536_v37, %v4098_v44 }
 0x4b4   : > { %v4268_v7 = vsel %vm4186_vm1, %v4145_v51, %v4227_v62  ;;  %vm4187_vm2 = vcmp.ge.f32.partialorder %v4146_v24, 0.0  ;;  %v4228_v52 = vmul.f32 0.2, %v4146_v24 }
 0x4b5   : > { %4310 = vst.msk [vmem:[%s7550_s23 + $0xa0] sm:$0xff] %vm4289_vm4, %v4268_v7  ;;  %v3999_v46 = vpop.f32.mrb[108].mxu1 }
 0x4b6   : > { %v4269_v21 = vsel %vm4187_vm2, %v4146_v24, %v4228_v52  ;;  %v4099_v23 = vadd.f32 %v3999_v46, %v7490_v22  ;;  %v5651_v59 = vpop.f32.mrb[109].mxu1 }
 0x4b7   : > { %4311 = vst.msk [vmem:[%s7550_s23 + $0xa8] sm:$0xff] %vm4289_vm4, %v4269_v21  ;;  %v4002_v26 = vpop.f32.mrb[110].mxu1 }
 0x4b8   : > { %v4147_v49 = vadd.f32 %v7536_v37, %v4099_v23  ;;  %v4100_v40 = vadd.f32 %v4002_v26, %v7496_v29  ;;  %v5652_v54 = vpop.f32.mrb[111].mxu1 }
 0x4ba   : > { %vm4188_vm5 = vcmp.ge.f32.partialorder %v4147_v49, 0.0  ;;  %v4229_v33 = vmul.f32 0.2, %v4147_v49  ;;  %v4148_v43 = vadd.f32 %v7536_v37, %v4100_v40 }
 0x4bc   : > { %v4270_v56 = vsel %vm4188_vm5, %v4147_v49, %v4229_v33  ;;  %vm4189_vm7 = vcmp.ge.f32.partialorder %v4148_v43, 0.0  ;;  %v4230_v39 = vmul.f32 0.2, %v4148_v43 }
 0x4bd   : > { %4312 = vst.msk [vmem:[%s7550_s23 + $0xb0] sm:$0xff] %vm4289_vm4, %v4270_v56  ;;  %v4007_v22 = vpop.f32.mrb[112].mxu1 }
 0x4be   : > { %v4271_v48 = vsel %vm4189_vm7, %v4148_v43, %v4230_v39  ;;  %v4101_v50 = vadd.f32 %v4007_v22, %v7502_v32  ;;  %v5655_v34 = vpop.f32.mrb[113].mxu1 }
 0x4bf   : > { %4313 = vst.msk [vmem:[%s7550_s23 + $0xb8] sm:$0xff] %vm4289_vm4, %v4271_v48  ;;  %v4010_v29 = vpop.f32.mrb[114].mxu1 }
 0x4c0   : > { %v4149_v45 = vadd.f32 %v7536_v37, %v4101_v50  ;;  %v4102_v4 = vadd.f32 %v4010_v29, %v7508_v1  ;;  %v5656_v8 = vpop.f32.mrb[115].mxu1 }
 0x4c2   : > { %vm4190_vm8 = vcmp.ge.f32.partialorder %v4149_v45, 0.0  ;;  %v4231_v10 = vmul.f32 0.2, %v4149_v45  ;;  %v4150_v12 = vadd.f32 %v7536_v37, %v4102_v4 }
 0x4c4   : > { %v4272_v5 = vsel %vm4190_vm8, %v4149_v45, %v4231_v10  ;;  %vm4191_vm9 = vcmp.ge.f32.partialorder %v4150_v12, 0.0  ;;  %v4232_v63 = vmul.f32 0.2, %v4150_v12 }
 0x4c5   : > { %4314 = vst.msk [vmem:[%s7550_s23 + $0xc0] sm:$0xff] %vm4289_vm4, %v4272_v5  ;;  %v4015_v32 = vpop.f32.mrb[116].mxu1 }
 0x4c6   : > { %v4273_v28 = vsel %vm4191_vm9, %v4150_v12, %v4232_v63  ;;  %v4103_v60 = vadd.f32 %v4015_v32, %v7514_v53  ;;  %v5659_v15 = vpop.f32.mrb[117].mxu1 }
 0x4c7   : > { %4315 = vst.msk [vmem:[%s7550_s23 + $0xc8] sm:$0xff] %vm4289_vm4, %v4273_v28  ;;  %v4018_v1 = vpop.f32.mrb[118].mxu1 }
 0x4c8   : > { %v4151_v47 = vadd.f32 %v7536_v37, %v4103_v60  ;;  %v4104_v11 = vadd.f32 %v4018_v1, %v7520_v0  ;;  %v5660_v16 = vpop.f32.mrb[119].mxu1 }
 0x4ca   : > { %vm4192_vm10 = vcmp.ge.f32.partialorder %v4151_v47, 0.0  ;;  %v4233_v14 = vmul.f32 0.2, %v4151_v47  ;;  %v4152_v35 = vadd.f32 %v7536_v37, %v4104_v11 }
 0x4cc   : > { %v4274_v17 = vsel %vm4192_vm10, %v4151_v47, %v4233_v14  ;;  %vm4193_vm11 = vcmp.ge.f32.partialorder %v4152_v35, 0.0  ;;  %v4234_v41 = vmul.f32 0.2, %v4152_v35 }
 0x4cd   : > { %4316 = vst.msk [vmem:[%s7550_s23 + $0xd0] sm:$0xff] %vm4289_vm4, %v4274_v17  ;;  %v4023_v53 = vpop.f32.mrb[120].mxu1 }
 0x4ce   : > { %v4275_v9 = vsel %vm4193_vm11, %v4152_v35, %v4234_v41  ;;  %v4105_v61 = vadd.f32 %v4023_v53, %v7528_v58  ;;  %v5663_v57 = vpop.f32.mrb[121].mxu1 }
 0x4cf   : > { %4317 = vst.msk [vmem:[%s7550_s23 + $0xd8] sm:$0xff] %vm4289_vm4, %v4275_v9  ;;  %v4026_v0 = vpop.f32.mrb[122].mxu1 }
 0x4d0   : > { %v4153_v25 = vadd.f32 %v7536_v37, %v4105_v61  ;;  %v4106_v27 = vadd.f32 %v4026_v0, %v7531_v30  ;;  %v5664_v51 = vpop.f32.mrb[123].mxu1 }
 0x4d2   : > { %vm4194_vm12 = vcmp.ge.f32.partialorder %v4153_v25, 0.0  ;;  %v4235_v44 = vmul.f32 0.2, %v4153_v25  ;;  %v4154_v3 = vadd.f32 %v7536_v37, %v4106_v27 }
 0x4d4   : > { %v4276_v62 = vsel %vm4194_vm12, %v4153_v25, %v4235_v44  ;;  %vm4195_vm13 = vcmp.ge.f32.partialorder %v4154_v3, 0.0  ;;  %v4236_v24 = vmul.f32 0.2, %v4154_v3 }
 0x4d5   : > { %4318 = vst.msk [vmem:[%s7550_s23 + $0xe0] sm:$0xff] %vm4289_vm4, %v4276_v62  ;;  %v4031_v58 = vpop.f32.mrb[124].mxu1 }
 0x4d6   : > { %v4277_v7 = vsel %vm4195_vm13, %v4154_v3, %v4236_v24  ;;  %v4107_v52 = vadd.f32 %v4031_v58, %v7539_v18  ;;  %v5667_v46 = vpop.f32.mrb[125].mxu1 }
 0x4d7   : > { %4319 = vst.msk [vmem:[%s7550_s23 + $0xe8] sm:$0xff] %vm4289_vm4, %v4277_v7  ;;  %v4034_v30 = vpop.f32.mrb[126].mxu1 }
 0x4d8   : > { %v4155_v21 = vadd.f32 %v7536_v37, %v4107_v52  ;;  %v4108_v23 = vadd.f32 %v4034_v30, %v7544_v20  ;;  %v5668_v59 = vpop.f32.mrb[127].mxu1 }
 0x4da   : > { %vm4196_vm3 = vcmp.ge.f32.partialorder %v4155_v21, 0.0  ;;  %v4237_v26 = vmul.f32 0.2, %v4155_v21  ;;  %v4156_v49 = vadd.f32 %v7536_v37, %v4108_v23 }
 0x4dc   : > { %v4278_v40 = vsel %vm4196_vm3, %v4155_v21, %v4237_v26  ;;  %vm4197_vm6 = vcmp.ge.f32.partialorder %v4156_v49, 0.0  ;;  %v4238_v54 = vmul.f32 0.2, %v4156_v49 }
 0x4dd   : > { %4320 = vst.msk [vmem:[%s7550_s23 + $0xf0] sm:$0xff] %vm4289_vm4, %v4278_v40  ;;  %v4039_v18 = vpop.f32.mrb[128].mxu1 }
 0x4de   : > { %v4279_v33 = vsel %vm4197_vm6, %v4156_v49, %v4238_v54  ;;  %v4109_v43 = vadd.f32 %v4039_v18, %v7556_v6  ;;  %v5671_v56 = vpop.f32.mrb[129].mxu1 }
 0x4df   : > { %4321 = vst.msk [vmem:[%s7550_s23 + $0xf8] sm:$0xff] %vm4289_vm4, %v4279_v33  ;;  %v4042_v20 = vpop.f32.mrb[130].mxu1 }
 0x4e0   : > { %v4157_v39 = vadd.f32 %v7536_v37, %v4109_v43  ;;  %v4110_v22 = vadd.f32 %v4042_v20, %v7563_v55  ;;  %v5672_v48 = vpop.f32.mrb[131].mxu1 }
 0x4e2   : > { %vm4198_vm14 = vcmp.ge.f32.partialorder %v4157_v39, 0.0  ;;  %v4239_v50 = vmul.f32 0.2, %v4157_v39  ;;  %v4158_v34 = vadd.f32 %v7536_v37, %v4110_v22 }
 0x4e4   : > { %v4280_v29 = vsel %vm4198_vm14, %v4157_v39, %v4239_v50  ;;  %vm4199_vm15 = vcmp.ge.f32.partialorder %v4158_v34, 0.0  ;;  %v4240_v45 = vmul.f32 0.2, %v4158_v34 }
 0x4e5   : > { %4322 = vst.msk [vmem:[%s7550_s23 + $0x100] sm:$0xff] %vm4289_vm4, %v4280_v29  ;;  %v4047_v6 = vpop.f32.mrb[132].mxu1 }
 0x4e6   : > { %v4281_v4 = vsel %vm4199_vm15, %v4158_v34, %v4240_v45  ;;  %v4111_v8 = vadd.f32 %v4047_v6, %v7570_v13  ;;  %v5675_v10 = vpop.f32.mrb[133].mxu1 }
 0x4e7   : > { %4323 = vst.msk [vmem:[%s7550_s23 + $0x108] sm:$0xff] %vm4289_vm4, %v4281_v4  ;;  %v4050_v55 = vpop.f32.mrb[134].mxu1 }
 0x4e8   : > { %v4159_v12 = vadd.f32 %v7536_v37, %v4111_v8  ;;  %v4112_v5 = vadd.f32 %v4050_v55, %v7577_v31  ;;  %v5676_v63 = vpop.f32.mrb[135].mxu1 }
 0x4ea   : > { %vm4200_vm0 = vcmp.ge.f32.partialorder %v4159_v12, 0.0  ;;  %v4241_v32 = vmul.f32 0.2, %v4159_v12  ;;  %v4160_v28 = vadd.f32 %v7536_v37, %v4112_v5 }
 0x4ec   : > { %v4282_v60 = vsel %vm4200_vm0, %v4159_v12, %v4241_v32  ;;  %vm4201_vm1 = vcmp.ge.f32.partialorder %v4160_v28, 0.0  ;;  %v4242_v15 = vmul.f32 0.2, %v4160_v28 }
 0x4ed   : > { %4324 = vst.msk [vmem:[%s7550_s23 + $0x110] sm:$0xff] %vm4289_vm4, %v4282_v60  ;;  %v4055_v13 = vpop.f32.mrb[136].mxu1 }
 0x4ee   : > { %v4283_v1 = vsel %vm4201_vm1, %v4160_v28, %v4242_v15  ;;  %v4113_v47 = vadd.f32 %v4055_v13, %v7584_v19  ;;  %v5679_v11 = vpop.f32.mrb[137].mxu1 }
 0x4ef   : > { %4325 = vst.msk [vmem:[%s7550_s23 + $0x118] sm:$0xff] %vm4289_vm4, %v4283_v1  ;;  %v4058_v31 = vpop.f32.mrb[138].mxu1 }
 0x4f0   : > { %v4161_v16 = vadd.f32 %v7536_v37, %v4113_v47  ;;  %v4114_v14 = vadd.f32 %v4058_v31, %v7591_v38  ;;  %v5680_v35 = vpop.f32.mrb[139].mxu1 }
 0x4f2   : > { %vm4202_vm2 = vcmp.ge.f32.partialorder %v4161_v16, 0.0  ;;  %v4243_v17 = vmul.f32 0.2, %v4161_v16  ;;  %v4162_v41 = vadd.f32 %v7536_v37, %v4114_v14 }
 0x4f4   : > { %v4284_v53 = vsel %vm4202_vm2, %v4161_v16, %v4243_v17  ;;  %vm4203_vm5 = vcmp.ge.f32.partialorder %v4162_v41, 0.0  ;;  %v4244_v9 = vmul.f32 0.2, %v4162_v41 }
 0x4f5   : > { %4326 = vst.msk [vmem:[%s7550_s23 + $0x120] sm:$0xff] %vm4289_vm4, %v4284_v53  ;;  %v4063_v19 = vpop.f32.mrb[140].mxu1 }
 0x4f6   : > { %v4285_v61 = vsel %vm4203_vm5, %v4162_v41, %v4244_v9  ;;  %v4115_v57 = vadd.f32 %v4063_v19, %v7598_v42  ;;  %v5683_v0 = vpop.f32.mrb[141].mxu1 }
 0x4f7   : > { %4327 = vst.msk [vmem:[%s7550_s23 + $0x128] sm:$0xff] %vm4289_vm4, %v4285_v61  ;;  %v4066_v38 = vpop.f32.mrb[142].mxu1 }
 0x4f8   : > { %v4163_v25 = vadd.f32 %v7536_v37, %v4115_v57  ;;  %v4116_v27 = vadd.f32 %v4066_v38, %v7605_v36  ;;  %v5684_v51 = vpop.f32.mrb[143].mxu1 }
 0x4fa   : > { %vm4204_vm7 = vcmp.ge.f32.partialorder %v4163_v25, 0.0  ;;  %v4245_v44 = vmul.f32 0.2, %v4163_v25  ;;  %v4164_v3 = vadd.f32 %v7536_v37, %v4116_v27 }
 0x4fc   : > { %v4286_v62 = vsel %vm4204_vm7, %v4163_v25, %v4245_v44  ;;  %vm4205_vm8 = vcmp.ge.f32.partialorder %v4164_v3, 0.0  ;;  %v4246_v24 = vmul.f32 0.2, %v4164_v3 }
 0x4fd   : > { %4328 = vst.msk [vmem:[%s7550_s23 + $0x130] sm:$0xff] %vm4289_vm4, %v4286_v62  ;;  %v4071_v42 = vpop.f32.mrb[144].mxu1 }
 0x4fe   : > { %v4287_v58 = vsel %vm4205_vm8, %v4164_v3, %v4246_v24  ;;  %v4117_v7 = vadd.f32 %v4071_v42, %v7612_v2  ;;  %v5687_v52 = vpop.f32.mrb[145].mxu1 }
 0x4ff   : > { %4329 = vst.msk [vmem:[%s7550_s23 + $0x138] sm:$0xff] %vm4289_vm4, %v4287_v58  ;;  %v4074_v46 = vpop.f32.mrb[146].mxu1 }
 0x500   : > { %v4165_v36 = vadd.f32 %v7536_v37, %v4117_v7  ;;  %v5688_v30 = vpop.f32.mrb[147].mxu1 }
 0x502   : > { %vm4206_vm9 = vcmp.ge.f32.partialorder %v4165_v36, 0.0  ;;  %v4247_v21 = vmul.f32 0.2, %v4165_v36 }
 0x504   : > { %v4288_v23 = vsel %vm4206_vm9, %v4165_v36, %v4247_v21 }
 0x505   : > { %4330 = vst.msk [vmem:[%s7550_s23 + $0x140] sm:$0xff] %vm4289_vm4, %v4288_v23 }
 0x506 PF: > { %s14_s15 = sadd.s32 1, %s5732_s15  }
 0x507   : > { %p11_p5 = scmp.ge.s32.totalorder %s14_s15, 4  }
 0x509   :  { %13 = sbr.rel (!%p11_p5) target bundleno = 1 (0x1), region = 74 }

</bundles_post_ra>
